<compile_context>
chip_gen: v7x
topology: tpu7x:2x2x1
jax: 0.10.0
libtpu: 0.0.40
codegen_flags: <defaults>
</compile_context>

<pallas_src>
import functools
import math

import jax
import jax.numpy as jnp
from jax import lax
from jax.experimental import pallas as pl
from jax.experimental.pallas import tpu as pltpu


# ----------------------------------------------------------------------------
# Chip-generation-aware defaults
# ----------------------------------------------------------------------------
def _chip_config():
    """(vmem_limit_bytes, is_v7x) chosen per TPU generation."""
    try:
        kind = jax.devices()[0].device_kind.lower()
    except Exception:
        kind = ""
    is_v7x = "v7" in kind
    # v7x: 64 MiB physical VMEM per TensorCore -> leave headroom for Mosaic.
    # v5e/v6e: 128 MiB physical -> use most of it for bigger resident tiles.
    vmem_limit = (52 if is_v7x else 100) * 1024 * 1024
    return vmem_limit, is_v7x


# ----------------------------------------------------------------------------
# Pallas kernels
# ----------------------------------------------------------------------------
def _layernorm(v, g, b, eps=1e-5):
    """PyTorch-style LayerNorm over the last dim (biased variance, eps=1e-5)."""
    mu = jnp.mean(v, axis=-1, keepdims=True)
    var = jnp.mean(jnp.square(v - mu), axis=-1, keepdims=True)
    return (v - mu) * lax.rsqrt(var + eps) * g + b


def decoder_stack_kernel(
    x0_ref, mem_ref, mask_ref,
    sa_wqkv_ref, sa_bqkv_ref, sa_wo_ref, sa_bo_ref,
    ca_wqkv_ref, ca_bqkv_ref, ca_wo_ref, ca_bo_ref,
    w1_ref, b1_ref, w2_ref, b2_ref,
    ln_g_ref, ln_b_ref,
    out_ref, *, n_head):
    """One Mesh_TransformerDecoderLayer per (batch-tile, layer) grid step.

    out_ref doubles as the running activation: its block index is constant
    along the (inner, "arbitrary") layer axis, so it stays VMEM-resident and is
    only written back to HBM after the last layer of each batch tile.
    """
    layer = pl.program_id(1)

    @pl.when(layer == 0)
    def _():
        out_ref[...] = x0_ref[...]          # seed the running activation

    TB, L, D = out_ref.shape
    S = mem_ref.shape[1]
    M = TB * L
    H = n_head
    Dh = D // H

    mask = mask_ref[...]                    # (L, L) additive causal mask
    ln_g = ln_g_ref[...]                    # (3, D) f32
    ln_b = ln_b_ref[...]                    # (3, D) f32

    def split_heads(t2d, T):
        # (TB*T, D) bf16 -> (H*TB, T, Dh): lane slices stacked on a NEW leading
        # (batch) axis -- cheap tile placement, no minor-dim concat.
        t3 = t2d.reshape(TB, T, D)
        if H == 1:
            return t3
        return jnp.concatenate(
            [t3[:, :, h * Dh:(h + 1) * Dh] for h in range(H)], axis=0)

    def merge_heads(ctx, T):
        # (H*TB, T, Dh) -> (TB*T, D): one minor-dim concat (instead of per-head
        # accumulation), feeding a single output-projection matmul.
        if H == 1:
            o3 = ctx
        else:
            o3 = jnp.concatenate(
                [ctx[h * TB:(h + 1) * TB] for h in range(H)], axis=-1)
        return o3.reshape(TB * T, D)

    def mha(q2d, Lq, kv2d, Lk, wqkv_ref, bqkv_ref, wo_ref, bo_ref, attn_mask):
        """q2d: (TB*Lq, D) f32, kv2d: (TB*Lk, D) f32 -> (TB*Lq, D) f32."""
        wqkv = wqkv_ref[...]                # (3, D, D) bf16 (q pre-scaled by 1/sqrt(Dh))
        bqkv = bqkv_ref[...]                # (3, D)    f32
        qb = q2d.astype(jnp.bfloat16)
        kvb = kv2d.astype(jnp.bfloat16)
        q = (jnp.dot(qb, wqkv[0], preferred_element_type=jnp.float32)
             + bqkv[0:1]).astype(jnp.bfloat16)
        k = (jnp.dot(kvb, wqkv[1], preferred_element_type=jnp.float32)
             + bqkv[1:2]).astype(jnp.bfloat16)
        v = (jnp.dot(kvb, wqkv[2], preferred_element_type=jnp.float32)
             + bqkv[2:3]).astype(jnp.bfloat16)

        qh = split_heads(q, Lq)             # (H*TB, Lq, Dh) bf16
        kh = split_heads(k, Lk)             # (H*TB, Lk, Dh) bf16
        vh = split_heads(v, Lk)             # (H*TB, Lk, Dh) bf16

        # Single batched contraction for all heads: (H*TB, Lq, Lk) f32.
        s = jnp.einsum('bqd,bkd->bqk', qh, kh,
                       preferred_element_type=jnp.float32)
        if attn_mask is not None:
            s = s + attn_mask[None, :, :]
        s = s - jnp.max(s, axis=-1, keepdims=True)
        p = jnp.exp(s)
        p = p * pl.reciprocal(jnp.sum(p, axis=-1, keepdims=True), approx=True)

        # Single batched PV: (H*TB, Lq, Dh) f32.
        ctx = jnp.einsum('bqk,bkd->bqd', p.astype(jnp.bfloat16), vh,
                         preferred_element_type=jnp.float32)
        o = merge_heads(ctx, Lq).astype(jnp.bfloat16)       # (TB*Lq, D)
        return (jnp.dot(o, wo_ref[...], preferred_element_type=jnp.float32)
                + bo_ref[...])                               # (TB*Lq, D) f32

    xf = out_ref[...].reshape(M, D)                          # running activation (f32)
    memf = mem_ref[...].reshape(TB * S, D)

    # self-attention block + residual + norm1
    sa = mha(xf, L, xf, L, sa_wqkv_ref, sa_bqkv_ref, sa_wo_ref, sa_bo_ref, mask)
    y1 = _layernorm(xf + sa, ln_g[0:1], ln_b[0:1])
    # cross-attention block (multihead_attn2, no mask) + residual + norm2
    ca = mha(y1, L, memf, S, ca_wqkv_ref, ca_bqkv_ref, ca_wo_ref, ca_bo_ref, None)
    y2 = _layernorm(y1 + ca, ln_g[1:2], ln_b[1:2])
    # feed-forward block + residual + norm3
    hdn = jnp.maximum(
        jnp.dot(y2.astype(jnp.bfloat16), w1_ref[...],
                preferred_element_type=jnp.float32) + b1_ref[...], 0.0)
    ff = jnp.dot(hdn.astype(jnp.bfloat16), w2_ref[...],
                 preferred_element_type=jnp.float32) + b2_ref[...]
    y3 = _layernorm(y2 + ff, ln_g[2:3], ln_b[2:3])

    out_ref[...] = y3.reshape(TB, L, D)     # stays resident for the next layer


def wdc_kernel(x_ref, w_ref, b_ref, out_ref):
    """Vocab projection tile: x (TM, D) f32, w (D, TV) bf16 -> (TM, TV) f32."""
    x = x_ref[...].astype(jnp.bfloat16)
    out_ref[...] = (jnp.dot(x, w_ref[...], preferred_element_type=jnp.float32)
                    + b_ref[...]).astype(out_ref.dtype)


# ----------------------------------------------------------------------------
# Wrappers (pallas_call setup)
# ----------------------------------------------------------------------------
def run_decoder_stack(x0, mem, mask, p, n_head, *, batch_tile=None):
    vmem_limit, is_v7x = _chip_config()
    B, L, D = x0.shape
    S = mem.shape[1]
    n_layers = p["sa_wqkv"].shape[0]
    FF = p["w1"].shape[-1]

    if batch_tile is None:
        # Prefer nb == 1 (weights streamed from HBM exactly once).  On v7x split
        # the parallel batch axis in two so both TensorCores get work; the 2x
        # weight re-stream is affordable at 3.2 TB/s HBM.
        batch_tile = B // 2 if (is_v7x and B >= 2 and B % 2 == 0) else B
    TB = batch_tile
    assert B % TB == 0
    nb = B // TB
    # Note: M = TB*L is the matmul M dimension; for real workloads size it to a
    # multiple of 128/256 so projections/FFN beat the ~32*D^2-byte-per-layer
    # weight-streaming roofline.

    def act_spec(t):
        return pl.BlockSpec((TB, t, D), lambda b, l: (b, 0, 0))

    def wspec(*dims):
        # stacked per-layer weight (n_layers, *dims); stream one layer per step
        nd = len(dims)
        return pl.BlockSpec((None,) + dims, lambda b, l, nd=nd: (l,) + (0,) * nd)

    operands = (x0, mem, mask,
                p["sa_wqkv"], p["sa_bqkv"], p["sa_wo"], p["sa_bo"],
                p["ca_wqkv"], p["ca_bqkv"], p["ca_wo"], p["ca_bo"],
                p["w1"], p["b1"], p["w2"], p["b2"],
                p["ln_g"], p["ln_b"])

    flops = n_layers * (
        2 * B * L * D * 3 * D          # self-attn qkv projections
        + 4 * B * L * L * D            # self-attn scores + PV
        + 2 * B * L * D * D            # self-attn out proj
        + 2 * B * L * D * D            # cross-attn q proj
        + 4 * B * S * D * D            # cross-attn k/v projections
        + 4 * B * L * S * D            # cross-attn scores + PV
        + 2 * B * L * D * D            # cross-attn out proj
        + 4 * B * L * D * FF)          # feed-forward
    transcendentals = n_layers * B * n_head * L * (L + S)
    # weights are re-streamed once per batch tile (nb x); activations stream once
    weight_bytes = sum(int(a.size) * a.dtype.itemsize for a in operands[3:])
    io_bytes = (int(x0.size) * x0.dtype.itemsize
                + int(mem.size) * mem.dtype.itemsize
                + int(mask.size) * mask.dtype.itemsize
                + B * L * D * 4)
    bytes_accessed = nb * weight_bytes + io_bytes

    kernel = functools.partial(decoder_stack_kernel, n_head=n_head)
    return pl.pallas_call(
        kernel,
        out_shape=jax.ShapeDtypeStruct((B, L, D), jnp.float32),
        grid=(nb, n_layers),
        in_specs=[
            act_spec(L),                                 # layer-0 input
            act_spec(S),                                 # encoder memory
            pl.BlockSpec((L, L), lambda b, l: (0, 0)),   # additive causal mask
            wspec(3, D, D), wspec(3, D),                 # self-attn qkv (scale folded)
            wspec(D, D), wspec(1, D),                    # self-attn out proj
            wspec(3, D, D), wspec(3, D),                 # cross-attn qkv (scale folded)
            wspec(D, D), wspec(1, D),                    # cross-attn out proj
            wspec(D, FF), wspec(1, FF),                  # linear1
            wspec(FF, D), wspec(1, D),                   # linear2
            wspec(3, D), wspec(3, D),                    # layernorm gamma / beta
        ],
        out_specs=pl.BlockSpec((TB, L, D), lambda b, l: (b, 0, 0)),
        compiler_params=pltpu.CompilerParams(
            dimension_semantics=("parallel", "arbitrary"),
            vmem_limit_bytes=vmem_limit),
        cost_estimate=pl.CostEstimate(flops=flops,
                                      transcendentals=transcendentals,
                                      bytes_accessed=bytes_accessed),
    )(*operands)


def run_wdc(x2d, w_t, b):
    """Vocab projection; V already padded to a multiple of 128 (lane-dense tiles)."""
    vmem_limit, _ = _chip_config()
    M, D = x2d.shape
    Vp = w_t.shape[1]

    TV = Vp
    for cand in (2048, 1024, 512, 256, 128):
        if Vp % cand == 0:
            TV = cand
            break
    TM = M
    for cand in (512, 256, 128, 64, 32, 16, 8):
        if M % cand == 0:
            TM = cand
            break
    nv, nm = Vp // TV, M // TM

    flops = 2 * M * D * Vp
    # vocab outer / M inner: the (D, TV) weight tile stays resident across the
    # inner M axis; x is re-streamed nv times (cheaper than nm x weight).
    bytes_accessed = (int(w_t.size) * w_t.dtype.itemsize
                      + int(b.size) * b.dtype.itemsize
                      + nv * int(x2d.size) * x2d.dtype.itemsize
                      + M * Vp * 4)
    return pl.pallas_call(
        wdc_kernel,
        out_shape=jax.ShapeDtypeStruct((M, Vp), jnp.float32),
        grid=(nv, nm),
        in_specs=[
            pl.BlockSpec((TM, D), lambda j, i: (i, 0)),
            pl.BlockSpec((D, TV), lambda j, i: (0, j)),
            pl.BlockSpec((1, TV), lambda j, i: (0, j)),
        ],
        out_specs=pl.BlockSpec((TM, TV), lambda j, i: (i, j)),
        compiler_params=pltpu.CompilerParams(
            dimension_semantics=("parallel", "parallel"),
            vmem_limit_bytes=vmem_limit),
        cost_estimate=pl.CostEstimate(flops=flops, transcendentals=0,
                                      bytes_accessed=bytes_accessed),
    )(x2d, w_t, b)


# ----------------------------------------------------------------------------
# Parameters & glue (embedding, positional encoding, masks, sorting)
# ----------------------------------------------------------------------------
def init_params(key, D, n_layers, vocab):
    FF = 4 * D
    keys = jax.random.split(key, 2 + n_layers)
    s = 1.0 / math.sqrt(D)
    params = {
        "emb": jax.random.uniform(keys[0], (vocab, D), jnp.float32, -0.1, 0.1),
        # wdc stored transposed (D, V) so the kernel does x @ W
        "wdc_wT": jax.random.uniform(keys[1], (D, vocab), jnp.float32, -0.1, 0.1),
        "wdc_b": jnp.zeros((1, vocab), jnp.float32),
        "layers": [],
    }
    for li in range(n_layers):
        k = jax.random.split(keys[2 + li], 12)
        lp = {
            "sa_wqkv": jax.random.uniform(k[0], (3, D, D), jnp.float32, -s, s),
            "sa_bqkv": jax.random.uniform(k[1], (3, D), jnp.float32, -s, s),
            "sa_wo":   jax.random.uniform(k[2], (D, D), jnp.float32, -s, s),
            "sa_bo":   jax.random.uniform(k[3], (1, D), jnp.float32, -s, s),
            "ca_wqkv": jax.random.uniform(k[4], (3, D, D), jnp.float32, -s, s),
            "ca_bqkv": jax.random.uniform(k[5], (3, D), jnp.float32, -s, s),
            "ca_wo":   jax.random.uniform(k[6], (D, D), jnp.float32, -s, s),
            "ca_bo":   jax.random.uniform(k[7], (1, D), jnp.float32, -s, s),
            "w1":      jax.random.uniform(k[8], (D, 4 * D), jnp.float32, -s, s),
            "b1":      jax.random.uniform(k[9], (1, 4 * D), jnp.float32, -s, s),
            "w2":      jax.random.uniform(k[10], (4 * D, D), jnp.float32, -s, s),
            "b2":      jax.random.uniform(k[11], (1, D), jnp.float32, -s, s),
            "ln_g":    jnp.ones((3, D), jnp.float32),   # PyTorch LayerNorm default
            "ln_b":    jnp.zeros((3, D), jnp.float32),
        }
        params["layers"].append(lp)
    return params


def pack_params(params, n_head):
    """Stack per-layer weights along a leading layer axis, fold the 1/sqrt(Dh)
    attention scale into the q projection, cast matmul weights to bf16, and pad
    the vocab dim of wdc to a multiple of 128 (lane-dense output tiles)."""
    layers = params["layers"]
    D = layers[0]["sa_wo"].shape[0]
    Dh = D // n_head
    scale = jnp.float32(1.0 / math.sqrt(Dh))

    def stack(name):
        return jnp.stack([lp[name] for lp in layers], axis=0)

    sa_wqkv = stack("sa_wqkv").at[:, 0].multiply(scale)
    sa_bqkv = stack("sa_bqkv").at[:, 0].multiply(scale)
    ca_wqkv = stack("ca_wqkv").at[:, 0].multiply(scale)
    ca_bqkv = stack("ca_bqkv").at[:, 0].multiply(scale)

    V = params["wdc_wT"].shape[1]
    Vp = ((V + 127) // 128) * 128
    wdc_wT = jnp.pad(params["wdc_wT"], ((0, 0), (0, Vp - V)))
    wdc_b = jnp.pad(params["wdc_b"], ((0, 0), (0, Vp - V)))

    bf16 = jnp.bfloat16
    return {
        "emb": params["emb"],
        "wdc_wT": wdc_wT.astype(bf16), "wdc_b": wdc_b,
        "sa_wqkv": sa_wqkv.astype(bf16), "sa_bqkv": sa_bqkv,
        "sa_wo": stack("sa_wo").astype(bf16), "sa_bo": stack("sa_bo"),
        "ca_wqkv": ca_wqkv.astype(bf16), "ca_bqkv": ca_bqkv,
        "ca_wo": stack("ca_wo").astype(bf16), "ca_bo": stack("ca_bo"),
        "w1": stack("w1").astype(bf16), "b1": stack("b1"),
        "w2": stack("w2").astype(bf16), "b2": stack("b2"),
        "ln_g": stack("ln_g"), "ln_b": stack("ln_b"),
    }


def positional_encoding(L, D):
    pos = jnp.arange(L, dtype=jnp.float32)[:, None]
    div = jnp.exp(jnp.arange(0, D, 2, dtype=jnp.float32) * (-math.log(10000.0) / D))
    ang = pos * div
    pe = jnp.zeros((L, D), jnp.float32)
    pe = pe.at[:, 0::2].set(jnp.sin(ang))
    pe = pe.at[:, 1::2].set(jnp.cos(ang))
    return pe


def causal_mask(L):
    i = jnp.arange(L)[:, None]
    j = jnp.arange(L)[None, :]
    return jnp.where(j <= i, 0.0, -jnp.inf).astype(jnp.float32)


def decoder_transformer_forward(packed, memory, encoded_captions, caption_lengths,
                                n_head):
    """memory: (S, B, D) f32; encoded_captions: (B, L) int32;
    caption_lengths: (B, 1) int32.  Returns (pred, encoded_captions_sorted,
    decode_lengths, sort_ind) matching the PyTorch module semantics."""
    B, L = encoded_captions.shape
    D = packed["emb"].shape[1]
    V = packed["emb"].shape[0]

    # TODO(synk): embedding gather, positional-encoding table and the final
    # descending-length sort are left as XLA/host glue (no benefit as Pallas
    # kernels at these sizes).
    tgt_emb = packed["emb"][encoded_captions]                 # (B, L, D)
    x = tgt_emb + positional_encoding(L, D)[None, :, :]       # dropout = identity

    mem = jnp.transpose(memory, (1, 0, 2))                    # (B, S, D)
    mask = causal_mask(L)

    # fused nn.TransformerDecoder (stack of Mesh_TransformerDecoderLayer, norm=None)
    x = run_decoder_stack(x, mem, mask, packed, n_head)       # (B, L, D)

    # wdc(dropout(pred)); permute(1,0,2) is implicit (we are already batch-major)
    pred = run_wdc(x.reshape(B * L, D), packed["wdc_wT"], packed["wdc_b"])
    pred = pred[:, :V].reshape(B, L, V)                       # strip vocab padding

    # sort by caption length, descending
    lens = caption_lengths[:, 0]
    sort_ind = jnp.argsort(-lens)
    sorted_lens = lens[sort_ind]
    enc_sorted = encoded_captions[sort_ind]
    pred = pred[sort_ind]
    decode_lengths = sorted_lens - 1                          # .tolist() done by caller
    return pred, enc_sorted, decode_lengths, sort_ind


# ----------------------------------------------------------------------------
if __name__ == "__main__":
    B, L, S = 2, 8, 16
    D, n_head, n_layers, vocab = 32, 4, 2, 50

    key = jax.random.PRNGKey(0)
    kp, km, kc, kl = jax.random.split(key, 4)

    params = init_params(kp, D, n_layers, vocab)
    packed = pack_params(params, n_head)

    memory = jax.random.normal(km, (S, B, D), jnp.float32)          # (S, batch, feat)
    encoded_captions = jax.random.randint(kc, (B, L), 0, vocab, jnp.int32)
    caption_lengths = jax.random.randint(kl, (B, 1), 3, L + 1, jnp.int32)

    pred, enc_sorted, decode_lengths, sort_ind = decoder_transformer_forward(
        packed, memory, encoded_captions, caption_lengths, n_head)

    jax.block_until_ready(pred)
    jax.block_until_ready(enc_sorted)
    decode_lengths = [int(v) for v in decode_lengths]  # mirrors .tolist()

    assert pred.shape == (B, L, vocab)
    assert enc_sorted.shape == (B, L)
    assert sort_ind.shape == (B,)
    assert len(decode_lengths) == B
    assert bool(jnp.isfinite(pred).all())
    print("KERNEL_OK")
</pallas_src>

<mosaic_0001>
module attributes {stable_mosaic.version = 11 : i64} {
  func.func @decoder_stack_kernel(%arg0: i32, %arg1: i32, %arg2: memref<2x8x32xf32, #tpu.memory_space<vmem>>, %arg3: memref<2x16x32xf32, #tpu.memory_space<vmem>>, %arg4: memref<8x8xf32, #tpu.memory_space<vmem>>, %arg5: memref<1x3x32x32xbf16, #tpu.memory_space<vmem>>, %arg6: memref<1x3x32xf32, #tpu.memory_space<vmem>>, %arg7: memref<1x32x32xbf16, #tpu.memory_space<vmem>>, %arg8: memref<1x1x32xf32, #tpu.memory_space<vmem>>, %arg9: memref<1x3x32x32xbf16, #tpu.memory_space<vmem>>, %arg10: memref<1x3x32xf32, #tpu.memory_space<vmem>>, %arg11: memref<1x32x32xbf16, #tpu.memory_space<vmem>>, %arg12: memref<1x1x32xf32, #tpu.memory_space<vmem>>, %arg13: memref<1x32x128xbf16, #tpu.memory_space<vmem>>, %arg14: memref<1x1x128xf32, #tpu.memory_space<vmem>>, %arg15: memref<1x128x32xbf16, #tpu.memory_space<vmem>>, %arg16: memref<1x1x32xf32, #tpu.memory_space<vmem>>, %arg17: memref<1x3x32xf32, #tpu.memory_space<vmem>>, %arg18: memref<1x3x32xf32, #tpu.memory_space<vmem>>, %arg19: memref<2x8x32xf32, #tpu.memory_space<vmem>>) attributes {dimension_semantics = [#tpu.dimension_semantics<parallel>, #tpu.dimension_semantics<arbitrary>], iteration_bounds = array<i64: 1, 2>, scalar_prefetch = 0 : i64, scratch_operands = 0 : i64, tpu.core_type = #tpu.core_type<tc>, window_params = [{transform_indices = @transform_0, window_bounds = array<i64: 2, 8, 32>}, {transform_indices = @transform_1, window_bounds = array<i64: 2, 16, 32>}, {pipeline_mode = #tpu.pipeline_mode<synchronous>, transform_indices = @transform_2, window_bounds = array<i64: 8, 8>}, {transform_indices = @transform_3, window_bounds = array<i64: 1, 3, 32, 32>}, {transform_indices = @transform_4, window_bounds = array<i64: 1, 3, 32>}, {transform_indices = @transform_5, window_bounds = array<i64: 1, 32, 32>}, {transform_indices = @transform_6, window_bounds = array<i64: 1, 1, 32>}, {transform_indices = @transform_7, window_bounds = array<i64: 1, 3, 32, 32>}, {transform_indices = @transform_8, window_bounds = array<i64: 1, 3, 32>}, {transform_indices = @transform_9, window_bounds = array<i64: 1, 32, 32>}, {transform_indices = @transform_10, window_bounds = array<i64: 1, 1, 32>}, {transform_indices = @transform_11, window_bounds = array<i64: 1, 32, 128>}, {transform_indices = @transform_12, window_bounds = array<i64: 1, 1, 128>}, {transform_indices = @transform_13, window_bounds = array<i64: 1, 128, 32>}, {transform_indices = @transform_14, window_bounds = array<i64: 1, 1, 32>}, {transform_indices = @transform_15, window_bounds = array<i64: 1, 3, 32>}, {transform_indices = @transform_16, window_bounds = array<i64: 1, 3, 32>}, {transform_indices = @transform_17, window_bounds = array<i64: 2, 8, 32>}]} {
    %c0_i32 = arith.constant 0 : i32
    %0 = arith.cmpi eq, %arg1, %c0_i32 : i32
    %1 = arith.extui %0 : i1 to i32
    %c0_i32_0 = arith.constant 0 : i32
    %2 = arith.cmpi ne, %1, %c0_i32_0 : i32
    scf.if %2 {
      %c0_88 = arith.constant 0 : index
      %c0_89 = arith.constant 0 : index
      %c0_90 = arith.constant 0 : index
      %254 = vector.load %arg2[%c0_88, %c0_89, %c0_90] : memref<2x8x32xf32, #tpu.memory_space<vmem>>, vector<2x8x32xf32>
      %c0_91 = arith.constant 0 : index
      %c0_92 = arith.constant 0 : index
      %c0_93 = arith.constant 0 : index
      %255 = vector.load %arg19[%c0_91, %c0_92, %c0_93] : memref<2x8x32xf32, #tpu.memory_space<vmem>>, vector<2x8x32xf32>
      tpu.vector_store %arg19[%c0_91, %c0_92, %c0_93], %254 {strides = array<i32>} : memref<2x8x32xf32, #tpu.memory_space<vmem>>, vector<2x8x32xf32>,
    } else {
    }
    %c0 = arith.constant 0 : index
    %c0_1 = arith.constant 0 : index
    %3 = vector.load %arg4[%c0, %c0_1] : memref<8x8xf32, #tpu.memory_space<vmem>>, vector<8x8xf32>
    %c0_2 = arith.constant 0 : index
    %c0_3 = arith.constant 0 : index
    %c0_4 = arith.constant 0 : index
    %4 = vector.load %arg17[%c0_2, %c0_3, %c0_4] : memref<1x3x32xf32, #tpu.memory_space<vmem>>, vector<1x3x32xf32>
    %5 = vector.shape_cast %4 : vector<1x3x32xf32> to vector<3x32xf32>
    %c0_5 = arith.constant 0 : index
    %c0_6 = arith.constant 0 : index
    %c0_7 = arith.constant 0 : index
    %6 = vector.load %arg18[%c0_5, %c0_6, %c0_7] : memref<1x3x32xf32, #tpu.memory_space<vmem>>, vector<1x3x32xf32>
    %7 = vector.shape_cast %6 : vector<1x3x32xf32> to vector<3x32xf32>
    %c0_8 = arith.constant 0 : index
    %c0_9 = arith.constant 0 : index
    %c0_10 = arith.constant 0 : index
    %8 = vector.load %arg19[%c0_8, %c0_9, %c0_10] : memref<2x8x32xf32, #tpu.memory_space<vmem>>, vector<2x8x32xf32>
    %9 = vector.shape_cast %8 : vector<2x8x32xf32> to vector<16x32xf32>
    %c0_11 = arith.constant 0 : index
    %c0_12 = arith.constant 0 : index
    %c0_13 = arith.constant 0 : index
    %10 = vector.load %arg3[%c0_11, %c0_12, %c0_13] : memref<2x16x32xf32, #tpu.memory_space<vmem>>, vector<2x16x32xf32>
    %11 = vector.shape_cast %10 : vector<2x16x32xf32> to vector<32x32xf32>
    %c0_14 = arith.constant 0 : index
    %c0_15 = arith.constant 0 : index
    %c0_16 = arith.constant 0 : index
    %c0_17 = arith.constant 0 : index
    %12 = vector.load %arg5[%c0_14, %c0_15, %c0_16, %c0_17] : memref<1x3x32x32xbf16, #tpu.memory_space<vmem>>, vector<1x3x32x32xbf16>
    %13 = vector.shape_cast %12 : vector<1x3x32x32xbf16> to vector<3x32x32xbf16>
    %c0_18 = arith.constant 0 : index
    %c0_19 = arith.constant 0 : index
    %c0_20 = arith.constant 0 : index
    %14 = vector.load %arg6[%c0_18, %c0_19, %c0_20] : memref<1x3x32xf32, #tpu.memory_space<vmem>>, vector<1x3x32xf32>
    %15 = vector.shape_cast %14 : vector<1x3x32xf32> to vector<3x32xf32>
    %16 = arith.truncf %9 : vector<16x32xf32> to vector<16x32xbf16>
    %17 = arith.truncf %9 : vector<16x32xf32> to vector<16x32xbf16>
    %18 = vector.extract_strided_slice %13 {offsets = [0, 0, 0], sizes = [1, 32, 32], strides = [1, 1, 1]} : vector<3x32x32xbf16> to vector<1x32x32xbf16>
    %19 = vector.shape_cast %18 : vector<1x32x32xbf16> to vector<32x32xbf16>
    %cst = arith.constant dense<0.000000e+00> : vector<16x32xf32>
    %20 = tpu.matmul %16, %19, %cst {dimension_numbers = #tpu.dot_dimension_numbers<[1], [0], [0], [1], [0, 0, 1, 1], [], []>} : vector<16x32xbf16>, vector<32x32xbf16>, vector<16x32xf32> -> vector<16x32xf32>
    %21 = vector.extract_strided_slice %15 {offsets = [0, 0], sizes = [1, 32], strides = [1, 1]} : vector<3x32xf32> to vector<1x32xf32>
    %22 = vector.broadcast %21 : vector<1x32xf32> to vector<16x32xf32>
    %23 = arith.addf %20, %22 : vector<16x32xf32>
    %24 = arith.truncf %23 : vector<16x32xf32> to vector<16x32xbf16>
    %25 = vector.extract_strided_slice %13 {offsets = [1, 0, 0], sizes = [1, 32, 32], strides = [1, 1, 1]} : vector<3x32x32xbf16> to vector<1x32x32xbf16>
    %26 = vector.shape_cast %25 : vector<1x32x32xbf16> to vector<32x32xbf16>
    %cst_21 = arith.constant dense<0.000000e+00> : vector<16x32xf32>
    %27 = tpu.matmul %17, %26, %cst_21 {dimension_numbers = #tpu.dot_dimension_numbers<[1], [0], [0], [1], [0, 0, 1, 1], [], []>} : vector<16x32xbf16>, vector<32x32xbf16>, vector<16x32xf32> -> vector<16x32xf32>
    %28 = vector.extract_strided_slice %15 {offsets = [1, 0], sizes = [1, 32], strides = [1, 1]} : vector<3x32xf32> to vector<1x32xf32>
    %29 = vector.broadcast %28 : vector<1x32xf32> to vector<16x32xf32>
    %30 = arith.addf %27, %29 : vector<16x32xf32>
    %31 = arith.truncf %30 : vector<16x32xf32> to vector<16x32xbf16>
    %32 = vector.extract_strided_slice %13 {offsets = [2, 0, 0], sizes = [1, 32, 32], strides = [1, 1, 1]} : vector<3x32x32xbf16> to vector<1x32x32xbf16>
    %33 = vector.shape_cast %32 : vector<1x32x32xbf16> to vector<32x32xbf16>
    %cst_22 = arith.constant dense<0.000000e+00> : vector<16x32xf32>
    %34 = tpu.matmul %17, %33, %cst_22 {dimension_numbers = #tpu.dot_dimension_numbers<[1], [0], [0], [1], [0, 0, 1, 1], [], []>} : vector<16x32xbf16>, vector<32x32xbf16>, vector<16x32xf32> -> vector<16x32xf32>
    %35 = vector.extract_strided_slice %15 {offsets = [2, 0], sizes = [1, 32], strides = [1, 1]} : vector<3x32xf32> to vector<1x32xf32>
    %36 = vector.broadcast %35 : vector<1x32xf32> to vector<16x32xf32>
    %37 = arith.addf %34, %36 : vector<16x32xf32>
    %38 = arith.truncf %37 : vector<16x32xf32> to vector<16x32xbf16>
    %39 = vector.shape_cast %24 : vector<16x32xbf16> to vector<2x8x32xbf16>
    %40 = vector.extract_strided_slice %39 {offsets = [0, 0, 0], sizes = [2, 8, 8], strides = [1, 1, 1]} : vector<2x8x32xbf16> to vector<2x8x8xbf16>
    %41 = vector.extract_strided_slice %39 {offsets = [0, 0, 8], sizes = [2, 8, 8], strides = [1, 1, 1]} : vector<2x8x32xbf16> to vector<2x8x8xbf16>
    %42 = vector.extract_strided_slice %39 {offsets = [0, 0, 16], sizes = [2, 8, 8], strides = [1, 1, 1]} : vector<2x8x32xbf16> to vector<2x8x8xbf16>
    %43 = vector.extract_strided_slice %39 {offsets = [0, 0, 24], sizes = [2, 8, 8], strides = [1, 1, 1]} : vector<2x8x32xbf16> to vector<2x8x8xbf16>
    %44 = tpu.concatenate %40, %41, %42, %43 in 0 : vector<2x8x8xbf16>, vector<2x8x8xbf16>, vector<2x8x8xbf16>, vector<2x8x8xbf16> -> vector<8x8x8xbf16>
    %45 = vector.shape_cast %31 : vector<16x32xbf16> to vector<2x8x32xbf16>
    %46 = vector.extract_strided_slice %45 {offsets = [0, 0, 0], sizes = [2, 8, 8], strides = [1, 1, 1]} : vector<2x8x32xbf16> to vector<2x8x8xbf16>
    %47 = vector.extract_strided_slice %45 {offsets = [0, 0, 8], sizes = [2, 8, 8], strides = [1, 1, 1]} : vector<2x8x32xbf16> to vector<2x8x8xbf16>
    %48 = vector.extract_strided_slice %45 {offsets = [0, 0, 16], sizes = [2, 8, 8], strides = [1, 1, 1]} : vector<2x8x32xbf16> to vector<2x8x8xbf16>
    %49 = vector.extract_strided_slice %45 {offsets = [0, 0, 24], sizes = [2, 8, 8], strides = [1, 1, 1]} : vector<2x8x32xbf16> to vector<2x8x8xbf16>
    %50 = tpu.concatenate %46, %47, %48, %49 in 0 : vector<2x8x8xbf16>, vector<2x8x8xbf16>, vector<2x8x8xbf16>, vector<2x8x8xbf16> -> vector<8x8x8xbf16>
    %51 = vector.shape_cast %38 : vector<16x32xbf16> to vector<2x8x32xbf16>
    %52 = vector.extract_strided_slice %51 {offsets = [0, 0, 0], sizes = [2, 8, 8], strides = [1, 1, 1]} : vector<2x8x32xbf16> to vector<2x8x8xbf16>
    %53 = vector.extract_strided_slice %51 {offsets = [0, 0, 8], sizes = [2, 8, 8], strides = [1, 1, 1]} : vector<2x8x32xbf16> to vector<2x8x8xbf16>
    %54 = vector.extract_strided_slice %51 {offsets = [0, 0, 16], sizes = [2, 8, 8], strides = [1, 1, 1]} : vector<2x8x32xbf16> to vector<2x8x8xbf16>
    %55 = vector.extract_strided_slice %51 {offsets = [0, 0, 24], sizes = [2, 8, 8], strides = [1, 1, 1]} : vector<2x8x32xbf16> to vector<2x8x8xbf16>
    %56 = tpu.concatenate %52, %53, %54, %55 in 0 : vector<2x8x8xbf16>, vector<2x8x8xbf16>, vector<2x8x8xbf16>, vector<2x8x8xbf16> -> vector<8x8x8xbf16>
    "tpu.trace_start"() <{level = 10 : i32, message = "bqd,bkd->bqk"}> : () -> ()
    %cst_23 = arith.constant dense<0.000000e+00> : vector<8x8x8xf32>
    %57 = tpu.matmul %44, %50, %cst_23 {dimension_numbers = #tpu.dot_dimension_numbers<[2], [2], [1], [1], [0, 0, 0, 1, 1, 1], [0], [0]>} : vector<8x8x8xbf16>, vector<8x8x8xbf16>, vector<8x8x8xf32> -> vector<8x8x8xf32>
    "tpu.trace_stop"() : () -> ()
    %58 = vector.shape_cast %3 : vector<8x8xf32> to vector<1x8x8xf32>
    %59 = vector.broadcast %58 : vector<1x8x8xf32> to vector<8x8x8xf32>
    %60 = arith.addf %57, %59 : vector<8x8x8xf32>
    %cst_24 = arith.constant dense<0xFF800000> : vector<8x8xf32>
    %61 = vector.multi_reduction <maximumf>, %60, %cst_24 [2] : vector<8x8x8xf32> to vector<8x8xf32>
    %62 = vector.shape_cast %61 : vector<8x8xf32> to vector<8x8x1xf32>
    %63 = vector.broadcast %62 : vector<8x8x1xf32> to vector<8x8x8xf32>
    %64 = arith.subf %60, %63 : vector<8x8x8xf32>
    %65 = math.exp %64 : vector<8x8x8xf32>
    %cst_25 = arith.constant dense<0.000000e+00> : vector<8x8xf32>
    %66 = vector.multi_reduction <add>, %65, %cst_25 [2] : vector<8x8x8xf32> to vector<8x8xf32>
    %67 = vector.shape_cast %66 : vector<8x8xf32> to vector<8x8x1xf32>
    %68 = tpu.reciprocal %67 {approx = true} : vector<8x8x1xf32> -> vector<8x8x1xf32>
    %69 = vector.broadcast %68 : vector<8x8x1xf32> to vector<8x8x8xf32>
    %70 = arith.mulf %65, %69 : vector<8x8x8xf32>
    %71 = arith.truncf %70 : vector<8x8x8xf32> to vector<8x8x8xbf16>
    "tpu.trace_start"() <{level = 10 : i32, message = "bqk,bkd->bqd"}> : () -> ()
    %cst_26 = arith.constant dense<0.000000e+00> : vector<8x8x8xf32>
    %72 = tpu.matmul %71, %56, %cst_26 {dimension_numbers = #tpu.dot_dimension_numbers<[2], [1], [1], [2], [0, 0, 0, 1, 1, 2], [0], [0]>} : vector<8x8x8xbf16>, vector<8x8x8xbf16>, vector<8x8x8xf32> -> vector<8x8x8xf32>
    "tpu.trace_stop"() : () -> ()
    %73 = vector.extract_strided_slice %72 {offsets = [0, 0, 0], sizes = [2, 8, 8], strides = [1, 1, 1]} : vector<8x8x8xf32> to vector<2x8x8xf32>
    %74 = vector.extract_strided_slice %72 {offsets = [2, 0, 0], sizes = [2, 8, 8], strides = [1, 1, 1]} : vector<8x8x8xf32> to vector<2x8x8xf32>
    %75 = vector.extract_strided_slice %72 {offsets = [4, 0, 0], sizes = [2, 8, 8], strides = [1, 1, 1]} : vector<8x8x8xf32> to vector<2x8x8xf32>
    %76 = vector.extract_strided_slice %72 {offsets = [6, 0, 0], sizes = [2, 8, 8], strides = [1, 1, 1]} : vector<8x8x8xf32> to vector<2x8x8xf32>
    %77 = tpu.concatenate %73, %74, %75, %76 in 2 : vector<2x8x8xf32>, vector<2x8x8xf32>, vector<2x8x8xf32>, vector<2x8x8xf32> -> vector<2x8x32xf32>
    %78 = vector.shape_cast %77 : vector<2x8x32xf32> to vector<16x32xf32>
    %79 = arith.truncf %78 : vector<16x32xf32> to vector<16x32xbf16>
    %c0_27 = arith.constant 0 : index
    %c0_28 = arith.constant 0 : index
    %c0_29 = arith.constant 0 : index
    %80 = vector.load %arg7[%c0_27, %c0_28, %c0_29] : memref<1x32x32xbf16, #tpu.memory_space<vmem>>, vector<1x32x32xbf16>
    %81 = vector.shape_cast %80 : vector<1x32x32xbf16> to vector<32x32xbf16>
    %cst_30 = arith.constant dense<0.000000e+00> : vector<16x32xf32>
    %82 = tpu.matmul %79, %81, %cst_30 {dimension_numbers = #tpu.dot_dimension_numbers<[1], [0], [0], [1], [0, 0, 1, 1], [], []>} : vector<16x32xbf16>, vector<32x32xbf16>, vector<16x32xf32> -> vector<16x32xf32>
    %c0_31 = arith.constant 0 : index
    %c0_32 = arith.constant 0 : index
    %c0_33 = arith.constant 0 : index
    %83 = vector.load %arg8[%c0_31, %c0_32, %c0_33] : memref<1x1x32xf32, #tpu.memory_space<vmem>>, vector<1x1x32xf32>
    %84 = vector.shape_cast %83 : vector<1x1x32xf32> to vector<1x32xf32>
    %85 = vector.broadcast %84 : vector<1x32xf32> to vector<16x32xf32>
    %86 = arith.addf %82, %85 : vector<16x32xf32>
    %87 = arith.addf %9, %86 : vector<16x32xf32>
    %88 = vector.extract_strided_slice %5 {offsets = [0, 0], sizes = [1, 32], strides = [1, 1]} : vector<3x32xf32> to vector<1x32xf32>
    %89 = vector.extract_strided_slice %7 {offsets = [0, 0], sizes = [1, 32], strides = [1, 1]} : vector<3x32xf32> to vector<1x32xf32>
    %cst_34 = arith.constant dense<0.000000e+00> : vector<16xf32>
    %90 = vector.multi_reduction <add>, %87, %cst_34 [1] : vector<16x32xf32> to vector<16xf32>
    %91 = vector.shape_cast %90 : vector<16xf32> to vector<16x1xf32>
    %cst_35 = arith.constant 3.200000e+01 : f32
    %92 = vector.broadcast %cst_35 : f32 to vector<16x1xf32>
    %93 = arith.divf %91, %92 : vector<16x1xf32>
    %94 = vector.broadcast %93 : vector<16x1xf32> to vector<16x32xf32>
    %95 = arith.subf %87, %94 : vector<16x32xf32>
    %96 = arith.mulf %95, %95 : vector<16x32xf32>
    %cst_36 = arith.constant dense<0.000000e+00> : vector<16xf32>
    %97 = vector.multi_reduction <add>, %96, %cst_36 [1] : vector<16x32xf32> to vector<16xf32>
    %98 = vector.shape_cast %97 : vector<16xf32> to vector<16x1xf32>
    %cst_37 = arith.constant 3.200000e+01 : f32
    %99 = vector.broadcast %cst_37 : f32 to vector<16x1xf32>
    %100 = arith.divf %98, %99 : vector<16x1xf32>
    %101 = vector.broadcast %93 : vector<16x1xf32> to vector<16x32xf32>
    %102 = arith.subf %87, %101 : vector<16x32xf32>
    %cst_38 = arith.constant 9.99999974E-6 : f32
    %103 = vector.broadcast %cst_38 : f32 to vector<16x1xf32>
    %104 = arith.addf %100, %103 : vector<16x1xf32>
    %105 = math.rsqrt %104 : vector<16x1xf32>
    %106 = vector.broadcast %105 : vector<16x1xf32> to vector<16x32xf32>
    %107 = arith.mulf %102, %106 : vector<16x32xf32>
    %108 = vector.broadcast %88 : vector<1x32xf32> to vector<16x32xf32>
    %109 = arith.mulf %107, %108 : vector<16x32xf32>
    %110 = vector.broadcast %89 : vector<1x32xf32> to vector<16x32xf32>
    %111 = arith.addf %109, %110 : vector<16x32xf32>
    %c0_39 = arith.constant 0 : index
    %c0_40 = arith.constant 0 : index
    %c0_41 = arith.constant 0 : index
    %c0_42 = arith.constant 0 : index
    %112 = vector.load %arg9[%c0_39, %c0_40, %c0_41, %c0_42] : memref<1x3x32x32xbf16, #tpu.memory_space<vmem>>, vector<1x3x32x32xbf16>
    %113 = vector.shape_cast %112 : vector<1x3x32x32xbf16> to vector<3x32x32xbf16>
    %c0_43 = arith.constant 0 : index
    %c0_44 = arith.constant 0 : index
    %c0_45 = arith.constant 0 : index
    %114 = vector.load %arg10[%c0_43, %c0_44, %c0_45] : memref<1x3x32xf32, #tpu.memory_space<vmem>>, vector<1x3x32xf32>
    %115 = vector.shape_cast %114 : vector<1x3x32xf32> to vector<3x32xf32>
    %116 = arith.truncf %111 : vector<16x32xf32> to vector<16x32xbf16>
    %117 = arith.truncf %11 : vector<32x32xf32> to vector<32x32xbf16>
    %118 = vector.extract_strided_slice %113 {offsets = [0, 0, 0], sizes = [1, 32, 32], strides = [1, 1, 1]} : vector<3x32x32xbf16> to vector<1x32x32xbf16>
    %119 = vector.shape_cast %118 : vector<1x32x32xbf16> to vector<32x32xbf16>
    %cst_46 = arith.constant dense<0.000000e+00> : vector<16x32xf32>
    %120 = tpu.matmul %116, %119, %cst_46 {dimension_numbers = #tpu.dot_dimension_numbers<[1], [0], [0], [1], [0, 0, 1, 1], [], []>} : vector<16x32xbf16>, vector<32x32xbf16>, vector<16x32xf32> -> vector<16x32xf32>
    %121 = vector.extract_strided_slice %115 {offsets = [0, 0], sizes = [1, 32], strides = [1, 1]} : vector<3x32xf32> to vector<1x32xf32>
    %122 = vector.broadcast %121 : vector<1x32xf32> to vector<16x32xf32>
    %123 = arith.addf %120, %122 : vector<16x32xf32>
    %124 = arith.truncf %123 : vector<16x32xf32> to vector<16x32xbf16>
    %125 = vector.extract_strided_slice %113 {offsets = [1, 0, 0], sizes = [1, 32, 32], strides = [1, 1, 1]} : vector<3x32x32xbf16> to vector<1x32x32xbf16>
    %126 = vector.shape_cast %125 : vector<1x32x32xbf16> to vector<32x32xbf16>
    %cst_47 = arith.constant dense<0.000000e+00> : vector<32x32xf32>
    %127 = tpu.matmul %117, %126, %cst_47 {dimension_numbers = #tpu.dot_dimension_numbers<[1], [0], [0], [1], [0, 0, 1, 1], [], []>} : vector<32x32xbf16>, vector<32x32xbf16>, vector<32x32xf32> -> vector<32x32xf32>
    %128 = vector.extract_strided_slice %115 {offsets = [1, 0], sizes = [1, 32], strides = [1, 1]} : vector<3x32xf32> to vector<1x32xf32>
    %129 = vector.broadcast %128 : vector<1x32xf32> to vector<32x32xf32>
    %130 = arith.addf %127, %129 : vector<32x32xf32>
    %131 = arith.truncf %130 : vector<32x32xf32> to vector<32x32xbf16>
    %132 = vector.extract_strided_slice %113 {offsets = [2, 0, 0], sizes = [1, 32, 32], strides = [1, 1, 1]} : vector<3x32x32xbf16> to vector<1x32x32xbf16>
    %133 = vector.shape_cast %132 : vector<1x32x32xbf16> to vector<32x32xbf16>
    %cst_48 = arith.constant dense<0.000000e+00> : vector<32x32xf32>
    %134 = tpu.matmul %117, %133, %cst_48 {dimension_numbers = #tpu.dot_dimension_numbers<[1], [0], [0], [1], [0, 0, 1, 1], [], []>} : vector<32x32xbf16>, vector<32x32xbf16>, vector<32x32xf32> -> vector<32x32xf32>
    %135 = vector.extract_strided_slice %115 {offsets = [2, 0], sizes = [1, 32], strides = [1, 1]} : vector<3x32xf32> to vector<1x32xf32>
    %136 = vector.broadcast %135 : vector<1x32xf32> to vector<32x32xf32>
    %137 = arith.addf %134, %136 : vector<32x32xf32>
    %138 = arith.truncf %137 : vector<32x32xf32> to vector<32x32xbf16>
    %139 = vector.shape_cast %124 : vector<16x32xbf16> to vector<2x8x32xbf16>
    %140 = vector.extract_strided_slice %139 {offsets = [0, 0, 0], sizes = [2, 8, 8], strides = [1, 1, 1]} : vector<2x8x32xbf16> to vector<2x8x8xbf16>
    %141 = vector.extract_strided_slice %139 {offsets = [0, 0, 8], sizes = [2, 8, 8], strides = [1, 1, 1]} : vector<2x8x32xbf16> to vector<2x8x8xbf16>
    %142 = vector.extract_strided_slice %139 {offsets = [0, 0, 16], sizes = [2, 8, 8], strides = [1, 1, 1]} : vector<2x8x32xbf16> to vector<2x8x8xbf16>
    %143 = vector.extract_strided_slice %139 {offsets = [0, 0, 24], sizes = [2, 8, 8], strides = [1, 1, 1]} : vector<2x8x32xbf16> to vector<2x8x8xbf16>
    %144 = tpu.concatenate %140, %141, %142, %143 in 0 : vector<2x8x8xbf16>, vector<2x8x8xbf16>, vector<2x8x8xbf16>, vector<2x8x8xbf16> -> vector<8x8x8xbf16>
    %145 = vector.shape_cast %131 : vector<32x32xbf16> to vector<2x16x32xbf16>
    %146 = vector.extract_strided_slice %145 {offsets = [0, 0, 0], sizes = [2, 16, 8], strides = [1, 1, 1]} : vector<2x16x32xbf16> to vector<2x16x8xbf16>
    %147 = vector.extract_strided_slice %145 {offsets = [0, 0, 8], sizes = [2, 16, 8], strides = [1, 1, 1]} : vector<2x16x32xbf16> to vector<2x16x8xbf16>
    %148 = vector.extract_strided_slice %145 {offsets = [0, 0, 16], sizes = [2, 16, 8], strides = [1, 1, 1]} : vector<2x16x32xbf16> to vector<2x16x8xbf16>
    %149 = vector.extract_strided_slice %145 {offsets = [0, 0, 24], sizes = [2, 16, 8], strides = [1, 1, 1]} : vector<2x16x32xbf16> to vector<2x16x8xbf16>
    %150 = tpu.concatenate %146, %147, %148, %149 in 0 : vector<2x16x8xbf16>, vector<2x16x8xbf16>, vector<2x16x8xbf16>, vector<2x16x8xbf16> -> vector<8x16x8xbf16>
    %151 = vector.shape_cast %138 : vector<32x32xbf16> to vector<2x16x32xbf16>
    %152 = vector.extract_strided_slice %151 {offsets = [0, 0, 0], sizes = [2, 16, 8], strides = [1, 1, 1]} : vector<2x16x32xbf16> to vector<2x16x8xbf16>
    %153 = vector.extract_strided_slice %151 {offsets = [0, 0, 8], sizes = [2, 16, 8], strides = [1, 1, 1]} : vector<2x16x32xbf16> to vector<2x16x8xbf16>
    %154 = vector.extract_strided_slice %151 {offsets = [0, 0, 16], sizes = [2, 16, 8], strides = [1, 1, 1]} : vector<2x16x32xbf16> to vector<2x16x8xbf16>
    %155 = vector.extract_strided_slice %151 {offsets = [0, 0, 24], sizes = [2, 16, 8], strides = [1, 1, 1]} : vector<2x16x32xbf16> to vector<2x16x8xbf16>
    %156 = tpu.concatenate %152, %153, %154, %155 in 0 : vector<2x16x8xbf16>, vector<2x16x8xbf16>, vector<2x16x8xbf16>, vector<2x16x8xbf16> -> vector<8x16x8xbf16>
    "tpu.trace_start"() <{level = 10 : i32, message = "bqd,bkd->bqk"}> : () -> ()
    %cst_49 = arith.constant dense<0.000000e+00> : vector<8x8x16xf32>
    %157 = tpu.matmul %144, %150, %cst_49 {dimension_numbers = #tpu.dot_dimension_numbers<[2], [2], [1], [1], [0, 0, 0, 1, 1, 1], [0], [0]>} : vector<8x8x8xbf16>, vector<8x16x8xbf16>, vector<8x8x16xf32> -> vector<8x8x16xf32>
    "tpu.trace_stop"() : () -> ()
    %cst_50 = arith.constant dense<0xFF800000> : vector<8x8xf32>
    %158 = vector.multi_reduction <maximumf>, %157, %cst_50 [2] : vector<8x8x16xf32> to vector<8x8xf32>
    %159 = vector.shape_cast %158 : vector<8x8xf32> to vector<8x8x1xf32>
    %160 = vector.broadcast %159 : vector<8x8x1xf32> to vector<8x8x16xf32>
    %161 = arith.subf %157, %160 : vector<8x8x16xf32>
    %162 = math.exp %161 : vector<8x8x16xf32>
    %cst_51 = arith.constant dense<0.000000e+00> : vector<8x8xf32>
    %163 = vector.multi_reduction <add>, %162, %cst_51 [2] : vector<8x8x16xf32> to vector<8x8xf32>
    %164 = vector.shape_cast %163 : vector<8x8xf32> to vector<8x8x1xf32>
    %165 = tpu.reciprocal %164 {approx = true} : vector<8x8x1xf32> -> vector<8x8x1xf32>
    %166 = vector.broadcast %165 : vector<8x8x1xf32> to vector<8x8x16xf32>
    %167 = arith.mulf %162, %166 : vector<8x8x16xf32>
    %168 = arith.truncf %167 : vector<8x8x16xf32> to vector<8x8x16xbf16>
    "tpu.trace_start"() <{level = 10 : i32, message = "bqk,bkd->bqd"}> : () -> ()
    %cst_52 = arith.constant dense<0.000000e+00> : vector<8x8x8xf32>
    %169 = tpu.matmul %168, %156, %cst_52 {dimension_numbers = #tpu.dot_dimension_numbers<[2], [1], [1], [2], [0, 0, 0, 1, 1, 2], [0], [0]>} : vector<8x8x16xbf16>, vector<8x16x8xbf16>, vector<8x8x8xf32> -> vector<8x8x8xf32>
    "tpu.trace_stop"() : () -> ()
    %170 = vector.extract_strided_slice %169 {offsets = [0, 0, 0], sizes = [2, 8, 8], strides = [1, 1, 1]} : vector<8x8x8xf32> to vector<2x8x8xf32>
    %171 = vector.extract_strided_slice %169 {offsets = [2, 0, 0], sizes = [2, 8, 8], strides = [1, 1, 1]} : vector<8x8x8xf32> to vector<2x8x8xf32>
    %172 = vector.extract_strided_slice %169 {offsets = [4, 0, 0], sizes = [2, 8, 8], strides = [1, 1, 1]} : vector<8x8x8xf32> to vector<2x8x8xf32>
    %173 = vector.extract_strided_slice %169 {offsets = [6, 0, 0], sizes = [2, 8, 8], strides = [1, 1, 1]} : vector<8x8x8xf32> to vector<2x8x8xf32>
    %174 = tpu.concatenate %170, %171, %172, %173 in 2 : vector<2x8x8xf32>, vector<2x8x8xf32>, vector<2x8x8xf32>, vector<2x8x8xf32> -> vector<2x8x32xf32>
    %175 = vector.shape_cast %174 : vector<2x8x32xf32> to vector<16x32xf32>
    %176 = arith.truncf %175 : vector<16x32xf32> to vector<16x32xbf16>
    %c0_53 = arith.constant 0 : index
    %c0_54 = arith.constant 0 : index
    %c0_55 = arith.constant 0 : index
    %177 = vector.load %arg11[%c0_53, %c0_54, %c0_55] : memref<1x32x32xbf16, #tpu.memory_space<vmem>>, vector<1x32x32xbf16>
    %178 = vector.shape_cast %177 : vector<1x32x32xbf16> to vector<32x32xbf16>
    %cst_56 = arith.constant dense<0.000000e+00> : vector<16x32xf32>
    %179 = tpu.matmul %176, %178, %cst_56 {dimension_numbers = #tpu.dot_dimension_numbers<[1], [0], [0], [1], [0, 0, 1, 1], [], []>} : vector<16x32xbf16>, vector<32x32xbf16>, vector<16x32xf32> -> vector<16x32xf32>
    %c0_57 = arith.constant 0 : index
    %c0_58 = arith.constant 0 : index
    %c0_59 = arith.constant 0 : index
    %180 = vector.load %arg12[%c0_57, %c0_58, %c0_59] : memref<1x1x32xf32, #tpu.memory_space<vmem>>, vector<1x1x32xf32>
    %181 = vector.shape_cast %180 : vector<1x1x32xf32> to vector<1x32xf32>
    %182 = vector.broadcast %181 : vector<1x32xf32> to vector<16x32xf32>
    %183 = arith.addf %179, %182 : vector<16x32xf32>
    %184 = arith.addf %111, %183 : vector<16x32xf32>
    %185 = vector.extract_strided_slice %5 {offsets = [1, 0], sizes = [1, 32], strides = [1, 1]} : vector<3x32xf32> to vector<1x32xf32>
    %186 = vector.extract_strided_slice %7 {offsets = [1, 0], sizes = [1, 32], strides = [1, 1]} : vector<3x32xf32> to vector<1x32xf32>
    %cst_60 = arith.constant dense<0.000000e+00> : vector<16xf32>
    %187 = vector.multi_reduction <add>, %184, %cst_60 [1] : vector<16x32xf32> to vector<16xf32>
    %188 = vector.shape_cast %187 : vector<16xf32> to vector<16x1xf32>
    %cst_61 = arith.constant 3.200000e+01 : f32
    %189 = vector.broadcast %cst_61 : f32 to vector<16x1xf32>
    %190 = arith.divf %188, %189 : vector<16x1xf32>
    %191 = vector.broadcast %190 : vector<16x1xf32> to vector<16x32xf32>
    %192 = arith.subf %184, %191 : vector<16x32xf32>
    %193 = arith.mulf %192, %192 : vector<16x32xf32>
    %cst_62 = arith.constant dense<0.000000e+00> : vector<16xf32>
    %194 = vector.multi_reduction <add>, %193, %cst_62 [1] : vector<16x32xf32> to vector<16xf32>
    %195 = vector.shape_cast %194 : vector<16xf32> to vector<16x1xf32>
    %cst_63 = arith.constant 3.200000e+01 : f32
    %196 = vector.broadcast %cst_63 : f32 to vector<16x1xf32>
    %197 = arith.divf %195, %196 : vector<16x1xf32>
    %198 = vector.broadcast %190 : vector<16x1xf32> to vector<16x32xf32>
    %199 = arith.subf %184, %198 : vector<16x32xf32>
    %cst_64 = arith.constant 9.99999974E-6 : f32
    %200 = vector.broadcast %cst_64 : f32 to vector<16x1xf32>
    %201 = arith.addf %197, %200 : vector<16x1xf32>
    %202 = math.rsqrt %201 : vector<16x1xf32>
    %203 = vector.broadcast %202 : vector<16x1xf32> to vector<16x32xf32>
    %204 = arith.mulf %199, %203 : vector<16x32xf32>
    %205 = vector.broadcast %185 : vector<1x32xf32> to vector<16x32xf32>
    %206 = arith.mulf %204, %205 : vector<16x32xf32>
    %207 = vector.broadcast %186 : vector<1x32xf32> to vector<16x32xf32>
    %208 = arith.addf %206, %207 : vector<16x32xf32>
    %209 = arith.truncf %208 : vector<16x32xf32> to vector<16x32xbf16>
    %c0_65 = arith.constant 0 : index
    %c0_66 = arith.constant 0 : index
    %c0_67 = arith.constant 0 : index
    %210 = vector.load %arg13[%c0_65, %c0_66, %c0_67] : memref<1x32x128xbf16, #tpu.memory_space<vmem>>, vector<1x32x128xbf16>
    %211 = vector.shape_cast %210 : vector<1x32x128xbf16> to vector<32x128xbf16>
    %cst_68 = arith.constant dense<0.000000e+00> : vector<16x128xf32>
    %212 = tpu.matmul %209, %211, %cst_68 {dimension_numbers = #tpu.dot_dimension_numbers<[1], [0], [0], [1], [0, 0, 1, 1], [], []>} : vector<16x32xbf16>, vector<32x128xbf16>, vector<16x128xf32> -> vector<16x128xf32>
    %c0_69 = arith.constant 0 : index
    %c0_70 = arith.constant 0 : index
    %c0_71 = arith.constant 0 : index
    %213 = vector.load %arg14[%c0_69, %c0_70, %c0_71] : memref<1x1x128xf32, #tpu.memory_space<vmem>>, vector<1x1x128xf32>
    %214 = vector.shape_cast %213 : vector<1x1x128xf32> to vector<1x128xf32>
    %215 = vector.broadcast %214 : vector<1x128xf32> to vector<16x128xf32>
    %216 = arith.addf %212, %215 : vector<16x128xf32>
    %cst_72 = arith.constant 0.000000e+00 : f32
    %217 = vector.broadcast %cst_72 : f32 to vector<16x128xf32>
    %218 = arith.maximumf %216, %217 : vector<16x128xf32>
    %219 = arith.truncf %218 : vector<16x128xf32> to vector<16x128xbf16>
    %c0_73 = arith.constant 0 : index
    %c0_74 = arith.constant 0 : index
    %c0_75 = arith.constant 0 : index
    %220 = vector.load %arg15[%c0_73, %c0_74, %c0_75] : memref<1x128x32xbf16, #tpu.memory_space<vmem>>, vector<1x128x32xbf16>
    %221 = vector.shape_cast %220 : vector<1x128x32xbf16> to vector<128x32xbf16>
    %cst_76 = arith.constant dense<0.000000e+00> : vector<16x32xf32>
    %222 = tpu.matmul %219, %221, %cst_76 {dimension_numbers = #tpu.dot_dimension_numbers<[1], [0], [0], [1], [0, 0, 1, 1], [], []>} : vector<16x128xbf16>, vector<128x32xbf16>, vector<16x32xf32> -> vector<16x32xf32>
    %c0_77 = arith.constant 0 : index
    %c0_78 = arith.constant 0 : index
    %c0_79 = arith.constant 0 : index
    %223 = vector.load %arg16[%c0_77, %c0_78, %c0_79] : memref<1x1x32xf32, #tpu.memory_space<vmem>>, vector<1x1x32xf32>
    %224 = vector.shape_cast %223 : vector<1x1x32xf32> to vector<1x32xf32>
    %225 = vector.broadcast %224 : vector<1x32xf32> to vector<16x32xf32>
    %226 = arith.addf %222, %225 : vector<16x32xf32>
    %227 = arith.addf %208, %226 : vector<16x32xf32>
    %228 = vector.extract_strided_slice %5 {offsets = [2, 0], sizes = [1, 32], strides = [1, 1]} : vector<3x32xf32> to vector<1x32xf32>
    %229 = vector.extract_strided_slice %7 {offsets = [2, 0], sizes = [1, 32], strides = [1, 1]} : vector<3x32xf32> to vector<1x32xf32>
    %cst_80 = arith.constant dense<0.000000e+00> : vector<16xf32>
    %230 = vector.multi_reduction <add>, %227, %cst_80 [1] : vector<16x32xf32> to vector<16xf32>
    %231 = vector.shape_cast %230 : vector<16xf32> to vector<16x1xf32>
    %cst_81 = arith.constant 3.200000e+01 : f32
    %232 = vector.broadcast %cst_81 : f32 to vector<16x1xf32>
    %233 = arith.divf %231, %232 : vector<16x1xf32>
    %234 = vector.broadcast %233 : vector<16x1xf32> to vector<16x32xf32>
    %235 = arith.subf %227, %234 : vector<16x32xf32>
    %236 = arith.mulf %235, %235 : vector<16x32xf32>
    %cst_82 = arith.constant dense<0.000000e+00> : vector<16xf32>
    %237 = vector.multi_reduction <add>, %236, %cst_82 [1] : vector<16x32xf32> to vector<16xf32>
    %238 = vector.shape_cast %237 : vector<16xf32> to vector<16x1xf32>
    %cst_83 = arith.constant 3.200000e+01 : f32
    %239 = vector.broadcast %cst_83 : f32 to vector<16x1xf32>
    %240 = arith.divf %238, %239 : vector<16x1xf32>
    %241 = vector.broadcast %233 : vector<16x1xf32> to vector<16x32xf32>
    %242 = arith.subf %227, %241 : vector<16x32xf32>
    %cst_84 = arith.constant 9.99999974E-6 : f32
    %243 = vector.broadcast %cst_84 : f32 to vector<16x1xf32>
    %244 = arith.addf %240, %243 : vector<16x1xf32>
    %245 = math.rsqrt %244 : vector<16x1xf32>
    %246 = vector.broadcast %245 : vector<16x1xf32> to vector<16x32xf32>
    %247 = arith.mulf %242, %246 : vector<16x32xf32>
    %248 = vector.broadcast %228 : vector<1x32xf32> to vector<16x32xf32>
    %249 = arith.mulf %247, %248 : vector<16x32xf32>
    %250 = vector.broadcast %229 : vector<1x32xf32> to vector<16x32xf32>
    %251 = arith.addf %249, %250 : vector<16x32xf32>
    %252 = vector.shape_cast %251 : vector<16x32xf32> to vector<2x8x32xf32>
    %c0_85 = arith.constant 0 : index
    %c0_86 = arith.constant 0 : index
    %c0_87 = arith.constant 0 : index
    %253 = vector.load %arg19[%c0_85, %c0_86, %c0_87] : memref<2x8x32xf32, #tpu.memory_space<vmem>>, vector<2x8x32xf32>
    tpu.vector_store %arg19[%c0_85, %c0_86, %c0_87], %252 {strides = array<i32>} : memref<2x8x32xf32, #tpu.memory_space<vmem>>, vector<2x8x32xf32>,
    return
  }
  func.func @transform_0(%arg0: i32, %arg1: i32) -> (i32, i32, i32) {
    %c0_i32 = arith.constant 0 : i32
    %c0_i32_0 = arith.constant 0 : i32
    %c0_i32_1 = arith.constant 0 : i32
    return %arg0, %c0_i32, %c0_i32_0 : i32, i32, i32
  }
  func.func @transform_1(%arg0: i32, %arg1: i32) -> (i32, i32, i32) {
    %c0_i32 = arith.constant 0 : i32
    %c0_i32_0 = arith.constant 0 : i32
    %c0_i32_1 = arith.constant 0 : i32
    return %arg0, %c0_i32, %c0_i32_0 : i32, i32, i32
  }
  func.func @transform_2(%arg0: i32, %arg1: i32) -> (i32, i32) {
    %c0_i32 = arith.constant 0 : i32
    %c0_i32_0 = arith.constant 0 : i32
    %c0_i32_1 = arith.constant 0 : i32
    return %c0_i32, %c0_i32_0 : i32, i32
  }
  func.func @transform_3(%arg0: i32, %arg1: i32) -> (i32, i32, i32, i32) {
    %c0_i32 = arith.constant 0 : i32
    %c0_i32_0 = arith.constant 0 : i32
    %c0_i32_1 = arith.constant 0 : i32
    %c0_i32_2 = arith.constant 0 : i32
    return %arg1, %c0_i32, %c0_i32_0, %c0_i32_1 : i32, i32, i32, i32
  }
  func.func @transform_4(%arg0: i32, %arg1: i32) -> (i32, i32, i32) {
    %c0_i32 = arith.constant 0 : i32
    %c0_i32_0 = arith.constant 0 : i32
    %c0_i32_1 = arith.constant 0 : i32
    return %arg1, %c0_i32, %c0_i32_0 : i32, i32, i32
  }
  func.func @transform_5(%arg0: i32, %arg1: i32) -> (i32, i32, i32) {
    %c0_i32 = arith.constant 0 : i32
    %c0_i32_0 = arith.constant 0 : i32
    %c0_i32_1 = arith.constant 0 : i32
    return %arg1, %c0_i32, %c0_i32_0 : i32, i32, i32
  }
  func.func @transform_6(%arg0: i32, %arg1: i32) -> (i32, i32, i32) {
    %c0_i32 = arith.constant 0 : i32
    %c0_i32_0 = arith.constant 0 : i32
    %c0_i32_1 = arith.constant 0 : i32
    return %arg1, %c0_i32, %c0_i32_0 : i32, i32, i32
  }
  func.func @transform_7(%arg0: i32, %arg1: i32) -> (i32, i32, i32, i32) {
    %c0_i32 = arith.constant 0 : i32
    %c0_i32_0 = arith.constant 0 : i32
    %c0_i32_1 = arith.constant 0 : i32
    %c0_i32_2 = arith.constant 0 : i32
    return %arg1, %c0_i32, %c0_i32_0, %c0_i32_1 : i32, i32, i32, i32
  }
  func.func @transform_8(%arg0: i32, %arg1: i32) -> (i32, i32, i32) {
    %c0_i32 = arith.constant 0 : i32
    %c0_i32_0 = arith.constant 0 : i32
    %c0_i32_1 = arith.constant 0 : i32
    return %arg1, %c0_i32, %c0_i32_0 : i32, i32, i32
  }
  func.func @transform_9(%arg0: i32, %arg1: i32) -> (i32, i32, i32) {
    %c0_i32 = arith.constant 0 : i32
    %c0_i32_0 = arith.constant 0 : i32
    %c0_i32_1 = arith.constant 0 : i32
    return %arg1, %c0_i32, %c0_i32_0 : i32, i32, i32
  }
  func.func @transform_10(%arg0: i32, %arg1: i32) -> (i32, i32, i32) {
    %c0_i32 = arith.constant 0 : i32
    %c0_i32_0 = arith.constant 0 : i32
    %c0_i32_1 = arith.constant 0 : i32
    return %arg1, %c0_i32, %c0_i32_0 : i32, i32, i32
  }
  func.func @transform_11(%arg0: i32, %arg1: i32) -> (i32, i32, i32) {
    %c0_i32 = arith.constant 0 : i32
    %c0_i32_0 = arith.constant 0 : i32
    %c0_i32_1 = arith.constant 0 : i32
    return %arg1, %c0_i32, %c0_i32_0 : i32, i32, i32
  }
  func.func @transform_12(%arg0: i32, %arg1: i32) -> (i32, i32, i32) {
    %c0_i32 = arith.constant 0 : i32
    %c0_i32_0 = arith.constant 0 : i32
    %c0_i32_1 = arith.constant 0 : i32
    return %arg1, %c0_i32, %c0_i32_0 : i32, i32, i32
  }
  func.func @transform_13(%arg0: i32, %arg1: i32) -> (i32, i32, i32) {
    %c0_i32 = arith.constant 0 : i32
    %c0_i32_0 = arith.constant 0 : i32
    %c0_i32_1 = arith.constant 0 : i32
    return %arg1, %c0_i32, %c0_i32_0 : i32, i32, i32
  }
  func.func @transform_14(%arg0: i32, %arg1: i32) -> (i32, i32, i32) {
    %c0_i32 = arith.constant 0 : i32
    %c0_i32_0 = arith.constant 0 : i32
    %c0_i32_1 = arith.constant 0 : i32
    return %arg1, %c0_i32, %c0_i32_0 : i32, i32, i32
  }
  func.func @transform_15(%arg0: i32, %arg1: i32) -> (i32, i32, i32) {
    %c0_i32 = arith.constant 0 : i32
    %c0_i32_0 = arith.constant 0 : i32
    %c0_i32_1 = arith.constant 0 : i32
    return %arg1, %c0_i32, %c0_i32_0 : i32, i32, i32
  }
  func.func @transform_16(%arg0: i32, %arg1: i32) -> (i32, i32, i32) {
    %c0_i32 = arith.constant 0 : i32
    %c0_i32_0 = arith.constant 0 : i32
    %c0_i32_1 = arith.constant 0 : i32
    return %arg1, %c0_i32, %c0_i32_0 : i32, i32, i32
  }
  func.func @transform_17(%arg0: i32, %arg1: i32) -> (i32, i32, i32) {
    %c0_i32 = arith.constant 0 : i32
    %c0_i32_0 = arith.constant 0 : i32
    %c0_i32_1 = arith.constant 0 : i32
    return %arg0, %c0_i32, %c0_i32_0 : i32, i32, i32
  }
}

</mosaic_0001>

<bundles_post_ra>
// kernel: tpu_custom_call.1
= control target key start
LH: loop header
LB: loop body
LE: loop exit
PB: predicated region body
PF: predicated region fallthrough
CT: control target
= control target key end

     0   :  { %s6818_s0 = inlined_call_operand.hbm [shape: f32[2,8,32], index: 0, kind: input, shape index: {}]   ;;  %s6819_s1 = inlined_call_operand.hbm [shape: f32[2,16,32], index: 1, kind: input, shape index: {}]   ;;  %s6820_s2 = inlined_call_operand.hbm [shape: f32[8,8], index: 2, kind: input, shape index: {}]   ;;  %s6821_s3 = inlined_call_operand.hbm [shape: bf16[2,3,32,32], index: 3, kind: input, shape index: {}]   ;;  %s6822_s4 = inlined_call_operand.hbm [shape: f32[2,3,32], index: 4, kind: input, shape index: {}]   ;;  %s6823_s5 = inlined_call_operand.hbm [shape: bf16[2,32,32], index: 5, kind: input, shape index: {}]   ;;  %s6824_s6 = inlined_call_operand.hbm [shape: f32[2,1,32], index: 6, kind: input, shape index: {}]   ;;  %s6825_s7 = inlined_call_operand.hbm [shape: bf16[2,3,32,32], index: 7, kind: input, shape index: {}]   ;;  %s6826_s8 = inlined_call_operand.hbm [shape: f32[2,3,32], index: 8, kind: input, shape index: {}]   ;;  %s6827_s9 = inlined_call_operand.hbm [shape: bf16[2,32,32], index: 9, kind: input, shape index: {}]   ;;  %s6828_s10 = inlined_call_operand.hbm [shape: f32[2,1,32], index: 10, kind: input, shape index: {}]   ;;  %s6829_s11 = inlined_call_operand.hbm [shape: bf16[2,32,128], index: 11, kind: input, shape index: {}]   ;;  %s6830_s12 = inlined_call_operand.hbm [shape: f32[2,1,128], index: 12, kind: input, shape index: {}]   ;;  %s6831_s13 = inlined_call_operand.hbm [shape: bf16[2,128,32], index: 13, kind: input, shape index: {}]   ;;  %s6832_s14 = inlined_call_operand.hbm [shape: f32[2,1,32], index: 14, kind: input, shape index: {}]   ;;  %s6833_s15 = inlined_call_operand.hbm [shape: f32[2,3,32], index: 15, kind: input, shape index: {}]   ;;  %s6834_s16 = inlined_call_operand.hbm [shape: f32[2,3,32], index: 16, kind: input, shape index: {}]   ;;  %s6835_s17 = inlined_call_operand.hbm [shape: f32[2,8,32], index: 17, kind: output, shape index: {}]  }
   0x1   :  { %6867 = sst [smem:[#allocation47_spill]] %s6818_s0 }
   0x2   :  { %6868 = sst [smem:[#allocation48_spill]] %s6819_s1 }
   0x3   :  { %6869 = sst [smem:[#allocation49_spill]] %s6820_s2 }
   0x4   :  { %6870 = sst [smem:[#allocation50_spill]] %s6821_s3 }
   0x5   :  { %6871 = sst [smem:[#allocation51_spill]] %s6822_s4 }
   0x6   :  { %6872 = sst [smem:[#allocation52_spill]] %s6823_s5 }
   0x7   :  { %6873 = sst [smem:[#allocation53_spill]] %s6824_s6 }
   0x8   :  { %6874 = sst [smem:[#allocation54_spill]] %s6825_s7 }
   0x9   :  { %6875 = sst [smem:[#allocation55_spill]] %s6826_s8 }
   0xa   :  { %6876 = sst [smem:[#allocation56_spill]] %s6827_s9 }
   0xb   :  { %6877 = sst [smem:[#allocation57_spill]] %s6828_s10 }
   0xc   :  { %6878 = sst [smem:[#allocation58_spill]] %s6830_s12 }
   0xd   :  { %6879 = sst [smem:[#allocation59_spill]] %s6832_s14 }
   0xe   :  { %6880 = sst [smem:[#allocation60_spill]] %s6834_s16 }
   0xf   :  { %6881 = sst [smem:[#allocation61_spill]] %s6835_s17 }
  0x10   :  { %22 = vsyncpa [#allocation3], 0 }
  0x11   :  { %23 = vsyncpa [#allocation6], 0 }
  0x12   :  { %24 = vsyncpa [#allocation9], 0 }
  0x13   :  { %26 = vsyncpa [#allocation9 + $0x1], 0 }
  0x14   :  { %27 = vsyncpa [#allocation12], 0 }
  0x15   :  { %29 = vsyncpa [#allocation12 + $0x1], 0 }
  0x16   :  { %30 = vsyncpa [#allocation15], 0 }
  0x17   :  { %32 = vsyncpa [#allocation15 + $0x1], 0 }
  0x18   :  { %33 = vsyncpa [#allocation18], 0 }
  0x19   :  { %35 = vsyncpa [#allocation18 + $0x1], 0 }
  0x1a   :  { %36 = vsyncpa [#allocation21], 0 }
  0x1b   :  { %38 = vsyncpa [#allocation21 + $0x1], 0 }
  0x1c   :  { %39 = vsyncpa [#allocation24], 0 }
  0x1d   :  { %41 = vsyncpa [#allocation24 + $0x1], 0 }
  0x1e   :  { %42 = vsyncpa [#allocation27], 0 }
  0x1f   :  { %44 = vsyncpa [#allocation27 + $0x1], 0 }
  0x20   :  { %45 = vsyncpa [#allocation4], 0  ;;  %s5650_s24 = smov 0   ;;  %s5652_s25 = smov 0  }
  0x21   :  { %s5654_s26 = smov 0   ;;  %s5656_s27 = smov 0  }
  0x22   :  { %s5658_s28 = smov 0   ;;  %s5660_s29 = smov 0  }
  0x23 LB: > { %6882 = sst [smem:[#allocation40_spill]] %s5511_s25  ;;  %s5679_s0 = sadd.s32 4294967295, %s5527_s29   ;;  %s5527_s29 = sphi %s5660_s29, %s51_s29   ;;  %s5523_s28 = sphi %s5658_s28, %s6939_s28   ;;  %s5519_s27 = sphi %s5656_s27, %s6938_s27   ;;  %s5515_s26 = sphi %s5654_s26, %s6937_s26   ;;  %s5511_s25 = sphi %s5652_s25, %s6936_s25   ;;  %s5507_s24 = sphi %s5650_s24, %s6933_s24  }
  0x24   : > { %6883 = sst [smem:[#allocation41_spill]] %s5519_s27  ;;  %s60_s30 = sadd.s32 1, %s5523_s28 }
  0x25   : > { %6884 = sst [smem:[#allocation42_spill]] %s5679_s0  ;;  %p61_p0 = scmp.ge.s32.totalorder %s60_s30, 2 }
  0x26   : > { %s143_s18 = sadd.s32 1, %s5515_s26  ;;  %p150_p1 = scmp.ne.s32.totalorder %s5515_s26, %s5511_s25 }
  0x27   : > { %p151_p2 = scmp.eq.s32.totalorder %s5527_s29, 0  ;;  %s6941_s30 = smov (%p61_p0, %s60_s30), 0 }
  0x28   : > { %6885 = sst [smem:[#allocation43_spill]] %s6941_s30  ;;  %p156_p4 = scmp.ne.s32.totalorder %s5511_s25, %s5507_s24 }
  0x29   : > { %p5688_p3 = por %p151_p2, %p150_p1  ;;  %s140_s1 = ssub.s32 %s5523_s28, %s6941_s30 }
  0x2a   : > { %p6849_p5 = scmp.eq.s32.totalorder %s5679_s0, 0  ;;  %p141_p6 = scmp.eq.s32.totalorder %s140_s1, 0 }
  0x2b   : > { %s6886_s19 = scalar_select %p5688_p3, 1, 0 }
  0x2c   : > { %p4148_p7 = scmp.ge.s32.totalorder %s5527_s29, 1  ;;  %p5699_p8 = por %p6849_p5, %p156_p4 }
  0x2d   : > { %p531_p9 = scmp.lt.s32.totalorder %s5527_s29, 3  ;;  %s5529_s23 = smov [#allocation5]  }
  0x2e   : > { %s6887_s20 = scalar_select %p5699_p8, 1, 0 }
  0x2f   : > { %s5705_s21 = scalar_select %p141_p6, %s5515_s26, %s143_s18  }
  0x30   : > { %6888 = sst [smem:[#allocation44_spill]] %s6887_s20  ;;  %p5707_p10 = pnand %p4148_p7, %p531_p9 }
  0x31   : > { %6889 = sst [smem:[#allocation45_spill]] %s5705_s21  ;;  %s563_s24 = sshll.u32 %s5529_s23, 4  ;;  %s564_s24 = int_to_ptr.vmem [resolvable:$true] %s563_s24 }
  0x32   : > { %s6890_s22 = scalar_select %p5707_p10, 1, 0 }
  0x33   : > { %p4724_p11 = pneg %p5707_p10  ;;  %s5530_s30 = smov [#allocation2]  }
  0x34   : > { %6891 = sst [smem:[#allocation46_spill]] %s6890_s22  ;;  %s546_s17 = sshll.u32 %s5530_s30, 4  ;;  %s547_s17 = int_to_ptr.vmem [resolvable:$true] %s546_s17 }
  0x35   : > { %p5715_p12 = pnand %p4724_p11, %p6849_p5  ;;  %s6893_s27 = sld [smem:[#allocation48_spill]] }
  0x37   : > { %p5727_p0 = pneg %p5715_p12 }
  0x3b   : > { %s6894_s20 = smov %s6893_s27  ;;  %s4939_s25 = scalar_lea.hbm %s6893_s27, 512 }
  0x3c   : > { %p4940_p13 = scmp.ne.s32.totalorder %s6894_s20, %s4939_s25  ;;  %p4946_p4 = scmp.lt.u32.totalorder %s4939_s25, %s6894_s20 }
  0x3e   : > { %p4942_p1 = pnand %p5727_p0, %p4940_p13 }
  0x40   : > { %p4943_p2 = pneg %p4942_p1 }
  0x42   : > { %p4948_p6 = pnand %p4946_p4, %p4943_p2 }
  0x44   : > { %4951 = shalt.err (!%p4948_p6)
}
  0x45   : > { %s4952_s27 = scalar_lea.vmem %s564_s24, 512  ;;  %p4960_p5 = scmp.lt.s32.totalorder %s564_s24, %s564_s24 }
  0x46   : > { %p4953_p7 = scmp.ne.s32.totalorder %s564_s24, %s4952_s27  ;;  %p4961_p8 = scmp.lt.s32.totalorder %s4952_s27, %s4952_s27 }
  0x48   : > { %p4955_p9 = pnand %p4953_p7, %p5727_p0  ;;  %p4962_p10 = por %p4961_p8, %p4960_p5 }
  0x4a   : > { %p4956_p11 = pneg %p4955_p9 }
  0x4c   : > { %p4963_p3 = pnand %p4962_p10, %p4956_p11 }
  0x4e   : > { %4966 = shalt.err (!%p4963_p3)
}
  0x4f   : > { %s5531_s14 = smov 128   ;;  %s5532_s16 = smov 8  }
  0x50   : > { %4730 = dma.hbm_to_vmem [thread:$0]  (!%p5715_p12), %s6894_s20, 512, %s564_s24, [#allocation6], %s5531_s14, %s5531_s14, %s5532_s16  }
  0x51   : > { %s6896_s22 = sld [smem:[#allocation47_spill]] }
  0x57   : > { %s4967_s18 = scalar_lea.hbm %s6896_s22, 256 }
  0x58   : > { %p4968_p5 = scmp.ne.s32.totalorder %s6896_s22, %s4967_s18  ;;  %p4974_p10 = scmp.lt.u32.totalorder %s4967_s18, %s6896_s22 }
  0x5a   : > { %p4970_p3 = pnand %p4968_p5, %p5727_p0 }
  0x5c   : > { %p4971_p8 = pneg %p4970_p3 }
  0x5e   : > { %p4976_p13 = pnand %p4974_p10, %p4971_p8 }
  0x60   : > { %4979 = shalt.err (!%p4976_p13)
}
  0x61   : > { %s4980_s0 = scalar_lea.vmem %s547_s17, 256  ;;  %p4988_p6 = scmp.lt.s32.totalorder %s547_s17, %s547_s17 }
  0x62   : > { %p4981_p1 = scmp.ne.s32.totalorder %s547_s17, %s4980_s0  ;;  %p4989_p7 = scmp.lt.s32.totalorder %s4980_s0, %s4980_s0 }
  0x64   : > { %p4983_p2 = pnand %p4981_p1, %p5727_p0  ;;  %p4990_p9 = por %p4989_p7, %p4988_p6 }
  0x66   : > { %p4984_p4 = pneg %p4983_p2 }
  0x68   : > { %p4991_p11 = pnand %p4990_p9, %p4984_p4 }
  0x6a   : > { %4994 = shalt.err (!%p4991_p11)
}
  0x6b   : > { %4727 = dma.hbm_to_vmem [thread:$0]  (!%p5715_p12), %s6896_s22, 256, %s547_s17, [#allocation3], %s5531_s14, %s5531_s14, %s5532_s16  }
  0x6c   : > { %s5533_s8 = smov [#allocation7]   ;;  %s6897_s2 = sld [smem:[#allocation49_spill]] }
  0x6d   : > { %s577_s24 = sshll.u32 %s5533_s8, 4  ;;  %s578_s24 = int_to_ptr.vmem [resolvable:$true] %s577_s24 }
  0x72   : > { %s4995_s21 = scalar_lea.hbm %s6897_s2, 128 }
  0x73   : > { %p4996_p5 = scmp.ne.s32.totalorder %s6897_s2, %s4995_s21  ;;  %p5002_p10 = scmp.lt.u32.totalorder %s4995_s21, %s6897_s2 }
  0x75   : > { %p4998_p3 = pnand %p4996_p5, %p5727_p0 }
  0x77   : > { %p4999_p8 = pneg %p4998_p3 }
  0x79   : > { %p5004_p13 = pnand %p5002_p10, %p4999_p8 }
  0x7b   : > { %5007 = shalt.err (!%p5004_p13)
}
  0x7c   : > { %s5008_s17 = scalar_lea.vmem %s578_s24, 128  ;;  %p5016_p6 = scmp.lt.s32.totalorder %s578_s24, %s578_s24 }
  0x7d   : > { %p5009_p1 = scmp.ne.s32.totalorder %s578_s24, %s5008_s17  ;;  %p5017_p7 = scmp.lt.s32.totalorder %s5008_s17, %s5008_s17 }
  0x7f   : > { %p5011_p2 = pnand %p5009_p1, %p5727_p0  ;;  %p5018_p9 = por %p5017_p7, %p5016_p6 }
  0x81   : > { %p5012_p4 = pneg %p5011_p2 }
  0x83   : > { %p5019_p11 = pnand %p5018_p9, %p5012_p4 }
  0x85   : > { %5022 = shalt.err (!%p5019_p11)
}
  0x86   : > { %4733 = dma.hbm_to_vmem [thread:$0]  (!%p5715_p12), %s6897_s2, 128, %s578_s24, [#allocation6]  }
  0x87   : > { %p4152_p5 = scmp.ge.s32.totalorder %s5527_s29, 2 }
  0x88   : > { %s5781_s20 = sand.u32 (!%p4152_p5), 1, %s5527_s29   ;;  %s5784_s23 = sand.u32 (!%p4152_p5), 1, %s5515_s26  }
  0x89   : > { %584 = sbr.rel (%p4152_p5) target bundleno = 507 (0x1fb), region = 28  ;;  %s6898_s3 = sld [smem:[#allocation50_spill]] (!%p4152_p5) }
  0x8a   : > { %s6858_s1 = smul.u32 (!%p4152_p5), 48, %s5784_s23  ;;  %s6857_s21 = scalar_lea.sflag (!%p4152_p5), [#allocation9], %s5781_s20 }
  0x8b   : > { %s6859_s10 = smul.u32 (!%p4152_p5), 768, %s5523_s28  ;;  %p6899_p0 = scmp.ne.s32.totalorder (!%p4152_p5), %s6886_s19, 0 }
  0x8c   : > { %s592_s25 = scalar_lea.vmem (!%p4152_p5), [#allocation8], %s6858_s1 }
  0x8d   : > { %s599_s30 = sshll.u32 (!%p4152_p5), %s592_s25, 4  ;;  %s5797_s30 = int_to_ptr.vmem [resolvable:$true] %s599_s30 }
  0x8f   : > { %s5793_s24 = scalar_lea.hbm (!%p4152_p5), %s6898_s3, %s6859_s10  ;;  %s5027_s17 = scalar_lea.hbm (!%p4152_p5), %s6898_s3, 1536 }
  0x90   : > { %s5023_s18 = scalar_lea.hbm %s5793_s24, 768  ;;  %p5028_p10 = scmp.lt.u32.totalorder %s5793_s24, %s6898_s3 }
  0x91   : > { %p5024_p12 = scmp.ne.s32.totalorder %s5793_s24, %s5023_s18  ;;  %p5029_p13 = scmp.lt.u32.totalorder %s5027_s17, %s5023_s18 }
  0x92   : > { %p5031_p2 = scmp.lt.u32.totalorder %s5023_s18, %s5793_s24 }
  0x93   : > { %p5025_p3 = pnand %p5024_p12, %p6899_p0  ;;  %p5030_p1 = por %p5029_p13, %p5028_p10 }
  0x95   : > { %p5026_p8 = pneg %p5025_p3  ;;  %p5032_p4 = por %p5031_p2, %p5030_p1 }
  0x97   : > { %p5033_p6 = pnand %p5032_p4, %p5026_p8 }
  0x99   : > { %5036 = shalt.err (!%p5033_p6)
}
  0x9a   : > { %s5037_s12 = scalar_lea.vmem %s5797_s30, 768  ;;  %s5534_s8 = smov [#allocation8]  }
  0x9b   : > { %p5038_p7 = scmp.ne.s32.totalorder %s5797_s30, %s5037_s12  ;;  %s5041_s25 = sshll.u32 %s5534_s8, 4  ;;  %s5042_s25 = int_to_ptr.vmem [resolvable:$false] %s5041_s25 }
  0x9c   : > { %s5043_s27 = scalar_lea.vmem %s5042_s25, 1536  ;;  %p5044_p5 = scmp.lt.s32.totalorder %s5797_s30, %s5042_s25 }
  0x9d   : > { %p5039_p9 = pnand %p5038_p7, %p6899_p0  ;;  %p5045_p12 = scmp.lt.s32.totalorder %s5043_s27, %s5037_s12 }
  0x9f   : > { %p5040_p11 = pneg %p5039_p9  ;;  %p5046_p3 = por %p5045_p12, %p5044_p5 }
  0xa1   : > { %p5047_p10 = pnand %p5046_p3, %p5040_p11 }
  0xa3   : > { %5050 = shalt.err (!%p5047_p10)
}
  0xa4   : > { %s5535_s18 = smov 64   ;;  %s5536_s0 = smov 4  }
  0xa5   : > { %4686 = dma.hbm_to_vmem [thread:$0]  (%p6899_p0), %s5793_s24, 768, %s5797_s30, %s6857_s21, %s5535_s18, %s5535_s18, %s5536_s0  }
  0xa6   : > { %s5827_s17 = sshll.u32 %s5784_s23, 4  ;;  %s5830_s14 = sshll.u32 %s5523_s28, 8 }
  0xa7   : > { %s6900_s5 = sld [smem:[#allocation52_spill]]  ;;  %s631_s25 = scalar_lea.vmem [#allocation11], %s5827_s17 }
  0xa8   : > { %s638_s27 = sshll.u32 %s631_s25, 4  ;;  %s628_s24 = scalar_lea.sflag [#allocation12], %s5781_s20  ;;  %s5839_s27 = int_to_ptr.vmem [resolvable:$true] %s638_s27 }
  0xad   : > { %s5836_s8 = scalar_lea.hbm %s6900_s5, %s5830_s14  ;;  %s5055_s16 = scalar_lea.hbm %s6900_s5, 512 }
  0xae   : > { %s5051_s30 = scalar_lea.hbm %s5836_s8, 256  ;;  %p5056_p2 = scmp.lt.u32.totalorder %s5836_s8, %s6900_s5 }
  0xaf   : > { %p5052_p8 = scmp.ne.s32.totalorder %s5836_s8, %s5051_s30  ;;  %p5057_p4 = scmp.lt.u32.totalorder %s5055_s16, %s5051_s30 }
  0xb0   : > { %p5059_p7 = scmp.lt.u32.totalorder %s5051_s30, %s5836_s8 }
  0xb1   : > { %p5053_p13 = pnand %p5052_p8, %p6899_p0  ;;  %p5058_p6 = por %p5057_p4, %p5056_p2 }
  0xb3   : > { %p5054_p1 = pneg %p5053_p13  ;;  %p5060_p9 = por %p5059_p7, %p5058_p6 }
  0xb5   : > { %p5061_p11 = pnand %p5060_p9, %p5054_p1 }
  0xb7   : > { %5064 = shalt.err (!%p5061_p11)
}
  0xb8   : > { %s5065_s25 = scalar_lea.vmem %s5839_s27, 256  ;;  %s5537_s1 = smov [#allocation11]  }
  0xb9   : > { %p5066_p5 = scmp.ne.s32.totalorder %s5839_s27, %s5065_s25  ;;  %s5069_s21 = sshll.u32 %s5537_s1, 4  ;;  %s5070_s21 = int_to_ptr.vmem [resolvable:$false] %s5069_s21 }
  0xba   : > { %s5071_s10 = scalar_lea.vmem %s5070_s21, 512  ;;  %p5072_p10 = scmp.lt.s32.totalorder %s5839_s27, %s5070_s21 }
  0xbb   : > { %p5067_p12 = pnand %p5066_p5, %p6899_p0  ;;  %p5073_p8 = scmp.lt.s32.totalorder %s5071_s10, %s5065_s25 }
  0xbd   : > { %p5068_p3 = pneg %p5067_p12  ;;  %p5074_p13 = por %p5073_p8, %p5072_p10 }
  0xbf   : > { %p5075_p2 = pnand %p5074_p13, %p5068_p3 }
  0xc1   : > { %5078 = shalt.err (!%p5075_p2)
}
  0xc2   : > { %4688 = dma.hbm_to_vmem [thread:$0]  (%p6899_p0), %s5836_s8, 256, %s5839_s27, %s628_s24, %s5535_s18, %s5535_s18, %s5536_s0  }
  0xc3   : > { %s6901_s30 = smul.u32 768, %s5523_s28  ;;  %s6902_s7 = sld [smem:[#allocation54_spill]] }
  0xc4   : > { %s6903_s1 = smul.u32 48, %s5784_s23  ;;  %s6862_s2 = scalar_lea.sflag [#allocation15], %s5781_s20 }
  0xc6   : > { %s669_s21 = scalar_lea.vmem [#allocation14], %s6903_s1 }
  0xc7   : > { %s676_s10 = sshll.u32 %s669_s21, 4  ;;  %s5877_s10 = int_to_ptr.vmem [resolvable:$true] %s676_s10 }
  0xc9   : > { %s5873_s25 = scalar_lea.hbm %s6902_s7, %s6901_s30  ;;  %s5083_s30 = scalar_lea.hbm %s6902_s7, 1536 }
  0xca   : > { %s5079_s3 = scalar_lea.hbm %s5873_s25, 768  ;;  %p5084_p7 = scmp.lt.u32.totalorder %s5873_s25, %s6902_s7 }
  0xcb   : > { %p5080_p1 = scmp.ne.s32.totalorder %s5873_s25, %s5079_s3  ;;  %p5085_p9 = scmp.lt.u32.totalorder %s5083_s30, %s5079_s3 }
  0xcc   : > { %p5087_p5 = scmp.lt.u32.totalorder %s5079_s3, %s5873_s25 }
  0xcd   : > { %p5081_p4 = pnand %p5080_p1, %p6899_p0  ;;  %p5086_p11 = por %p5085_p9, %p5084_p7 }
  0xcf   : > { %p5082_p6 = pneg %p5081_p4  ;;  %p5088_p12 = por %p5087_p5, %p5086_p11 }
  0xd1   : > { %p5089_p3 = pnand %p5088_p12, %p5082_p6 }
  0xd3   : > { %5092 = shalt.err (!%p5089_p3)
}
  0xd4   : > { %s5093_s1 = scalar_lea.vmem %s5877_s10, 768  ;;  %s5538_s21 = smov [#allocation14]  }
  0xd5   : > { %p5094_p10 = scmp.ne.s32.totalorder %s5877_s10, %s5093_s1  ;;  %s5097_s8 = sshll.u32 %s5538_s21, 4  ;;  %s5098_s8 = int_to_ptr.vmem [resolvable:$false] %s5097_s8 }
  0xd6   : > { %s5099_s27 = scalar_lea.vmem %s5098_s8, 1536  ;;  %p5100_p2 = scmp.lt.s32.totalorder %s5877_s10, %s5098_s8 }
  0xd7   : > { %p5095_p8 = pnand %p5094_p10, %p6899_p0  ;;  %p5101_p1 = scmp.lt.s32.totalorder %s5099_s27, %s5093_s1 }
  0xd9   : > { %p5096_p13 = pneg %p5095_p8  ;;  %p5102_p4 = por %p5101_p1, %p5100_p2 }
  0xdb   : > { %p5103_p7 = pnand %p5102_p4, %p5096_p13 }
  0xdd   : > { %5106 = shalt.err (!%p5103_p7)
}
  0xde   : > { %4690 = dma.hbm_to_vmem [thread:$0]  (%p6899_p0), %s5873_s25, 768, %s5877_s10, %s6862_s2, %s5535_s18, %s5535_s18, %s5536_s0  }
  0xdf   : > { %s6904_s9 = sld [smem:[#allocation56_spill]]  ;;  %s708_s12 = scalar_lea.vmem [#allocation17], %s5827_s17 }
  0xe0   : > { %s715_s1 = sshll.u32 %s708_s12, 4  ;;  %s6860_s21 = scalar_lea.sflag [#allocation18], %s5781_s20  ;;  %s5913_s1 = int_to_ptr.vmem [resolvable:$true] %s715_s1 }
  0xe5   : > { %s5910_s16 = scalar_lea.hbm %s6904_s9, %s5830_s14  ;;  %s5111_s27 = scalar_lea.hbm %s6904_s9, 512 }
  0xe6   : > { %s5107_s8 = scalar_lea.hbm %s5910_s16, 256  ;;  %p5112_p5 = scmp.lt.u32.totalorder %s5910_s16, %s6904_s9 }
  0xe7   : > { %p5108_p6 = scmp.ne.s32.totalorder %s5910_s16, %s5107_s8  ;;  %p5113_p12 = scmp.lt.u32.totalorder %s5111_s27, %s5107_s8 }
  0xe8   : > { %p5115_p10 = scmp.lt.u32.totalorder %s5107_s8, %s5910_s16 }
  0xe9   : > { %p5109_p9 = pnand %p5108_p6, %p6899_p0  ;;  %p5114_p3 = por %p5113_p12, %p5112_p5 }
  0xeb   : > { %p5110_p11 = pneg %p5109_p9  ;;  %p5116_p8 = por %p5115_p10, %p5114_p3 }
  0xed   : > { %p5117_p13 = pnand %p5116_p8, %p5110_p11 }
  0xef   : > { %5120 = shalt.err (!%p5117_p13)
}
  0xf0   : > { %s5121_s12 = scalar_lea.vmem %s5913_s1, 256  ;;  %s5539_s25 = smov [#allocation17]  }
  0xf1   : > { %p5122_p2 = scmp.ne.s32.totalorder %s5913_s1, %s5121_s12  ;;  %s5125_s10 = sshll.u32 %s5539_s25, 4  ;;  %s5126_s10 = int_to_ptr.vmem [resolvable:$false] %s5125_s10 }
  0xf2   : > { %s5127_s3 = scalar_lea.vmem %s5126_s10, 512  ;;  %p5128_p7 = scmp.lt.s32.totalorder %s5913_s1, %s5126_s10 }
  0xf3   : > { %p5123_p1 = pnand %p5122_p2, %p6899_p0  ;;  %p5129_p6 = scmp.lt.s32.totalorder %s5127_s3, %s5121_s12 }
  0xf5   : > { %p5124_p4 = pneg %p5123_p1  ;;  %p5130_p9 = por %p5129_p6, %p5128_p7 }
  0xf7   : > { %p5131_p5 = pnand %p5130_p9, %p5124_p4 }
  0xf9   : > { %5134 = shalt.err (!%p5131_p5)
}
  0xfa   : > { %4692 = dma.hbm_to_vmem [thread:$0]  (%p6899_p0), %s5910_s16, 256, %s5913_s1, %s6860_s21, %s5535_s18, %s5535_s18, %s5536_s0  }
  0xfb   : > { %s5946_s30 = scalar_lea.hbm %s6829_s11, %s5830_s14  ;;  %s746_s12 = scalar_lea.vmem [#allocation20], %s5827_s17 }
  0xfc   : > { %s753_s25 = sshll.u32 %s746_s12, 4  ;;  %s6861_s10 = scalar_lea.sflag [#allocation21], %s5781_s20  ;;  %s5949_s25 = int_to_ptr.vmem [resolvable:$true] %s753_s25 }
  0xfd   : > { %s5135_s3 = scalar_lea.hbm %s5946_s30, 256  ;;  %s5139_s8 = scalar_lea.hbm %s6829_s11, 512 }
  0xfe   : > { %p5136_p11 = scmp.ne.s32.totalorder %s5946_s30, %s5135_s3  ;;  %p5140_p10 = scmp.lt.u32.totalorder %s5946_s30, %s6829_s11 }
  0xff   : > { %p5141_p8 = scmp.lt.u32.totalorder %s5139_s8, %s5135_s3  ;;  %p5143_p2 = scmp.lt.u32.totalorder %s5135_s3, %s5946_s30 }
 0x100   : > { %p5137_p12 = pnand %p5136_p11, %p6899_p0 }
 0x101   : > { %p5142_p13 = por %p5141_p8, %p5140_p10 }
 0x102   : > { %p5138_p3 = pneg %p5137_p12 }
 0x103   : > { %p5144_p1 = por %p5143_p2, %p5142_p13 }
 0x105   : > { %p5145_p4 = pnand %p5144_p1, %p5138_p3 }
 0x107   : > { %5148 = shalt.err (!%p5145_p4)
}
 0x108   : > { %s5149_s17 = scalar_lea.vmem %s5949_s25, 256  ;;  %s5540_s12 = smov [#allocation20]  }
 0x109   : > { %p5150_p7 = scmp.ne.s32.totalorder %s5949_s25, %s5149_s17  ;;  %s5153_s16 = sshll.u32 %s5540_s12, 4  ;;  %s5154_s16 = int_to_ptr.vmem [resolvable:$false] %s5153_s16 }
 0x10a   : > { %s5155_s1 = scalar_lea.vmem %s5154_s16, 512  ;;  %p5156_p5 = scmp.lt.s32.totalorder %s5949_s25, %s5154_s16 }
 0x10b   : > { %p5151_p6 = pnand %p5150_p7, %p6899_p0  ;;  %p5157_p11 = scmp.lt.s32.totalorder %s5155_s1, %s5149_s17 }
 0x10d   : > { %p5152_p9 = pneg %p5151_p6  ;;  %p5158_p12 = por %p5157_p11, %p5156_p5 }
 0x10f   : > { %p5159_p10 = pnand %p5158_p12, %p5152_p9 }
 0x111   : > { %5162 = shalt.err (!%p5159_p10)
}
 0x112   : > { %4694 = dma.hbm_to_vmem [thread:$0]  (%p6899_p0), %s5946_s30, 256, %s5949_s25, %s6861_s10, %s5535_s18, %s5535_s18, %s5536_s0  }
 0x113   : > { %s4171_s3 = sshll.u32 %s5784_s23, 6  ;;  %s4280_s8 = sshll.u32 %s5523_s28, 10 }
 0x114   : > { %s5983_s17 = scalar_lea.hbm %s6831_s13, %s4280_s8  ;;  %s784_s12 = scalar_lea.vmem [#allocation23], %s4171_s3 }
 0x115   : > { %s791_s16 = sshll.u32 %s784_s12, 4  ;;  %s5986_s1 = sshll.u32 %s5784_s23, 2  ;;  %s5988_s16 = int_to_ptr.vmem [resolvable:$true] %s791_s16 }
 0x116   : > { %s5991_s21 = sshll.u32 %s5523_s28, 6  ;;  %s6864_s30 = scalar_lea.sflag [#allocation24], %s5781_s20 }
 0x117   : > { %s5163_s25 = scalar_lea.hbm %s5983_s17, 1024  ;;  %s5167_s27 = scalar_lea.hbm %s6831_s13, 2048 }
 0x118   : > { %p5164_p3 = scmp.ne.s32.totalorder %s5983_s17, %s5163_s25  ;;  %p5168_p2 = scmp.lt.u32.totalorder %s5983_s17, %s6831_s13 }
 0x119   : > { %p5169_p1 = scmp.lt.u32.totalorder %s5167_s27, %s5163_s25  ;;  %p5171_p7 = scmp.lt.u32.totalorder %s5163_s25, %s5983_s17 }
 0x11a   : > { %p5165_p8 = pnand %p5164_p3, %p6899_p0 }
 0x11b   : > { %p5170_p4 = por %p5169_p1, %p5168_p2 }
 0x11c   : > { %p5166_p13 = pneg %p5165_p8 }
 0x11d   : > { %p5172_p6 = por %p5171_p7, %p5170_p4 }
 0x11f   : > { %p5173_p9 = pnand %p5172_p6, %p5166_p13 }
 0x121   : > { %5176 = shalt.err (!%p5173_p9)
}
 0x122   : > { %s5177_s3 = scalar_lea.vmem %s5988_s16, 1024  ;;  %s5541_s12 = smov [#allocation23]  }
 0x123   : > { %p5178_p5 = scmp.ne.s32.totalorder %s5988_s16, %s5177_s3  ;;  %s5181_s8 = sshll.u32 %s5541_s12, 4  ;;  %s5182_s8 = int_to_ptr.vmem [resolvable:$false] %s5181_s8 }
 0x124   : > { %s5183_s2 = scalar_lea.vmem %s5182_s8, 2048  ;;  %p5184_p10 = scmp.lt.s32.totalorder %s5988_s16, %s5182_s8 }
 0x125   : > { %p5179_p11 = pnand %p5178_p5, %p6899_p0  ;;  %p5185_p3 = scmp.lt.s32.totalorder %s5183_s2, %s5177_s3 }
 0x127   : > { %p5180_p12 = pneg %p5179_p11  ;;  %p5186_p8 = por %p5185_p3, %p5184_p10 }
 0x129   : > { %p5187_p2 = pnand %p5186_p8, %p5180_p12 }
 0x12b   : > { %5190 = shalt.err (!%p5187_p2)
}
 0x12c   : > { %4696 = dma.hbm_to_vmem [thread:$0]  (%p6899_p0), %s5983_s17, 1024, %s5988_s16, %s6864_s30, %s5535_s18, %s5535_s18, %s5536_s0  }
 0x12d   : > { %s6024_s14 = scalar_lea.hbm %s6833_s15, %s5991_s21  ;;  %s822_s27 = scalar_lea.vmem [#allocation26], %s5986_s1 }
 0x12e   : > { %s829_s3 = sshll.u32 %s822_s27, 4  ;;  %s6863_s12 = scalar_lea.sflag [#allocation27], %s5781_s20  ;;  %s830_s3 = int_to_ptr.vmem [resolvable:$true] %s829_s3 }
 0x12f   : > { %s5191_s8 = scalar_lea.hbm %s6024_s14, 64  ;;  %s5195_s0 = scalar_lea.hbm %s6833_s15, 128 }
 0x130   : > { %p5192_p13 = scmp.ne.s32.totalorder %s6024_s14, %s5191_s8  ;;  %p5196_p7 = scmp.lt.u32.totalorder %s6024_s14, %s6833_s15 }
 0x131   : > { %p5197_p6 = scmp.lt.u32.totalorder %s5195_s0, %s5191_s8  ;;  %p5199_p5 = scmp.lt.u32.totalorder %s5191_s8, %s6024_s14 }
 0x132   : > { %p5193_p1 = pnand %p5192_p13, %p6899_p0 }
 0x133   : > { %p5198_p9 = por %p5197_p6, %p5196_p7 }
 0x134   : > { %p5194_p4 = pneg %p5193_p1 }
 0x135   : > { %p5200_p11 = por %p5199_p5, %p5198_p9 }
 0x137   : > { %p5201_p12 = pnand %p5200_p11, %p5194_p4 }
 0x139   : > { %5204 = shalt.err (!%p5201_p12)
}
 0x13a   : > { %s5205_s10 = scalar_lea.vmem %s830_s3, 64  ;;  %s5542_s25 = smov [#allocation26]  }
 0x13b   : > { %p5206_p10 = scmp.ne.s32.totalorder %s830_s3, %s5205_s10  ;;  %s5209_s27 = sshll.u32 %s5542_s25, 4  ;;  %s5210_s27 = int_to_ptr.vmem [resolvable:$false] %s5209_s27 }
 0x13c   : > { %s5211_s2 = scalar_lea.vmem %s5210_s27, 128  ;;  %p5212_p2 = scmp.lt.s32.totalorder %s830_s3, %s5210_s27 }
 0x13d   : > { %p5207_p3 = pnand %p5206_p10, %p6899_p0  ;;  %p5213_p13 = scmp.lt.s32.totalorder %s5211_s2, %s5205_s10 }
 0x13f   : > { %p5208_p8 = pneg %p5207_p3  ;;  %p5214_p1 = por %p5213_p13, %p5212_p2 }
 0x141   : > { %p5215_p6 = pnand %p5214_p1, %p5208_p8 }
 0x143   : > { %5218 = shalt.err (!%p5215_p6)
}
 0x144   : > { %4698 = dma.hbm_to_vmem [thread:$0]  (%p6899_p0), %s6024_s14, 64, %s830_s3, %s6863_s12  }
 0x145   : > { %s6905_s4 = sld [smem:[#allocation51_spill]]  ;;  %s613_s17 = scalar_lea.vmem [#allocation10], %s5986_s1 }
 0x146   : > { %s620_s16 = sshll.u32 %s613_s17, 4  ;;  %s621_s16 = int_to_ptr.vmem [resolvable:$true] %s620_s16 }
 0x14b   : > { %s6051_s0 = scalar_lea.hbm %s6905_s4, %s5991_s21  ;;  %s5223_s14 = scalar_lea.hbm %s6905_s4, 128 }
 0x14c   : > { %s5219_s10 = scalar_lea.hbm %s6051_s0, 64  ;;  %p5224_p5 = scmp.lt.u32.totalorder %s6051_s0, %s6905_s4 }
 0x14d   : > { %p5220_p4 = scmp.ne.s32.totalorder %s6051_s0, %s5219_s10  ;;  %p5225_p11 = scmp.lt.u32.totalorder %s5223_s14, %s5219_s10 }
 0x14e   : > { %p5227_p10 = scmp.lt.u32.totalorder %s5219_s10, %s6051_s0 }
 0x14f   : > { %p5221_p7 = pnand %p5220_p4, %p6899_p0  ;;  %p5226_p12 = por %p5225_p11, %p5224_p5 }
 0x151   : > { %p5222_p9 = pneg %p5221_p7  ;;  %p5228_p3 = por %p5227_p10, %p5226_p12 }
 0x153   : > { %p5229_p8 = pnand %p5228_p3, %p5222_p9 }
 0x155   : > { %5232 = shalt.err (!%p5229_p8)
}
 0x156   : > { %s5233_s8 = scalar_lea.vmem %s621_s16, 64  ;;  %s5543_s18 = smov [#allocation10]  }
 0x157   : > { %p5234_p2 = scmp.ne.s32.totalorder %s621_s16, %s5233_s8  ;;  %s5237_s17 = sshll.u32 %s5543_s18, 4  ;;  %s5238_s17 = int_to_ptr.vmem [resolvable:$false] %s5237_s17 }
 0x158   : > { %s5239_s25 = scalar_lea.vmem %s5238_s17, 128  ;;  %p5240_p6 = scmp.lt.s32.totalorder %s621_s16, %s5238_s17 }
 0x159   : > { %p5235_p13 = pnand %p5234_p2, %p6899_p0  ;;  %p5241_p4 = scmp.lt.s32.totalorder %s5239_s25, %s5233_s8 }
 0x15b   : > { %p5236_p1 = pneg %p5235_p13  ;;  %p5242_p7 = por %p5241_p4, %p5240_p6 }
 0x15d   : > { %p5243_p5 = pnand %p5242_p7, %p5236_p1 }
 0x15f   : > { %5246 = shalt.err (!%p5243_p5)
}
 0x160   : > { %s6906_s10 = scalar_lea.sflag [#allocation9], %s5781_s20  ;;  %s6074_s27 = sshll.u32 %s5523_s28, 4 }
 0x161   : > { %4687 = dma.hbm_to_vmem [thread:$0]  (%p6899_p0), %s6051_s0, 64, %s621_s16, %s6906_s10  }
 0x162   : > { %s651_s14 = scalar_lea.vmem [#allocation13], %s5784_s23  ;;  %s6907_s6 = sld [smem:[#allocation53_spill]] }
 0x163   : > { %s658_s3 = sshll.u32 %s651_s14, 4  ;;  %s659_s3 = int_to_ptr.vmem [resolvable:$true] %s658_s3 }
 0x168   : > { %s656_s8 = scalar_lea.hbm %s6907_s6, %s6074_s27  ;;  %s5251_s30 = scalar_lea.hbm %s6907_s6, 32 }
 0x169   : > { %s5247_s17 = scalar_lea.hbm %s656_s8, 16  ;;  %p5252_p10 = scmp.lt.u32.totalorder %s656_s8, %s6907_s6 }
 0x16a   : > { %p5248_p9 = scmp.ne.s32.totalorder %s656_s8, %s5247_s17  ;;  %p5253_p3 = scmp.lt.u32.totalorder %s5251_s30, %s5247_s17 }
 0x16b   : > { %p5255_p2 = scmp.lt.u32.totalorder %s5247_s17, %s656_s8 }
 0x16c   : > { %p5249_p11 = pnand %p5248_p9, %p6899_p0  ;;  %p5254_p8 = por %p5253_p3, %p5252_p10 }
 0x16e   : > { %p5250_p12 = pneg %p5249_p11  ;;  %p5256_p13 = por %p5255_p2, %p5254_p8 }
 0x170   : > { %p5257_p1 = pnand %p5256_p13, %p5250_p12 }
 0x172   : > { %5260 = shalt.err (!%p5257_p1)
}
 0x173   : > { %s5261_s10 = scalar_lea.vmem %s659_s3, 16  ;;  %s5544_s14 = smov [#allocation13]  }
 0x174   : > { %p5262_p6 = scmp.ne.s32.totalorder %s659_s3, %s5261_s10  ;;  %s5265_s2 = sshll.u32 %s5544_s14, 4  ;;  %s5266_s2 = int_to_ptr.vmem [resolvable:$false] %s5265_s2 }
 0x175   : > { %s5267_s12 = scalar_lea.vmem %s5266_s2, 32  ;;  %p5268_p5 = scmp.lt.s32.totalorder %s659_s3, %s5266_s2 }
 0x176   : > { %p5263_p4 = pnand %p5262_p6, %p6899_p0  ;;  %p5269_p9 = scmp.lt.s32.totalorder %s5267_s12, %s5261_s10 }
 0x178   : > { %p5264_p7 = pneg %p5263_p4  ;;  %p5270_p11 = por %p5269_p9, %p5268_p5 }
 0x17a   : > { %p5271_p3 = pnand %p5270_p11, %p5264_p7 }
 0x17c   : > { %5274 = shalt.err (!%p5271_p3)
}
 0x17d   : > { %4689 = dma.hbm_to_vmem [thread:$0]  (%p6899_p0), %s656_s8, 16, %s659_s3, %s628_s24  }
 0x17e   : > { %s6908_s17 = sld [smem:[#allocation55_spill]]  ;;  %s690_s0 = scalar_lea.vmem [#allocation16], %s5986_s1 }
 0x17f   : > { %s697_s16 = sshll.u32 %s690_s0, 4  ;;  %s6909_s2 = sld [smem:[#allocation57_spill]]  ;;  %s698_s16 = int_to_ptr.vmem [resolvable:$true] %s697_s16 }
 0x184   : > { %s6099_s25 = scalar_lea.hbm %s6908_s17, %s5991_s21  ;;  %s5279_s8 = scalar_lea.hbm %s6908_s17, 128 }
 0x185   : > { %s6106_s12 = scalar_lea.hbm %s6909_s2, %s6074_s27  ;;  %s5275_s4 = scalar_lea.hbm %s6099_s25, 64 }
 0x186   : > { %p5276_p12 = scmp.ne.s32.totalorder %s6099_s25, %s5275_s4  ;;  %p5280_p2 = scmp.lt.u32.totalorder %s6099_s25, %s6908_s17 }
 0x187   : > { %p5281_p13 = scmp.lt.u32.totalorder %s5279_s8, %s5275_s4  ;;  %p5283_p6 = scmp.lt.u32.totalorder %s5275_s4, %s6099_s25 }
 0x188   : > { %p5277_p10 = pnand %p5276_p12, %p6899_p0 }
 0x189   : > { %p5282_p1 = por %p5281_p13, %p5280_p2 }
 0x18a   : > { %p5278_p8 = pneg %p5277_p10 }
 0x18b   : > { %p5284_p4 = por %p5283_p6, %p5282_p1 }
 0x18d   : > { %p5285_p7 = pnand %p5284_p4, %p5278_p8 }
 0x18f   : > { %5288 = shalt.err (!%p5285_p7)
}
 0x190   : > { %s5289_s0 = scalar_lea.vmem %s698_s16, 64  ;;  %s5545_s10 = smov [#allocation16]  }
 0x191   : > { %p5290_p5 = scmp.ne.s32.totalorder %s698_s16, %s5289_s0  ;;  %s5293_s14 = sshll.u32 %s5545_s10, 4  ;;  %s5294_s14 = int_to_ptr.vmem [resolvable:$false] %s5293_s14 }
 0x192   : > { %s5295_s24 = scalar_lea.vmem %s5294_s14, 128  ;;  %p5296_p3 = scmp.lt.s32.totalorder %s698_s16, %s5294_s14 }
 0x193   : > { %p5291_p9 = pnand %p5290_p5, %p6899_p0  ;;  %p5297_p12 = scmp.lt.s32.totalorder %s5295_s24, %s5289_s0 }
 0x195   : > { %p5292_p11 = pneg %p5291_p9  ;;  %p5298_p10 = por %p5297_p12, %p5296_p3 }
 0x197   : > { %p5299_p2 = pnand %p5298_p10, %p5292_p11 }
 0x199   : > { %5302 = shalt.err (!%p5299_p2)
}
 0x19a   : > { %s6910_s4 = scalar_lea.sflag [#allocation15], %s5781_s20  ;;  %s728_s3 = scalar_lea.vmem [#allocation19], %s5784_s23 }
 0x19b   : > { %4691 = dma.hbm_to_vmem [thread:$0]  (%p6899_p0), %s6099_s25, 64, %s698_s16, %s6910_s4  }
 0x19c   : > { %s735_s8 = sshll.u32 %s728_s3, 4  ;;  %s6911_s0 = sld [smem:[#allocation58_spill]]  ;;  %s736_s8 = int_to_ptr.vmem [resolvable:$true] %s735_s8 }
 0x19d   : > { %s5303_s14 = scalar_lea.hbm %s6106_s12, 16  ;;  %s5307_s6 = scalar_lea.hbm %s6909_s2, 32 }
 0x19e   : > { %p5304_p8 = scmp.ne.s32.totalorder %s6106_s12, %s5303_s14  ;;  %p5308_p6 = scmp.lt.u32.totalorder %s6106_s12, %s6909_s2 }
 0x19f   : > { %p5309_p4 = scmp.lt.u32.totalorder %s5307_s6, %s5303_s14  ;;  %p5311_p5 = scmp.lt.u32.totalorder %s5303_s14, %s6106_s12 }
 0x1a0   : > { %p5305_p13 = pnand %p5304_p8, %p6899_p0 }
 0x1a1   : > { %p5310_p7 = por %p5309_p4, %p5308_p6 }
 0x1a2   : > { %s6132_s10 = scalar_lea.hbm %s6911_s0, %s6074_s27  ;;  %p5306_p1 = pneg %p5305_p13 }
 0x1a3   : > { %p5312_p9 = por %p5311_p5, %p5310_p7 }
 0x1a5   : > { %p5313_p11 = pnand %p5312_p9, %p5306_p1 }
 0x1a7   : > { %5316 = shalt.err (!%p5313_p11)
}
 0x1a8   : > { %s5317_s25 = scalar_lea.vmem %s736_s8, 16  ;;  %s5546_s16 = smov [#allocation19]  }
 0x1a9   : > { %p5318_p3 = scmp.ne.s32.totalorder %s736_s8, %s5317_s25  ;;  %s5321_s4 = sshll.u32 %s5546_s16, 4  ;;  %s5322_s4 = int_to_ptr.vmem [resolvable:$false] %s5321_s4 }
 0x1aa   : > { %s5323_s5 = scalar_lea.vmem %s5322_s4, 32  ;;  %p5324_p2 = scmp.lt.s32.totalorder %s736_s8, %s5322_s4 }
 0x1ab   : > { %p5319_p12 = pnand %p5318_p3, %p6899_p0  ;;  %p5325_p8 = scmp.lt.s32.totalorder %s5323_s5, %s5317_s25 }
 0x1ad   : > { %p5320_p10 = pneg %p5319_p12  ;;  %p5326_p13 = por %p5325_p8, %p5324_p2 }
 0x1af   : > { %p5327_p4 = pnand %p5326_p13, %p5320_p10 }
 0x1b1   : > { %5330 = shalt.err (!%p5327_p4)
}
 0x1b2   : > { %s6912_s6 = scalar_lea.sflag [#allocation18], %s5781_s20  ;;  %s766_s7 = scalar_lea.vmem [#allocation22], %s5784_s23 }
 0x1b3   : > { %4693 = dma.hbm_to_vmem [thread:$0]  (%p6899_p0), %s6106_s12, 16, %s736_s8, %s6912_s6  }
 0x1b4   : > { %s773_s9 = sshll.u32 %s766_s7, 4  ;;  %s6913_s18 = sld [smem:[#allocation59_spill]]  ;;  %s774_s9 = int_to_ptr.vmem [resolvable:$true] %s773_s9 }
 0x1b5   : > { %s5331_s24 = scalar_lea.hbm %s6132_s10, 16  ;;  %s5335_s4 = scalar_lea.hbm %s6911_s0, 32 }
 0x1b6   : > { %p5332_p1 = scmp.ne.s32.totalorder %s6132_s10, %s5331_s24  ;;  %p5336_p5 = scmp.lt.u32.totalorder %s6132_s10, %s6911_s0 }
 0x1b7   : > { %p5337_p9 = scmp.lt.u32.totalorder %s5335_s4, %s5331_s24  ;;  %p5339_p3 = scmp.lt.u32.totalorder %s5331_s24, %s6132_s10 }
 0x1b8   : > { %p5333_p6 = pnand %p5332_p1, %p6899_p0 }
 0x1b9   : > { %p5338_p11 = por %p5337_p9, %p5336_p5 }
 0x1ba   : > { %s6158_s14 = scalar_lea.hbm %s6913_s18, %s6074_s27  ;;  %p5334_p7 = pneg %p5333_p6 }
 0x1bb   : > { %p5340_p12 = por %p5339_p3, %p5338_p11 }
 0x1bd   : > { %p5341_p10 = pnand %p5340_p12, %p5334_p7 }
 0x1bf   : > { %5344 = shalt.err (!%p5341_p10)
}
 0x1c0   : > { %s5345_s27 = scalar_lea.vmem %s774_s9, 16  ;;  %s5547_s12 = smov [#allocation22]  }
 0x1c1   : > { %p5346_p2 = scmp.ne.s32.totalorder %s774_s9, %s5345_s27  ;;  %s5349_s8 = sshll.u32 %s5547_s12, 4  ;;  %s5350_s8 = int_to_ptr.vmem [resolvable:$false] %s5349_s8 }
 0x1c2   : > { %s5351_s6 = scalar_lea.vmem %s5350_s8, 32  ;;  %p5352_p4 = scmp.lt.s32.totalorder %s774_s9, %s5350_s8 }
 0x1c3   : > { %p5347_p8 = pnand %p5346_p2, %p6899_p0  ;;  %p5353_p1 = scmp.lt.s32.totalorder %s5351_s6, %s5345_s27 }
 0x1c5   : > { %p5348_p13 = pneg %p5347_p8  ;;  %p5354_p6 = por %p5353_p1, %p5352_p4 }
 0x1c7   : > { %p5355_p5 = pnand %p5354_p6, %p5348_p13 }
 0x1c9   : > { %5358 = shalt.err (!%p5355_p5)
}
 0x1ca   : > { %s6914_s2 = scalar_lea.sflag [#allocation21], %s5781_s20  ;;  %s804_s7 = scalar_lea.vmem [#allocation25], %s5784_s23 }
 0x1cb   : > { %4695 = dma.hbm_to_vmem [thread:$0]  (%p6899_p0), %s6132_s10, 16, %s774_s9, %s6914_s2  }
 0x1cc   : > { %s811_s3 = sshll.u32 %s804_s7, 4  ;;  %s6915_s25 = sld [smem:[#allocation60_spill]]  ;;  %s812_s3 = int_to_ptr.vmem [resolvable:$true] %s811_s3 }
 0x1cd   : > { %s5359_s5 = scalar_lea.hbm %s6158_s14, 16  ;;  %s5363_s8 = scalar_lea.hbm %s6913_s18, 32 }
 0x1ce   : > { %p5360_p7 = scmp.ne.s32.totalorder %s6158_s14, %s5359_s5  ;;  %p5364_p3 = scmp.lt.u32.totalorder %s6158_s14, %s6913_s18 }
 0x1cf   : > { %p5365_p12 = scmp.lt.u32.totalorder %s5363_s8, %s5359_s5  ;;  %p5367_p2 = scmp.lt.u32.totalorder %s5359_s5, %s6158_s14 }
 0x1d0   : > { %p5361_p9 = pnand %p5360_p7, %p6899_p0 }
 0x1d1   : > { %p5366_p10 = por %p5365_p12, %p5364_p3 }
 0x1d2   : > { %s6916_s16 = smov %s6915_s25  ;;  %s6184_s4 = scalar_lea.hbm %s6915_s25, %s5991_s21 }
 0x1d3   : > { %p5362_p11 = pneg %p5361_p9  ;;  %p5368_p8 = por %p5367_p2, %p5366_p10 }
 0x1d5   : > { %p5369_p13 = pnand %p5368_p8, %p5362_p11 }
 0x1d7   : > { %5372 = shalt.err (!%p5369_p13)
}
 0x1d8   : > { %s5373_s23 = scalar_lea.vmem %s812_s3, 16  ;;  %s5548_s21 = smov [#allocation25]  }
 0x1d9   : > { %p5374_p4 = scmp.ne.s32.totalorder %s812_s3, %s5373_s23  ;;  %s5377_s10 = sshll.u32 %s5548_s21, 4  ;;  %s5378_s10 = int_to_ptr.vmem [resolvable:$false] %s5377_s10 }
 0x1da   : > { %s5379_s9 = scalar_lea.vmem %s5378_s10, 32  ;;  %p5380_p5 = scmp.lt.s32.totalorder %s812_s3, %s5378_s10 }
 0x1db   : > { %p5375_p1 = pnand %p5374_p4, %p6899_p0  ;;  %p5381_p7 = scmp.lt.s32.totalorder %s5379_s9, %s5373_s23 }
 0x1dd   : > { %p5376_p6 = pneg %p5375_p1  ;;  %p5382_p9 = por %p5381_p7, %p5380_p5 }
 0x1df   : > { %p5383_p3 = pnand %p5382_p9, %p5376_p6 }
 0x1e1   : > { %5386 = shalt.err (!%p5383_p3)
}
 0x1e2   : > { %s6917_s0 = scalar_lea.sflag [#allocation24], %s5781_s20  ;;  %s840_s2 = scalar_lea.vmem [#allocation28], %s5986_s1 }
 0x1e3   : > { %4697 = dma.hbm_to_vmem [thread:$0]  (%p6899_p0), %s6158_s14, 16, %s812_s3, %s6917_s0  }
 0x1e4   : > { %s847_s7 = sshll.u32 %s840_s2, 4  ;;  %s5387_s30 = scalar_lea.hbm %s6184_s4, 64  ;;  %s848_s7 = int_to_ptr.vmem [resolvable:$true] %s847_s7 }
 0x1e5   : > { %p5388_p11 = scmp.ne.s32.totalorder %s6184_s4, %s5387_s30  ;;  %s5391_s5 = scalar_lea.hbm %s6916_s16, 128 }
 0x1e6   : > { %p5392_p2 = scmp.lt.u32.totalorder %s6184_s4, %s6916_s16  ;;  %p5393_p8 = scmp.lt.u32.totalorder %s5391_s5, %s5387_s30 }
 0x1e7   : > { %p5389_p12 = pnand %p5388_p11, %p6899_p0  ;;  %p5395_p4 = scmp.lt.u32.totalorder %s5387_s30, %s6184_s4 }
 0x1e8   : > { %p5394_p13 = por %p5393_p8, %p5392_p2 }
 0x1e9   : > { %p5390_p10 = pneg %p5389_p12 }
 0x1ea   : > { %p5396_p1 = por %p5395_p4, %p5394_p13 }
 0x1ec   : > { %p5397_p6 = pnand %p5396_p1, %p5390_p10 }
 0x1ee   : > { %5400 = shalt.err (!%p5397_p6)
}
 0x1ef   : > { %s5401_s1 = scalar_lea.vmem %s848_s7, 64  ;;  %s5549_s14 = smov [#allocation28]  }
 0x1f0   : > { %p5402_p5 = scmp.ne.s32.totalorder %s848_s7, %s5401_s1  ;;  %s5405_s3 = sshll.u32 %s5549_s14, 4  ;;  %s5406_s3 = int_to_ptr.vmem [resolvable:$false] %s5405_s3 }
 0x1f1   : > { %s5407_s8 = scalar_lea.vmem %s5406_s3, 128  ;;  %p5408_p3 = scmp.lt.s32.totalorder %s848_s7, %s5406_s3 }
 0x1f2   : > { %p5403_p7 = pnand %p5402_p5, %p6899_p0  ;;  %p5409_p11 = scmp.lt.s32.totalorder %s5407_s8, %s5401_s1 }
 0x1f4   : > { %p5404_p9 = pneg %p5403_p7  ;;  %p5410_p12 = por %p5409_p11, %p5408_p3 }
 0x1f6   : > { %p5411_p2 = pnand %p5410_p12, %p5404_p9 }
 0x1f8   : > { %5414 = shalt.err (!%p5411_p2)
}
 0x1f9   : > { %s6918_s6 = scalar_lea.sflag [#allocation27], %s5781_s20 }
 0x1fa   : > { %4699 = dma.hbm_to_vmem [thread:$0]  (%p6899_p0), %s6184_s4, 64, %s848_s7, %s6918_s6  }
 0x1fb PF: > { %s6919_s23 = sld [smem:[#allocation46_spill]] }
 0x201   : > { %p6920_p10 = scmp.ne.s32.totalorder %s6919_s23, 0 }
 0x202   : > { %s6921_s21 = sld [smem:[#allocation42_spill]] (!%p6920_p10) }
 0x203   : > { %856 = sbr.rel (%p6920_p10) target bundleno = 4952 (0x1358), region = 88 }
 0x208   : > { %p6922_p8 = scmp.eq.s32.totalorder (!%p6920_p10), %s6921_s21, 0 }
 0x20a   : > { %5466 = dma.done.wait (%p6922_p8), [#allocation3], 256   ;;  %p6923_p13 = pmov %p6922_p8 }
 0x20b   : > { %p6924_p4 = pmov %p6922_p8 }
 0x20c   : > { %5468 = vsyncadd (%p6923_p13), [#allocation3], 4294967040 }
 0x20d   : > { %5470 = dma.done.wait (%p6924_p4), [#allocation6], 640   ;;  %p6925_p1 = pmov %p6924_p4 }
 0x20e   : > { %s6926_s19 = sld [smem:[#allocation40_spill]]  ;;  %s6927_s20 = sld [smem:[#allocation44_spill]] }
 0x20f   : > { %5472 = vsyncadd (%p6925_p1), [#allocation6], 4294966656  ;;  %s6236_s4 = sand.u32 1, %s6921_s21  }
 0x210   : > { %s871_s0 = scalar_lea.sflag [#allocation9], %s6236_s4 }
 0x214   : > { %s6239_s10 = sand.u32 1, %s6926_s19   ;;  %p6928_p0 = scmp.ne.s32.totalorder %s6927_s20, 0 }
 0x215   : > { %s4679_s9 = smul.u32 48, %s6239_s10 }
 0x217   : > { %s6243_s2 = scalar_lea.vmem [#allocation8], %s4679_s9 }
 0x218   : > { %5474 = dma.done.wait (%p6928_p0), %s871_s0, 832  }
 0x219   : > { %5476 = vsyncadd (%p6928_p0), %s871_s0, 4294966464  ;;  %s6250_s7 = sshll.u32 %s6239_s10, 2  ;;  %s6253_s30 = sshll.u32 %s6239_s10, 4 }
 0x21a   : > { %s883_s24 = scalar_lea.vmem [#allocation10], %s6250_s7  ;;  %s889_s25 = scalar_lea.sflag [#allocation12], %s6236_s4 }
 0x21b   : > { %s892_s5 = scalar_lea.vmem [#allocation11], %s6253_s30 }
 0x21c   : > { %5478 = dma.done.wait (%p6928_p0), %s889_s25, 272  }
 0x21d   : > { %5480 = vsyncadd (%p6928_p0), %s889_s25, 4294967024  ;;  %s900_s27 = scalar_lea.vmem [#allocation13], %s6239_s10  ;;  %s906_s12 = scalar_lea.sflag [#allocation15], %s6236_s4 }
 0x21e   : > { %s6264_s1 = scalar_lea.vmem [#allocation14], %s4679_s9 }
 0x21f   : > { %5482 = dma.done.wait (%p6928_p0), %s906_s12, 832  }
 0x220   : > { %5484 = vsyncadd (%p6928_p0), %s906_s12, 4294966464  ;;  %s918_s14 = scalar_lea.vmem [#allocation16], %s6250_s7  ;;  %s924_s3 = scalar_lea.sflag [#allocation18], %s6236_s4 }
 0x221   : > { %s927_s8 = scalar_lea.vmem [#allocation17], %s6253_s30 }
 0x222   : > { %5486 = dma.done.wait (%p6928_p0), %s924_s3, 272  }
 0x223   : > { %5488 = vsyncadd (%p6928_p0), %s924_s3, 4294967024  ;;  %s935_s6 = scalar_lea.vmem [#allocation19], %s6239_s10  ;;  %s941_s23 = scalar_lea.sflag [#allocation21], %s6236_s4 }
 0x224   : > { %s944_s21 = scalar_lea.vmem [#allocation20], %s6253_s30 }
 0x225   : > { %5490 = dma.done.wait (%p6928_p0), %s941_s23, 272  }
 0x226   : > { %5492 = vsyncadd (%p6928_p0), %s941_s23, 4294967024  ;;  %s4188_s19 = sshll.u32 %s6239_s10, 6  ;;  %s958_s0 = scalar_lea.sflag [#allocation24], %s6236_s4 }
 0x227   : > { %s6287_s25 = scalar_lea.vmem [#allocation23], %s4188_s19 }
 0x228   : > { %5494 = dma.done.wait (%p6928_p0), %s958_s0, 1040  }
 0x229   : > { %5496 = vsyncadd (%p6928_p0), %s958_s0, 4294966256  ;;  %s969_s12 = scalar_lea.vmem [#allocation25], %s6239_s10  ;;  %s975_s3 = scalar_lea.sflag [#allocation27], %s6236_s4 }
 0x22a   : > { %s978_s23 = scalar_lea.vmem [#allocation26], %s6250_s7 }
 0x22b   : > { %5498 = dma.done.wait (%p6928_p0), %s975_s3, 128  }
 0x22c   : > { %5500 = vsyncadd (%p6928_p0), %s975_s3, 4294967168  ;;  %s987_s19 = scalar_lea.vmem [#allocation28], %s6250_s7  ;;  %s6929_s9 = sld [smem:[#allocation41_spill]] }
 0x232   : > { %p4191_p6 = scmp.ne.s32.totalorder %s6929_s9, 0 }
 0x233   : > { %v1102_v0 = vld [vmem:[#allocation2] sm:$0xff] (!%p4191_p6)  ;;  %vm1104_vm0 = vcmask (!%p4191_p6), 261120   ;;  %v1103_v1 = vld [vmem:[#allocation2 + $0x8] sm:$0xff] (!%p4191_p6) }
 0x234   : > { %1101 = sbr.rel (%p4191_p6) target bundleno = 571 (0x23b), region = 160  ;;  %1105 = vst.msk [vmem:[#allocation29] sm:$0xff] (!%p4191_p6), %vm1104_vm0, %v1102_v0  ;;  %1106 = vst.msk [vmem:[#allocation29 + $0x8] sm:$0xff] (!%p4191_p6), %vm1104_vm0, %v1103_v1 }
 0x23b PF: > { %v4837_v2 = vld [vmem:[%s6243_s2] sm:$0xff]   ;;  %v5550_v3 = vmov 0.0   ;;  %v4838_v4 = vld [vmem:[%s6243_s2 + $0x8] sm:$0xff]   ;;  %vm5551_vm1 = vmmov 0   ;;  %vm1146_vm2 = vcmask 261120   ;;  %v4839_v7 = vld [vmem:[%s6243_s2 + $0x10] sm:$0xff]   ;;  %v1130_v12 = vlaneseq }
 0x23c   : > { %4391 = vmatprep.subr.bf16.mxu0 %v5550_v3  ;;  %4415 = vmatprep.subr.bf16.mxu1 %v5550_v3  ;;  %v6308_v5 = vld [vmem:[#allocation29] sm:$0xff]  ;;  %v6310_v6 = vld [vmem:[#allocation29 + $0x8] sm:$0xff]  ;;  %v6339_v15 = vld [vmem:[%s883_s24] sm:$0x7]  ;;  %s5552_s20 = smov 120   ;;  %vm1359_vm3 = vcmask 64512  }
 0x23d   : > { %4392 = vmatpush3.bf16.msra.mxu0 %v4837_v2  ;;  %4395 = vmatprep.mubr.msk.bf16.mxu0 %vm5551_vm1, %v5550_v3  ;;  %v1129_v8 = vpack.c.bf16 %v6310_v6, %v6308_v5  ;;  %v4840_v9 = vld [vmem:[%s6243_s2 + $0x18] sm:$0xff]   ;;  %v4841_v10 = vld [vmem:[%s6243_s2 + $0x20] sm:$0xff]   ;;  %v4842_v11 = vld [vmem:[%s6243_s2 + $0x28] sm:$0xff]   ;;  %v1131_v13 = vshrl.u32 %v1130_v12, 7  ;;  %s5553_s4 = smov 112   ;;  %s5554_s2 = smov 104  }
 0x23e   : > { %4393 = vmatprep.subr.bf16.mxu0 %v5550_v3  ;;  %4417 = vmatprep.mubr.msk.bf16.mxu1 %vm5551_vm1, %v5550_v3  ;;  %vm1827_vm4 = vcmask 1043456   ;;  %s5555_s24 = smov 8   ;;  %s5556_s9 = smov 16   ;;  %vm2219_vm5 = vcmask 130048   ;;  %vm2222_vm6 = vcmask 195584  }
 0x23f   : > { %v6335_v14 = vsub.s32 0, %v1131_v13  ;;  %v6343_v20 = vsub.s32 1, %v1131_v13  ;;  %v6373_v48 = vsub.s32 2, %v1131_v13  ;;  %s6930_s7 = scalar_lea.vmem [#allocation22], %s6239_s10  ;;  %s6931_s10 = sld [smem:[#allocation42_spill]] }
 0x240   : > { %s5558_s30 = smov [#allocation29]  }
 0x241   : > { %4394 = vmatpush3.bf16.msra.mxu0 %v4838_v4  ;;  %v1133_v16 = vrot.slane %v6339_v15, %v6335_v14  ;;  %v1195_v25 = vrot.slane %v6339_v15, %v6343_v20  ;;  %v1253_v51 = vrot.slane %v6339_v15, %v6373_v48  ;;  %v1107_v4 = vld [vmem:[#allocation7] sm:$0xff] }
 0x242   : > { %4399 = vmatprep.subr.bf16.mxu0 %v5550_v3 }
 0x244   : > { %4396 = vmatmul.mubr.msk.bf16.vlgmr.msra.gmra.mrb[0].mxu0 %vm1146_vm2, %v1129_v8 }
 0x245   : > { %4400 = vmatpush3.bf16.msra.mxu0 %v4839_v7  ;;  %4403 = vmatprep.mubr.msk.bf16.mxu0 %vm5551_vm1, %v5550_v3  ;;  %p4740_p5 = scmp.eq.s32.totalorder %s6931_s10, 1 }
 0x246   : > { %4401 = vmatprep.subr.bf16.mxu0 %v5550_v3 }
 0x249   : > { %4402 = vmatpush3.bf16.msra.mxu0 %v4840_v9 }
 0x24a   : > { %4407 = vmatprep.subr.bf16.mxu0 %v5550_v3 }
 0x24c   : > { %4404 = vmatmul.mubr.msk.bf16.vlgmr.msra.gmra.mrb[4].mxu0 %vm1146_vm2, %v1129_v8 }
 0x24d   : > { %4411 = vmatprep.mubr.msk.bf16.mxu0 %vm5551_vm1, %v5550_v3  ;;  %4408 = vmatpush3.bf16.msra.mxu0 %v4841_v10 }
 0x24e   : > { %4409 = vmatprep.subr.bf16.mxu0 %v5550_v3 }
 0x251   : > { %4410 = vmatpush3.bf16.msra.mxu0 %v4842_v11 }
 0x252   : > { %4421 = vmatprep.subr.bf16.mxu0 %v5550_v3 }
 0x254   : > { %4412 = vmatmul.mubr.msk.bf16.vlgmr.msra.gmra.mrb[8].mxu0 %vm1146_vm2, %v1129_v8 }
 0x255   : > { %4423 = vmatprep.mubr.msk.bf16.mxu0 %vm5551_vm1, %v5550_v3 }
 0x317   : > { %v1184_v17 = vpop.f32.mrb[0].mxu0 }
 0x318   : > { %v1185_v18 = vadd.f32 %v1184_v17, %v1133_v16  ;;  %v4397_v19 = vpop.f32.mrb[1].mxu0 }
 0x319   : > { %v1187_v21 = vpop.f32.mrb[2].mxu0 }
 0x31a   : > { %v4281_v22 = vpack.c.bf16 %v1185_v18, %v1185_v18  ;;  %v1188_v23 = vadd.f32 %v1187_v21, %v1133_v16  ;;  %v4398_v24 = vpop.f32.mrb[3].mxu0 }
 0x31c   : > { %1313 = vrot.lane.b32.xlu1 %v4281_v22, %s5552_s20  ;;  %v4282_v26 = vpack.c.bf16 %v1188_v23, %v1188_v23 }
 0x31f   : > { %v1242_v27 = vpop.f32.mrb[4].mxu0 }
 0x320   : > { %v1243_v28 = vadd.f32 %v1242_v27, %v1195_v25  ;;  %1315 = vrot.lane.b32.xlu1 %v4282_v26, %s5552_s20  ;;  %v4405_v29 = vpop.f32.mrb[5].mxu0 }
 0x321   : > { %v1245_v30 = vpop.f32.mrb[6].mxu0 }
 0x322   : > { %v4283_v31 = vpack.c.bf16 %v1243_v28, %v1243_v28  ;;  %v1246_v32 = vadd.f32 %v1245_v30, %v1195_v25  ;;  %v4406_v33 = vpop.f32.mrb[7].mxu0 }
 0x324   : > { %v4284_v34 = vpack.c.bf16 %v1246_v32, %v1246_v32  ;;  %1330 = vrot.lane.b32.xlu0 %v4283_v31, %s5552_s20  ;;  %v1364_v35 = vsel %vm1359_vm3, %v4283_v31, 0 }
 0x325   : > { %4416 = vmatpush3.bf16.xpose.msra.mxu1 %v1364_v35 }
 0x326   : > { %1336 = vrot.lane.b32.xlu1 %v4284_v34, %s5553_s4  ;;  %v1410_v36 = vsel %vm1359_vm3, %v4284_v34, 0  ;;  %4427 = vmatprep.subr.bf16.mxu1 %v5550_v3 }
 0x327   : > { %4422 = vmatpush3.bf16.xpose.msra.mxu0 %v1410_v36  ;;  %v1300_v37 = vpop.f32.mrb[8].mxu0 }
 0x328   : > { %1332 = vrot.lane.b32.xlu0 %v4284_v34, %s5552_s20  ;;  %4433 = vmatprep.subr.bf16.mxu0 %v5550_v3  ;;  %v4413_v38 = vpop.f32.mrb[9].mxu0  ;;  %v1301_v55 = vadd.f32 %v1300_v37, %v1253_v51 }
 0x329   : > { %v1303_v39 = vpop.f32.mrb[10].mxu0 }
 0x32a   : > { %1319 = vrot.lane.b32.xlu1 %v4282_v26, %s5553_s4  ;;  %v4414_v40 = vpop.f32.mrb[11].mxu0  ;;  %v6391_v59 = vpack.c.bf16 %v1301_v55, %v1301_v55  ;;  %v1304_v60 = vadd.f32 %v1303_v39, %v1253_v51 }
 0x32c   : > { %4418 = vmatmul.mubr.msk.bf16.vlgmr.msra.gmra.mrb[0].mxu1 %vm1359_vm3, %v4281_v22  ;;  %1334 = vrot.lane.b32.xlu0 %v4283_v31, %s5553_s4  ;;  %v6398_v62 = vpack.c.bf16 %v1304_v60, %v1304_v60  ;;  %v1829_v63 = vsel %vm1827_vm4, %v6391_v59, 0 }
 0x32d   : > { %4429 = vmatprep.mubr.msk.bf16.mxu1 %vm5551_vm1, %v5550_v3 }
 0x32e   : > { %1340 = vrot.lane.b32.xlu1 %v4284_v34, %s5554_s2  ;;  %4424 = vmatmul.mubr.msk.bf16.vlgmr.msra.gmra.mrb[12].mxu0 %vm1359_vm3, %v4282_v26  ;;  %v1875_v1 = vsel %vm1827_vm4, %v6398_v62, 0 }
 0x32f   : > { %4435 = vmatprep.mubr.msk.bf16.mxu0 %vm5551_vm1, %v5550_v3 }
 0x330   : > { %1317 = vrot.lane.b32.xlu0 %v4281_v22, %s5553_s4 }
 0x332   : > { %1323 = vrot.lane.b32.xlu1 %v4282_v26, %s5554_s2 }
 0x334   : > { %1338 = vrot.lane.b32.xlu0 %v4283_v31, %s5554_s2 }
 0x338   : > { %1321 = vrot.lane.b32.xlu0 %v4281_v22, %s5554_s2 }
 0x38e   : > { %v1314_v41 = vpop.permute.xlu1 %1313 }
 0x392   : > { %v1316_v44 = vpop.permute.xlu1 %1315 }
 0x396   : > { %v1331_v42 = vpop.permute.xlu0 %1330 }
 0x397   : > { %v1456_v43 = vsel %vm1359_vm3, %v1331_v42, 0 }
 0x398   : > { %4428 = vmatpush3.bf16.xpose.msra.mxu1 %v1456_v43  ;;  %v1337_v47 = vpop.permute.xlu1 %1336 }
 0x399   : > { %4439 = vmatprep.subr.bf16.mxu1 %v5550_v3  ;;  %v1594_v54 = vsel %vm1359_vm3, %v1337_v47, 0 }
 0x39a   : > { %v1333_v45 = vpop.permute.xlu0 %1332 }
 0x39b   : > { %v1502_v46 = vsel %vm1359_vm3, %v1333_v45, 0 }
 0x39c   : > { %4434 = vmatpush3.bf16.xpose.msra.mxu0 %v1502_v46  ;;  %v1320_v52 = vpop.permute.xlu1 %1319 }
 0x39d   : > { %4445 = vmatprep.subr.bf16.mxu0 %v5550_v3 }
 0x39e   : > { %v1335_v49 = vpop.permute.xlu0 %1334 }
 0x39f   : > { %v1548_v50 = vsel %vm1359_vm3, %v1335_v49, 0  ;;  %4430 = vmatmul.mubr.msk.bf16.vlgmr.msra.gmra.mrb[4].mxu1 %vm1359_vm3, %v1314_v41 }
 0x3a0   : > { %4440 = vmatpush3.bf16.xpose.msra.mxu1 %v1548_v50  ;;  %4441 = vmatprep.mubr.msk.bf16.mxu1 %vm5551_vm1, %v5550_v3  ;;  %v1341_v58 = vpop.permute.xlu1 %1340 }
 0x3a1   : > { %4451 = vmatprep.subr.bf16.mxu1 %v5550_v3  ;;  %v1686_v61 = vsel %vm1359_vm3, %v1341_v58, 0 }
 0x3a2   : > { %v1318_v53 = vpop.permute.xlu0 %1317 }
 0x3a3   : > { %4436 = vmatmul.mubr.msk.bf16.vlgmr.msra.gmra.mrb[16].mxu0 %vm1359_vm3, %v1316_v44 }
 0x3a4   : > { %4446 = vmatpush3.bf16.xpose.msra.mxu0 %v1594_v54  ;;  %4447 = vmatprep.mubr.msk.bf16.mxu0 %vm5551_vm1, %v5550_v3  ;;  %v1324_v2 = vpop.permute.xlu1 %1323 }
 0x3a5   : > { %4457 = vmatprep.subr.bf16.mxu0 %v5550_v3 }
 0x3a6   : > { %v1339_v56 = vpop.permute.xlu0 %1338 }
 0x3a7   : > { %v1640_v57 = vsel %vm1359_vm3, %v1339_v56, 0  ;;  %4442 = vmatmul.mubr.msk.bf16.vlgmr.msra.gmra.mrb[8].mxu1 %vm1359_vm3, %v1318_v53 }
 0x3a8   : > { %4452 = vmatpush3.bf16.xpose.msra.mxu1 %v1640_v57  ;;  %4453 = vmatprep.mubr.msk.bf16.mxu1 %vm5551_vm1, %v5550_v3 }
 0x3a9   : > { %4463 = vmatprep.subr.bf16.mxu1 %v5550_v3 }
 0x3aa   : > { %v1322_v0 = vpop.permute.xlu0 %1321 }
 0x3ab   : > { %4448 = vmatmul.mubr.msk.bf16.vlgmr.msra.gmra.mrb[20].mxu0 %vm1359_vm3, %v1320_v52 }
 0x3ac   : > { %4458 = vmatpush3.bf16.xpose.msra.mxu0 %v1686_v61  ;;  %4459 = vmatprep.mubr.msk.bf16.mxu0 %vm5551_vm1, %v5550_v3 }
 0x3ad   : > { %4469 = vmatprep.subr.bf16.mxu0 %v5550_v3 }
 0x3af   : > { %4454 = vmatmul.mubr.msk.bf16.vlgmr.msra.gmra.mrb[12].mxu1 %vm1359_vm3, %v1322_v0 }
 0x3b0   : > { %4464 = vmatpush3.bf16.msra.mxu1 %v1829_v63  ;;  %4465 = vmatprep.mubr.msk.bf16.mxu1 %vm5551_vm1, %v5550_v3 }
 0x3b1   : > { %4475 = vmatprep.subr.bf16.mxu1 %v5550_v3 }
 0x3b3   : > { %4460 = vmatmul.mubr.msk.bf16.vlgmr.msra.gmra.mrb[24].mxu0 %vm1359_vm3, %v1324_v2 }
 0x3b4   : > { %4470 = vmatpush3.bf16.msra.mxu0 %v1875_v1  ;;  %4471 = vmatprep.mubr.msk.bf16.mxu0 %vm5551_vm1, %v5550_v3 }
 0x3b5   : > { %4481 = vmatprep.subr.bf16.mxu0 %v5550_v3 }
 0x3ff   : > { %v1400_v7 = vpop.f32.mrb[0].mxu1 }
 0x400   : > { %v6413_v8 = vadd.f32 %v1400_v7, %v1107_v4  ;;  %v4419_v9 = vpop.f32.mrb[1].mxu1 }
 0x401   : > { %v1403_v10 = vpop.f32.mrb[2].mxu1  ;;  %v1446_v11 = vpop.f32.mrb[12].mxu0 }
 0x402   : > { %v1447_v12 = vadd.f32 %v1446_v11, %v1107_v4  ;;  %v4420_v13 = vpop.f32.mrb[3].mxu1  ;;  %v4425_v15 = vpop.f32.mrb[13].mxu0  ;;  %v1728_v16 = vsel %vm1359_vm3, %v6413_v8, -inf }
 0x403   : > { %v1449_v17 = vpop.f32.mrb[14].mxu0  ;;  %1729 = vmax.xlane.f32.xlu0 %v1728_v16 }
 0x404   : > { %v4426_v18 = vpop.f32.mrb[15].mxu0  ;;  %v1731_v19 = vsel %vm1359_vm3, %v1447_v12, -inf }
 0x405   : > { %1732 = vmax.xlane.f32.xlu1 %v1731_v19 }
 0x472   : > { %v1492_v21 = vpop.f32.mrb[4].mxu1 }
 0x473   : > { %v1493_v22 = vadd.f32 %v1492_v21, %v1107_v4  ;;  %v4431_v23 = vpop.f32.mrb[5].mxu1 }
 0x474   : > { %v1495_v24 = vpop.f32.mrb[6].mxu1 }
 0x475   : > { %v4432_v25 = vpop.f32.mrb[7].mxu1  ;;  %v1734_v26 = vsel %vm1359_vm3, %v1493_v22, -inf }
 0x476   : > { %v1538_v27 = vpop.f32.mrb[16].mxu0  ;;  %1735 = vmax.xlane.f32.xlu0 %v1734_v26 }
 0x477   : > { %v1539_v28 = vadd.f32 %v1538_v27, %v1107_v4  ;;  %v4437_v29 = vpop.f32.mrb[17].mxu0 }
 0x478   : > { %v1541_v30 = vpop.f32.mrb[18].mxu0 }
 0x479   : > { %v4438_v31 = vpop.f32.mrb[19].mxu0  ;;  %v1737_v32 = vsel %vm1359_vm3, %v1539_v28, -inf }
 0x47a   : > { %v1584_v33 = vpop.f32.mrb[8].mxu1  ;;  %1738 = vmax.xlane.f32.xlu0 %v1737_v32 }
 0x47b   : > { %v6420_v34 = vadd.f32 %v1584_v33, %v1107_v4  ;;  %v4443_v35 = vpop.f32.mrb[9].mxu1 }
 0x47c   : > { %v1587_v36 = vpop.f32.mrb[10].mxu1 }
 0x47d   : > { %v4444_v37 = vpop.f32.mrb[11].mxu1  ;;  %v1740_v38 = vsel %vm1359_vm3, %v6420_v34, -inf }
 0x47e   : > { %v1630_v39 = vpop.f32.mrb[20].mxu0  ;;  %1741 = vmax.xlane.f32.xlu1 %v1740_v38 }
 0x47f   : > { %v6424_v40 = vadd.f32 %v1630_v39, %v1107_v4  ;;  %v4449_v41 = vpop.f32.mrb[21].mxu0 }
 0x480   : > { %v1633_v42 = vpop.f32.mrb[22].mxu0 }
 0x481   : > { %v4450_v43 = vpop.f32.mrb[23].mxu0  ;;  %v1743_v44 = vsel %vm1359_vm3, %v6424_v40, -inf }
 0x482   : > { %v1676_v45 = vpop.f32.mrb[12].mxu1  ;;  %1744 = vmax.xlane.f32.xlu0 %v1743_v44 }
 0x483   : > { %v1677_v46 = vadd.f32 %v1676_v45, %v1107_v4  ;;  %v4455_v47 = vpop.f32.mrb[13].mxu1 }
 0x484   : > { %v1679_v49 = vpop.f32.mrb[14].mxu1 }
 0x485   : > { %v4456_v50 = vpop.f32.mrb[15].mxu1  ;;  %v1746_v51 = vsel %vm1359_vm3, %v1677_v46, -inf }
 0x486   : > { %v1722_v52 = vpop.f32.mrb[24].mxu0  ;;  %1747 = vmax.xlane.f32.xlu1 %v1746_v51 }
 0x487   : > { %v1723_v53 = vadd.f32 %v1722_v52, %v1107_v4  ;;  %v4461_v54 = vpop.f32.mrb[25].mxu0 }
 0x488   : > { %v1725_v55 = vpop.f32.mrb[26].mxu0 }
 0x489   : > { %v4462_v56 = vpop.f32.mrb[27].mxu0  ;;  %v1749_v57 = vsel %vm1359_vm3, %v1723_v53, -inf }
 0x48a   : > { %1750 = vmax.xlane.f32.xlu0 %v1749_v57 }
 0x490   : > { %v1730_v0 = vpop.xlane.xlu0 %1729 }
 0x491   : > { %v1752_v2 = vsub.f32 %v6413_v8, %v1730_v0 }
 0x492   : > { %v1733_v58 = vpop.xlane.xlu1 %1732 }
 0x493   : > { %v1753_v60 = vsub.f32 %v1447_v12, %v1733_v58  ;;  %v1760_v4 = vmul.f32 1.442695, %v1752_v2 }
 0x495   : > { %v1762_v61 = vmul.f32 1.442695, %v1753_v60 }
 0x497   : > { %4863 = vpow2.f32 %v1762_v61  ;;  %1347 = vrot.lane.b32.xlu1 %v6391_v59, %s5552_s20 }
 0x498   : > { %4865 = vpow2.f32 %v1760_v4 }
 0x4a1   : > { %v4864_v63 = vpop.eup %4863 }
 0x4a2   : > { %v1779_v1 = vsel %vm1359_vm3, %v4864_v63, 0.0  ;;  %v4866_v7 = vpop.eup %4865 }
 0x4a3   : > { %1780 = vadd.xlane.f32.xlu0 %v1779_v1  ;;  %v1776_v9 = vsel %vm1359_vm3, %v4866_v7, 0.0 }
 0x4bb   : > { %1777 = vadd.xlane.f32.xlu1 %v1776_v9 }
 0x503   : > { %v1736_v10 = vpop.xlane.xlu0 %1735 }
 0x504   : > { %v1754_v11 = vsub.f32 %v1493_v22, %v1736_v10 }
 0x506   : > { %v1764_v12 = vmul.f32 1.442695, %v1754_v11 }
 0x507   : > { %v1739_v13 = vpop.xlane.xlu0 %1738 }
 0x508   : > { %4867 = vpow2.f32 %v1764_v12  ;;  %v1755_v15 = vsub.f32 %v1539_v28, %v1739_v13 }
 0x50a   : > { %v1766_v16 = vmul.f32 1.442695, %v1755_v15 }
 0x50b   : > { %v1742_v24 = vpop.xlane.xlu1 %1741 }
 0x50c   : > { %4869 = vpow2.f32 %v1766_v16  ;;  %v1756_v25 = vsub.f32 %v6420_v34, %v1742_v24 }
 0x50e   : > { %v1768_v28 = vmul.f32 1.442695, %v1756_v25 }
 0x50f   : > { %v1745_v21 = vpop.xlane.xlu0 %1744 }
 0x510   : > { %v1757_v26 = vsub.f32 %v6424_v40, %v1745_v21 }
 0x512   : > { %v6435_v17 = vpop.eup %4867  ;;  %v1770_v31 = vmul.f32 1.442695, %v1757_v26 }
 0x513   : > { %v1782_v18 = vsel %vm1359_vm3, %v6435_v17, 0.0  ;;  %v1748_v27 = vpop.xlane.xlu1 %1747 }
 0x514   : > { %1783 = vadd.xlane.f32.xlu1 %v1782_v18  ;;  %v1758_v29 = vsub.f32 %v1677_v46, %v1748_v27 }
 0x516   : > { %v6439_v8 = vpop.eup %4869  ;;  %v1772_v35 = vmul.f32 1.442695, %v1758_v29 }
 0x517   : > { %v1785_v19 = vsel %vm1359_vm3, %v6439_v8, 0.0  ;;  %v1751_v22 = vpop.xlane.xlu0 %1750  ;;  %v1348_v34 = vpop.permute.xlu1 %1347 }
 0x518   : > { %1786 = vadd.xlane.f32.xlu0 %v1785_v19  ;;  %v1759_v32 = vsub.f32 %v1723_v53, %v1751_v22  ;;  %v1921_v51 = vsel %vm1827_vm4, %v1348_v34, 0 }
 0x51a   : > { %v1774_v37 = vmul.f32 1.442695, %v1759_v32 }
 0x525   : > { %1351 = vrot.lane.b32.xlu1 %v6391_v59, %s5553_s4 }
 0x529   : > { %1353 = vrot.lane.b32.xlu1 %v6398_v62, %s5553_s4 }
 0x52e   : > { %1349 = vrot.lane.b32.xlu0 %v6398_v62, %s5552_s20 }
 0x530   : > { %v1781_v23 = vpop.xlane.xlu0 %1780 }
 0x531   : > { %4871 = vrcp.f32 %v1781_v23 }
 0x532   : > { %4873 = vpow2.f32 %v1768_v28 }
 0x533   : > { %4875 = vpow2.f32 %v1770_v31 }
 0x534   : > { %4877 = vpow2.f32 %v1772_v35 }
 0x535   : > { %4879 = vpow2.f32 %v1774_v37 }
 0x53b   : > { %v4872_v30 = vpop.eup %4871 }
 0x53c   : > { %v1809_v33 = vmul.f32 %v4872_v30, %v4864_v63  ;;  %v4874_v38 = vpop.eup %4873 }
 0x53d   : > { %v4876_v40 = vpop.eup %4875  ;;  %v1788_v42 = vsel %vm1359_vm3, %v4874_v38, 0.0 }
 0x53e   : > { %v1817_v36 = vpack.c.bf16 %v1809_v33, %v1809_v33  ;;  %v6454_v41 = vpop.eup %4877  ;;  %v1791_v43 = vsel %vm1359_vm3, %v4876_v40, 0.0 }
 0x53f   : > { %v6458_v44 = vpop.eup %4879  ;;  %v1794_v45 = vsel %vm1359_vm3, %v6454_v41, 0.0 }
 0x540   : > { %4472 = vmatmul.mubr.msk.bf16.vlgmr.msra.gmra.mrb[28].mxu0 %vm1359_vm3, %v1817_v36  ;;  %v1797_v46 = vsel %vm1359_vm3, %v6458_v44, 0.0 }
 0x541   : > { %4483 = vmatprep.mubr.msk.bf16.mxu0 %vm5551_vm1, %v5550_v3 }
 0x548   : > { %v1778_v39 = vpop.xlane.xlu1 %1777 }
 0x549   : > { %4881 = vrcp.f32 %v1778_v39 }
 0x54d   : > { %1789 = vadd.xlane.f32.xlu1 %v1788_v42  ;;  %1792 = vadd.xlane.f32.xlu0 %v1791_v43 }
 0x551   : > { %1795 = vadd.xlane.f32.xlu1 %v1794_v45  ;;  %1798 = vadd.xlane.f32.xlu0 %v1797_v46  ;;  %v4844_v46 = vld [vmem:[%s892_s5 + $0x8] sm:$0xff]  }
 0x553   : > { %v4882_v47 = vpop.eup %4881 }
 0x554   : > { %v1808_v49 = vmul.f32 %v4882_v47, %v4866_v7 }
 0x556   : > { %v1816_v50 = vpack.c.bf16 %v1808_v49, %v1808_v49 }
 0x558   : > { %4466 = vmatmul.mubr.msk.bf16.vlgmr.msra.gmra.mrb[16].mxu1 %vm1359_vm3, %v1816_v50 }
 0x559   : > { %4476 = vmatpush3.bf16.msra.mxu1 %v1921_v51  ;;  %4477 = vmatprep.mubr.msk.bf16.mxu1 %vm5551_vm1, %v5550_v3 }
 0x55a   : > { %4487 = vmatprep.subr.bf16.mxu1 %v5550_v3 }
 0x562   : > { %1357 = vrot.lane.b32.xlu1 %v6398_v62, %s5554_s2 }
 0x567   : > { %1355 = vrot.lane.b32.xlu0 %v6391_v59, %s5554_s2 }
 0x5a1   : > { %v1784_v52 = vpop.xlane.xlu1 %1783 }
 0x5a2   : > { %4883 = vrcp.f32 %v1784_v52 }
 0x5a5   : > { %v1787_v53 = vpop.xlane.xlu0 %1786  ;;  %v1352_v57 = vpop.permute.xlu1 %1351 }
 0x5a6   : > { %4885 = vrcp.f32 %v1787_v53  ;;  %v2013_v62 = vsel %vm1827_vm4, %v1352_v57, 0 }
 0x5a9   : > { %v1350_v54 = vpop.permute.xlu0 %1349  ;;  %v1354_v63 = vpop.permute.xlu1 %1353 }
 0x5aa   : > { %v1967_v55 = vsel %vm1827_vm4, %v1350_v54, 0  ;;  %v2059_v1 = vsel %vm1827_vm4, %v1354_v63, 0 }
 0x5ab   : > { %4482 = vmatpush3.bf16.msra.mxu0 %v1967_v55 }
 0x5ac   : > { %v4884_v56 = vpop.eup %4883  ;;  %4493 = vmatprep.subr.bf16.mxu0 %v5550_v3 }
 0x5ad   : > { %v1810_v58 = vmul.f32 %v4884_v56, %v6435_v17 }
 0x5af   : > { %v1818_v60 = vpack.c.bf16 %v1810_v58, %v1810_v58 }
 0x5b0   : > { %v4886_v61 = vpop.eup %4885 }
 0x5b1   : > { %v1811_v59 = vmul.f32 %v4886_v61, %v6439_v8  ;;  %4478 = vmatmul.mubr.msk.bf16.vlgmr.msra.gmra.mrb[20].mxu1 %vm1359_vm3, %v1818_v60 }
 0x5b2   : > { %4488 = vmatpush3.bf16.msra.mxu1 %v2013_v62  ;;  %4489 = vmatprep.mubr.msk.bf16.mxu1 %vm5551_vm1, %v5550_v3 }
 0x5b3   : > { %v1819_v0 = vpack.c.bf16 %v1811_v59, %v1811_v59  ;;  %4499 = vmatprep.subr.bf16.mxu1 %v5550_v3 }
 0x5b5   : > { %4484 = vmatmul.mubr.msk.bf16.vlgmr.msra.gmra.mrb[32].mxu0 %vm1359_vm3, %v1819_v0 }
 0x5b6   : > { %4494 = vmatpush3.bf16.msra.mxu0 %v2059_v1  ;;  %4495 = vmatprep.mubr.msk.bf16.mxu0 %vm5551_vm1, %v5550_v3 }
 0x5b7   : > { %4505 = vmatprep.subr.bf16.mxu0 %v5550_v3 }
 0x5da   : > { %v1790_v2 = vpop.xlane.xlu1 %1789  ;;  %v1793_v4 = vpop.xlane.xlu0 %1792 }
 0x5db   : > { %4887 = vrcp.f32 %v1790_v2 }
 0x5dc   : > { %4889 = vrcp.f32 %v1793_v4 }
 0x5de   : > { %v1796_v7 = vpop.xlane.xlu1 %1795  ;;  %v1799_v9 = vpop.xlane.xlu0 %1798 }
 0x5df   : > { %4891 = vrcp.f32 %v1796_v7 }
 0x5e0   : > { %4893 = vrcp.f32 %v1799_v9 }
 0x5e2   : > { %v1356_v15 = vpop.permute.xlu0 %1355  ;;  %v1358_v16 = vpop.permute.xlu1 %1357 }
 0x5e3   : > { %v2105_v21 = vsel %vm1827_vm4, %v1356_v15, 0  ;;  %v2151_v22 = vsel %vm1827_vm4, %v1358_v16, 0 }
 0x5e5   : > { %v4888_v10 = vpop.eup %4887 }
 0x5e6   : > { %v4890_v11 = vpop.eup %4889  ;;  %v1812_v12 = vmul.f32 %v4888_v10, %v4874_v38 }
 0x5e7   : > { %v1813_v13 = vmul.f32 %v4890_v11, %v4876_v40 }
 0x5e8   : > { %v1820_v17 = vpack.c.bf16 %v1812_v12, %v1812_v12 }
 0x5e9   : > { %v4892_v18 = vpop.eup %4891  ;;  %v1821_v8 = vpack.c.bf16 %v1813_v13, %v1813_v13 }
 0x5ea   : > { %v4894_v19 = vpop.eup %4893  ;;  %4490 = vmatmul.mubr.msk.bf16.vlgmr.msra.gmra.mrb[24].mxu1 %vm1359_vm3, %v1820_v17  ;;  %v1814_v23 = vmul.f32 %v4892_v18, %v6454_v41 }
 0x5eb   : > { %4496 = vmatmul.mubr.msk.bf16.vlgmr.msra.gmra.mrb[36].mxu0 %vm1359_vm3, %v1821_v8  ;;  %4500 = vmatpush3.bf16.msra.mxu1 %v2105_v21  ;;  %v1815_v24 = vmul.f32 %v4894_v19, %v6458_v44  ;;  %v4843_v44 = vld [vmem:[%s892_s5] sm:$0xff]   ;;  %s5557_s5 = smov 24  }
 0x5ec   : > { %4506 = vmatpush3.bf16.msra.mxu0 %v2151_v22  ;;  %4501 = vmatprep.mubr.msk.bf16.mxu1 %vm5551_vm1, %v5550_v3  ;;  %v1822_v25 = vpack.c.bf16 %v1814_v23, %v1814_v23  ;;  %v4223_v22 = vld [vmem:[%s900_s27] ss:$0 sm:$0xff]  ;;  %s3782_s27 = sshll.u32 %s5558_s30, 4  ;;  %s3783_s27 = int_to_ptr.vmem [resolvable:$true] %s3782_s27 }
 0x5ed   : > { %4507 = vmatprep.mubr.msk.bf16.mxu0 %vm5551_vm1, %v5550_v3  ;;  %4511 = vmatprep.subr.bf16.mxu1 %v5550_v3  ;;  %v1823_v26 = vpack.c.bf16 %v1815_v24, %v1815_v24  ;;  %p5422_p11 = scmp.lt.s32.totalorder %s3783_s27, %s3783_s27 }
 0x5ee   : > { %4519 = vmatprep.subr.bf16.mxu0 %v5550_v3 }
 0x5f2   : > { %4502 = vmatmul.mubr.msk.bf16.vlgmr.msra.gmra.mrb[28].mxu1 %vm1359_vm3, %v1822_v25 }
 0x5f3   : > { %4508 = vmatmul.mubr.msk.bf16.vlgmr.msra.gmra.mrb[40].mxu0 %vm1359_vm3, %v1823_v26  ;;  %4515 = vmatprep.mubr.msk.bf16.mxu1 %vm5551_vm1, %v5550_v3 }
 0x5f4   : > { %4523 = vmatprep.mubr.msk.bf16.mxu0 %vm5551_vm1, %v5550_v3  ;;  %4512 = vmatpush3.bf16.msra.mxu1 %v4843_v44  ;;  %v1113_v44 = vld [vmem:[#allocation5 + $0x8] sm:$0xff] }
 0x5f5   : > { %4513 = vmatprep.subr.bf16.mxu1 %v5550_v3 }
 0x5f8   : > { %4514 = vmatpush3.bf16.msra.mxu1 %v4844_v46  ;;  %v1114_v46 = vld [vmem:[#allocation5 + $0x10] sm:$0xff] }
 0x613   : > { %v1911_v27 = vpop.f32.mrb[28].mxu0 }
 0x614   : > { %v4473_v28 = vpop.f32.mrb[29].mxu0 }
 0x615   : > { %v1914_v29 = vpop.f32.mrb[30].mxu0 }
 0x616   : > { %v4474_v30 = vpop.f32.mrb[31].mxu0 }
 0x62b   : > { %v1865_v31 = vpop.f32.mrb[16].mxu1 }
 0x62c   : > { %v4467_v32 = vpop.f32.mrb[17].mxu1 }
 0x62d   : > { %v1868_v33 = vpop.f32.mrb[18].mxu1 }
 0x62e   : > { %v4468_v35 = vpop.f32.mrb[19].mxu1  ;;  %v4845_v33 = vld [vmem:[%s6264_s1 + $0x10] sm:$0xff]  }
 0x62f   : > { %4527 = vmatprep.subr.bf16.mxu1 %v4845_v33 }
 0x684   : > { %v1957_v36 = vpop.f32.mrb[20].mxu1 }
 0x685   : > { %v4479_v37 = vpop.f32.mrb[21].mxu1 }
 0x686   : > { %v1960_v34 = vpop.f32.mrb[22].mxu1 }
 0x687   : > { %v4480_v38 = vpop.f32.mrb[23].mxu1 }
 0x688   : > { %v2003_v39 = vpop.f32.mrb[32].mxu0 }
 0x689   : > { %v4807_v40 = vpack.i.bf16 %v2003_v39, %v1957_v36  ;;  %v4485_v41 = vpop.f32.mrb[33].mxu0 }
 0x68a   : > { %v2006_v42 = vpop.f32.mrb[34].mxu0 }
 0x68b   : > { %4808 = vrot.lane.b32.xlu0 %v4807_v40, %s5555_s24  ;;  %v4486_v43 = vpop.f32.mrb[35].mxu0  ;;  %v4846_v42 = vld [vmem:[%s6264_s1 + $0x18] sm:$0xff]  }
 0x68c   : > { %v1112_v43 = vld [vmem:[#allocation5] sm:$0xff] }
 0x6bd   : > { %v2049_v45 = vpop.f32.mrb[24].mxu1 }
 0x6be   : > { %v2095_v47 = vpop.f32.mrb[36].mxu0  ;;  %v4491_v49 = vpop.f32.mrb[25].mxu1 }
 0x6bf   : > { %v4812_v50 = vpack.i.bf16 %v2095_v47, %v2049_v45  ;;  %v4497_v51 = vpop.f32.mrb[37].mxu0  ;;  %v2052_v52 = vpop.f32.mrb[26].mxu1  ;;  %v2348_v45 = vpack.c.bf16 %v1113_v44, %v1112_v43  ;;  %v1115_v47 = vld [vmem:[#allocation5 + $0x18] sm:$0xff] }
 0x6c0   : > { %v2098_v53 = vpop.f32.mrb[38].mxu0  ;;  %v4492_v54 = vpop.f32.mrb[27].mxu1  ;;  %v2349_v49 = vpack.c.bf16 %v1115_v47, %v1114_v46  ;;  %v4848_v51 = vld [vmem:[%s6264_s1 + $0x8] sm:$0xff]   ;;  %v4849_v52 = vld [vmem:[%s6264_s1 + $0x20] sm:$0xff]  }
 0x6c1   : > { %4813 = vrot.lane.b32.xlu1 %v4812_v50, %s5556_s9  ;;  %v4498_v55 = vpop.f32.mrb[39].mxu0  ;;  %v4847_v50 = vld [vmem:[%s6264_s1] sm:$0xff]  }
 0x6c2   : > { %4520 = vmatpush3.bf16.msra.mxu0 %v4847_v50 }
 0x6c3   : > { %4521 = vmatprep.subr.bf16.mxu0 %v5550_v3 }
 0x6c5   : > { %v2141_v56 = vpop.f32.mrb[28].mxu1 }
 0x6c6   : > { %v2187_v57 = vpop.f32.mrb[40].mxu0  ;;  %v4503_v58 = vpop.f32.mrb[29].mxu1  ;;  %4522 = vmatpush3.bf16.msra.mxu0 %v4848_v51 }
 0x6c7   : > { %v4817_v60 = vpack.i.bf16 %v2187_v57, %v2141_v56  ;;  %v4509_v61 = vpop.f32.mrb[41].mxu0  ;;  %v2144_v62 = vpop.f32.mrb[30].mxu1  ;;  %4535 = vmatprep.subr.bf16.mxu0 %v4849_v52 }
 0x6c8   : > { %v2190_v59 = vpop.f32.mrb[42].mxu0  ;;  %v4504_v63 = vpop.f32.mrb[31].mxu1 }
 0x6c9   : > { %v4510_v0 = vpop.f32.mrb[43].mxu0  ;;  %4818 = vrot.lane.b32.xlu0 %v4817_v60, %s5557_s5  ;;  %v6541_v60 = vld [vmem:[%s978_s23] sm:$0x7]  ;;  %v6547_v59 = vld [vmem:[%s987_s19] sm:$0x7] }
 0x6ca   : > { %v2325_v61 = vrot.slane %v6541_v60, %v6335_v14 }
 0x6fd   : > { %v4809_v1 = vpop.permute.xlu0 %4808 }
 0x6fe   : > { %v4811_v4 = vunpack.i.h.bf16 %v4809_v1  ;;  %v4810_v7 = vunpack.i.l.bf16 %v4809_v1 }
 0x700   : > { %v2218_v12 = vsel %vm1359_vm3, %v1911_v27, %v4811_v4  ;;  %v2217_v13 = vsel %vm1359_vm3, %v1865_v31, %v4810_v7  ;;  %v2331_v4 = vrot.slane %v6547_v59, %v6335_v14 }
 0x733   : > { %v4814_v2 = vpop.permute.xlu1 %4813 }
 0x734   : > { %v4816_v9 = vunpack.i.h.bf16 %v4814_v2  ;;  %v4815_v10 = vunpack.i.l.bf16 %v4814_v2 }
 0x736   : > { %v2220_v17 = vsel %vm2219_vm5, %v2217_v13, %v4815_v10  ;;  %v2221_v18 = vsel %vm2219_vm5, %v2218_v12, %v4816_v9  ;;  %v4850_v12 = vld [vmem:[%s6264_s1 + $0x28] sm:$0xff]   ;;  %v2346_v13 = vld [vmem:[%s918_s14] sm:$0x7]  ;;  %s5415_s1 = scalar_lea.vmem %s3783_s27, 256 }
 0x737   : > { %p5416_p7 = scmp.ne.s32.totalorder %s3783_s27, %s5415_s1  ;;  %p5423_p12 = scmp.lt.s32.totalorder %s5415_s1, %s5415_s1 }
 0x739   : > { %p5417_p9 = pnand %p5416_p7, %p4740_p5  ;;  %p5424_p2 = por %p5423_p12, %p5422_p11 }
 0x73b   : > { %v4819_v11 = vpop.permute.xlu0 %4818  ;;  %p5418_p3 = pneg %p5417_p9 }
 0x73c   : > { %v4821_v15 = vunpack.i.h.bf16 %v4819_v11  ;;  %v4820_v16 = vunpack.i.l.bf16 %v4819_v11 }
 0x73d   : > { %p5425_p10 = pnand %p5424_p2, %p5418_p3 }
 0x73e   : > { %v2223_v8 = vsel %vm2222_vm6, %v2220_v17, %v4820_v16  ;;  %v2224_v19 = vsel %vm2222_vm6, %v2221_v18, %v4821_v15  ;;  %v2414_v15 = vrot.slane %v2346_v13, %v6343_v20 }
 0x73f   : > { %v2225_v21 = vpack.c.bf16 %v2224_v19, %v2223_v8 }
 0x741   : > { %4516 = vmatmul.mubr.msk.bf16.vlgmr.msra.gmra.mrb[32].mxu1 %vm1146_vm2, %v2225_v21 }
 0x742   : > { %4528 = vmatpush3.bf16.msra.mxu1 %v4845_v33  ;;  %4531 = vmatprep.mubr.msk.bf16.mxu1 %vm1146_vm2, %v2348_v45 }
 0x743   : > { %4529 = vmatprep.subr.bf16.mxu1 %v4846_v42 }
 0x746   : > { %4530 = vmatpush3.bf16.msra.mxu1 %v4846_v42 }
 0x747   : > { %4543 = vmatprep.subr.bf16.mxu1 %v5550_v3 }
 0x749   : > { %4532 = vmatmul.mubr.msk.bf16.vlgmr.msra.gmra.mrb[36].mxu1 %vm1146_vm2, %v2349_v49 }
 0x74a   : > { %4545 = vmatprep.mubr.msk.bf16.mxu1 %vm5551_vm1, %v5550_v3 }
 0x814   : > { %v2286_v23 = vpop.f32.mrb[32].mxu1 }
 0x815   : > { %v2287_v24 = vadd.f32 %v4223_v22, %v2286_v23  ;;  %v4517_v25 = vpop.f32.mrb[33].mxu1 }
 0x816   : > { %v2289_v26 = vpop.f32.mrb[34].mxu1 }
 0x817   : > { %v2290_v27 = vadd.f32 %v4223_v22, %v2289_v26  ;;  %v4518_v28 = vpop.f32.mrb[35].mxu1  ;;  %v2293_v29 = vadd.f32 %v2287_v24, %v6308_v5 }
 0x818   : > { %v2353_v28 = vrot.slane %v2346_v13, %v6335_v14  ;;  %v2487_v14 = vrot.slane %v2346_v13, %v6373_v48 }
 0x819   : > { %v2295_v30 = vsel %vm1146_vm2, %v2293_v29, 0.0  ;;  %v2294_v31 = vadd.f32 %v2290_v27, %v6310_v6 }
 0x81a   : > { %2296 = vadd.xlane.f32.xlu1 %v2295_v30 }
 0x81b   : > { %v2298_v32 = vsel %vm1146_vm2, %v2294_v31, 0.0 }
 0x81c   : > { %2299 = vadd.xlane.f32.xlu0 %v2298_v32  ;;  %v4533_v16 = vpop.f32.mrb[36].mxu1 }
 0x81d   : > { %v2476_v17 = vadd.f32 %v4533_v16, %v2414_v15  ;;  %v2467_v18 = vpop.f32.mrb[37].mxu1 }
 0x81e   : > { %v2468_v8 = vadd.f32 %v2467_v18, %v2414_v15  ;;  %v4534_v19 = vpop.f32.mrb[38].mxu1 }
 0x81f   : > { %v2479_v21 = vadd.f32 %v4534_v19, %v2414_v15  ;;  %v2470_v22 = vpop.f32.mrb[39].mxu1 }
 0x820   : > { %v2471_v23 = vadd.f32 %v2470_v22, %v2414_v15 }
 0x821   : > { %v2483_v24 = vpack.c.bf16 %v2479_v21, %v2476_v17 }
 0x822   : > { %v2482_v25 = vpack.c.bf16 %v2471_v23, %v2468_v8 }
 0x823   : > { %v2652_v26 = vsel %vm1359_vm3, %v2483_v24, 0 }
 0x824   : > { %v2606_v27 = vsel %vm1359_vm3, %v2482_v25, 0 }
 0x825   : > { %4544 = vmatpush3.bf16.xpose.msra.mxu1 %v2606_v27 }
 0x826   : > { %4555 = vmatprep.subr.bf16.mxu1 %v5550_v3 }
 0x8a7   : > { %v2297_v35 = vpop.xlane.xlu1 %2296 }
 0x8a8   : > { %v2302_v36 = vmul.f32 0.03125, %v2297_v35 }
 0x8a9   : > { %v2300_v37 = vpop.xlane.xlu0 %2299 }
 0x8aa   : > { %v2304_v34 = vsub.f32 %v2293_v29, %v2302_v36  ;;  %v2303_v38 = vmul.f32 0.03125, %v2300_v37 }
 0x8ac   : > { %v2305_v39 = vsub.f32 %v2294_v31, %v2303_v38  ;;  %v2306_v40 = vmul.f32 %v2304_v34, %v2304_v34 }
 0x8ae   : > { %v2308_v5 = vsel %vm1146_vm2, %v2306_v40, 0.0  ;;  %v2307_v41 = vmul.f32 %v2305_v39, %v2305_v39 }
 0x8af   : > { %2309 = vadd.xlane.f32.xlu0 %v2308_v5 }
 0x8b0   : > { %v2311_v6 = vsel %vm1146_vm2, %v2307_v41, 0.0 }
 0x8b1   : > { %2312 = vadd.xlane.f32.xlu1 %v2311_v6 }
 0x8c2   : > { %2572 = vrot.lane.b32.xlu1 %v2483_v24, %s5552_s20 }
 0x8c5   : > { %2570 = vrot.lane.b32.xlu0 %v2482_v25, %s5552_s20 }
 0x8c6   : > { %2574 = vrot.lane.b32.xlu1 %v2482_v25, %s5553_s4 }
 0x8c9   : > { %2576 = vrot.lane.b32.xlu0 %v2483_v24, %s5553_s4 }
 0x93c   : > { %v2310_v53 = vpop.xlane.xlu0 %2309 }
 0x93d   : > { %v2314_v54 = vmul.f32 0.03125, %v2310_v53 }
 0x93e   : > { %v2313_v55 = vpop.xlane.xlu1 %2312 }
 0x93f   : > { %v2316_v56 = vadd.f32 1e-05, %v2314_v54  ;;  %v2315_v57 = vmul.f32 0.03125, %v2313_v55 }
 0x940   : > { %v2571_v33 = vpop.permute.xlu0 %2570 }
 0x941   : > { %4895 = vrsqrt.f32 %v2316_v56  ;;  %v2317_v58 = vadd.f32 1e-05, %v2315_v57 }
 0x942   : > { %v2573_v38 = vpop.permute.xlu1 %2572 }
 0x943   : > { %4897 = vrsqrt.f32 %v2317_v58  ;;  %v2744_v40 = vsel %vm1359_vm3, %v2573_v38, 0 }
 0x944   : > { %v2577_v51 = vpop.permute.xlu0 %2576 }
 0x945   : > { %v2836_v55 = vsel %vm1359_vm3, %v2577_v51, 0 }
 0x946   : > { %v2575_v50 = vpop.permute.xlu1 %2574 }
 0x947   : > { %v2790_v53 = vsel %vm1359_vm3, %v2575_v50, 0 }
 0x94b   : > { %v4896_v62 = vpop.eup %4895 }
 0x94c   : > { %v2320_v63 = vmul.f32 %v4896_v62, %v2304_v34  ;;  %v2698_v34 = vsel %vm1359_vm3, %v2571_v33, 0 }
 0x94d   : > { %v4898_v0 = vpop.eup %4897 }
 0x94e   : > { %v2326_v1 = vmul.f32 %v2325_v61, %v2320_v63  ;;  %v2321_v2 = vmul.f32 %v4898_v0, %v2305_v39 }
 0x950   : > { %v2327_v7 = vmul.f32 %v2325_v61, %v2321_v2  ;;  %v6551_v9 = vadd.f32 %v2331_v4, %v2326_v1 }
 0x952   : > { %v6553_v10 = vadd.f32 %v2331_v4, %v2327_v7 }
 0x954   : > { %v2347_v11 = vpack.c.bf16 %v6553_v10, %v6551_v9 }
 0x956   : > { %4524 = vmatmul.mubr.msk.bf16.vlgmr.msra.gmra.mrb[44].mxu0 %vm1146_vm2, %v2347_v11 }
 0x957   : > { %4536 = vmatpush3.bf16.msra.mxu0 %v4849_v52  ;;  %4539 = vmatprep.mubr.msk.bf16.mxu0 %vm1146_vm2, %v2348_v45 }
 0x958   : > { %4537 = vmatprep.subr.bf16.mxu0 %v4850_v12 }
 0x95b   : > { %4538 = vmatpush3.bf16.msra.mxu0 %v4850_v12 }
 0x95c   : > { %4549 = vmatprep.subr.bf16.mxu0 %v5550_v3 }
 0x95e   : > { %4540 = vmatmul.mubr.msk.bf16.vlgmr.msra.gmra.mrb[48].mxu0 %vm1146_vm2, %v2349_v49 }
 0x95f   : > { %4551 = vmatprep.mubr.msk.bf16.mxu0 %vm5551_vm1, %v5550_v3 }
 0x964   : > { %4550 = vmatpush3.bf16.xpose.msra.mxu0 %v2652_v26 }
 0x965   : > { %4561 = vmatprep.subr.bf16.mxu0 %v5550_v3 }
 0xa29   : > { %v2403_v29 = vpop.f32.mrb[44].mxu0 }
 0xa2a   : > { %v2404_v30 = vadd.f32 %v2403_v29, %v2353_v28  ;;  %v4525_v31 = vpop.f32.mrb[45].mxu0 }
 0xa2b   : > { %v2406_v32 = vpop.f32.mrb[46].mxu0 }
 0xa2c   : > { %v4287_v35 = vpack.c.bf16 %v2404_v30, %v2404_v30  ;;  %v2407_v36 = vadd.f32 %v2406_v32, %v2353_v28  ;;  %v4526_v37 = vpop.f32.mrb[47].mxu0 }
 0xa2e   : > { %v4288_v39 = vpack.c.bf16 %v2407_v36, %v2407_v36  ;;  %2556 = vrot.lane.b32.xlu1 %v4287_v35, %s5552_s20  ;;  %4546 = vmatmul.mubr.msk.bf16.vlgmr.msra.gmra.mrb[40].mxu1 %vm1359_vm3, %v4287_v35 }
 0xa2f   : > { %4556 = vmatpush3.bf16.xpose.msra.mxu1 %v2698_v34  ;;  %4557 = vmatprep.mubr.msk.bf16.mxu1 %vm5551_vm1, %v5550_v3 }
 0xa30   : > { %4552 = vmatmul.mubr.msk.bf16.vlgmr.msra.gmra.mrb[52].mxu0 %vm1359_vm3, %v4288_v39  ;;  %2558 = vrot.lane.b32.xlu0 %v4288_v39, %s5552_s20 }
 0xa31   : > { %4562 = vmatpush3.bf16.xpose.msra.mxu0 %v2744_v40  ;;  %4567 = vmatprep.subr.bf16.mxu1 %v5550_v3  ;;  %v4541_v5 = vpop.f32.mrb[48].mxu0 }
 0xa32   : > { %2560 = vrot.lane.b32.xlu1 %v4287_v35, %s5553_s4  ;;  %4563 = vmatprep.mubr.msk.bf16.mxu0 %vm5551_vm1, %v5550_v3  ;;  %v2534_v41 = vpop.f32.mrb[49].mxu0  ;;  %v2543_v6 = vadd.f32 %v4541_v5, %v2487_v14 }
 0xa33   : > { %4573 = vmatprep.subr.bf16.mxu0 %v5550_v3  ;;  %v4542_v42 = vpop.f32.mrb[50].mxu0  ;;  %v2535_v45 = vadd.f32 %v2534_v41, %v2487_v14 }
 0xa34   : > { %2562 = vrot.lane.b32.xlu0 %v4288_v39, %s5553_s4  ;;  %v2546_v43 = vadd.f32 %v4542_v42, %v2487_v14  ;;  %v2537_v46 = vpop.f32.mrb[51].mxu0 }
 0xa35   : > { %v2538_v47 = vadd.f32 %v2537_v46, %v2487_v14 }
 0xa36   : > { %2578 = vrot.lane.b32.xlu1 %v2482_v25, %s5554_s2  ;;  %v6593_v44 = vpack.c.bf16 %v2546_v43, %v2543_v6 }
 0xa37   : > { %v6597_v49 = vpack.c.bf16 %v2538_v47, %v2535_v45 }
 0xa38   : > { %2580 = vrot.lane.b32.xlu0 %v2483_v24, %s5554_s2 }
 0xa3a   : > { %2564 = vrot.lane.b32.xlu1 %v4287_v35, %s5554_s2 }
 0xa3c   : > { %2566 = vrot.lane.b32.xlu0 %v4288_v39, %s5554_s2 }
 0xaa0   : > { %v2557_v52 = vpop.permute.xlu1 %2556 }
 0xaa1   : > { %4558 = vmatmul.mubr.msk.bf16.vlgmr.msra.gmra.mrb[44].mxu1 %vm1359_vm3, %v2557_v52 }
 0xaa2   : > { %4568 = vmatpush3.bf16.xpose.msra.mxu1 %v2790_v53  ;;  %v2559_v54 = vpop.permute.xlu0 %2558  ;;  %4569 = vmatprep.mubr.msk.bf16.mxu1 %vm5551_vm1, %v5550_v3 }
 0xaa3   : > { %4564 = vmatmul.mubr.msk.bf16.vlgmr.msra.gmra.mrb[56].mxu0 %vm1359_vm3, %v2559_v54  ;;  %4579 = vmatprep.subr.bf16.mxu1 %v5550_v3 }
 0xaa4   : > { %4574 = vmatpush3.bf16.xpose.msra.mxu0 %v2836_v55  ;;  %v2561_v56 = vpop.permute.xlu1 %2560  ;;  %4575 = vmatprep.mubr.msk.bf16.mxu0 %vm5551_vm1, %v5550_v3 }
 0xaa5   : > { %4585 = vmatprep.subr.bf16.mxu0 %v5550_v3 }
 0xaa6   : > { %v2563_v57 = vpop.permute.xlu0 %2562 }
 0xaa8   : > { %v2579_v58 = vpop.permute.xlu1 %2578 }
 0xaa9   : > { %v2882_v61 = vsel %vm1359_vm3, %v2579_v58, 0  ;;  %4570 = vmatmul.mubr.msk.bf16.vlgmr.msra.gmra.mrb[48].mxu1 %vm1359_vm3, %v2561_v56 }
 0xaaa   : > { %v2581_v62 = vpop.permute.xlu0 %2580  ;;  %4580 = vmatpush3.bf16.xpose.msra.mxu1 %v2882_v61  ;;  %4581 = vmatprep.mubr.msk.bf16.mxu1 %vm5551_vm1, %v5550_v3 }
 0xaab   : > { %v2928_v63 = vsel %vm1359_vm3, %v2581_v62, 0  ;;  %4576 = vmatmul.mubr.msk.bf16.vlgmr.msra.gmra.mrb[60].mxu0 %vm1359_vm3, %v2563_v57  ;;  %4591 = vmatprep.subr.bf16.mxu1 %v5550_v3 }
 0xaac   : > { %4586 = vmatpush3.bf16.xpose.msra.mxu0 %v2928_v63  ;;  %4587 = vmatprep.mubr.msk.bf16.mxu0 %vm5551_vm1, %v5550_v3  ;;  %v2565_v0 = vpop.permute.xlu1 %2564 }
 0xaad   : > { %4597 = vmatprep.subr.bf16.mxu0 %v5550_v3 }
 0xaae   : > { %v2567_v1 = vpop.permute.xlu0 %2566 }
 0xab1   : > { %4582 = vmatmul.mubr.msk.bf16.vlgmr.msra.gmra.mrb[52].mxu1 %vm1359_vm3, %v2565_v0 }
 0xab2   : > { %4592 = vmatpush3.bf16.msra.mxu1 %v6597_v49  ;;  %4593 = vmatprep.mubr.msk.bf16.mxu1 %vm5551_vm1, %v5550_v3 }
 0xab3   : > { %4588 = vmatmul.mubr.msk.bf16.vlgmr.msra.gmra.mrb[64].mxu0 %vm1359_vm3, %v2567_v1  ;;  %4603 = vmatprep.subr.bf16.mxu1 %v5550_v3 }
 0xab4   : > { %4598 = vmatpush3.bf16.msra.mxu0 %v6593_v44  ;;  %4599 = vmatprep.mubr.msk.bf16.mxu0 %vm5551_vm1, %v5550_v3 }
 0xab5   : > { %4609 = vmatprep.subr.bf16.mxu0 %v5550_v3 }
 0xb01   : > { %v2642_v2 = vpop.f32.mrb[40].mxu1 }
 0xb02   : > { %v4547_v4 = vpop.f32.mrb[41].mxu1  ;;  %v2970_v7 = vsel %vm2219_vm5, %v2642_v2, -inf }
 0xb03   : > { %v2688_v11 = vpop.f32.mrb[52].mxu0  ;;  %2971 = vmax.xlane.f32.xlu1 %v2970_v7  ;;  %v2645_v12 = vpop.f32.mrb[42].mxu1 }
 0xb04   : > { %v4548_v13 = vpop.f32.mrb[43].mxu1  ;;  %v4553_v15 = vpop.f32.mrb[53].mxu0  ;;  %v2973_v16 = vsel %vm2219_vm5, %v2688_v11, -inf }
 0xb05   : > { %v2691_v17 = vpop.f32.mrb[54].mxu0  ;;  %2974 = vmax.xlane.f32.xlu0 %v2973_v16 }
 0xb06   : > { %v4554_v18 = vpop.f32.mrb[55].mxu0 }
 0xb74   : > { %v2734_v8 = vpop.f32.mrb[44].mxu1 }
 0xb75   : > { %v4559_v19 = vpop.f32.mrb[45].mxu1  ;;  %v2976_v21 = vsel %vm2219_vm5, %v2734_v8, -inf }
 0xb76   : > { %v2780_v22 = vpop.f32.mrb[56].mxu0  ;;  %2977 = vmax.xlane.f32.xlu0 %v2976_v21  ;;  %v2737_v23 = vpop.f32.mrb[46].mxu1 }
 0xb77   : > { %v4560_v24 = vpop.f32.mrb[47].mxu1  ;;  %v4565_v25 = vpop.f32.mrb[57].mxu0  ;;  %v2979_v26 = vsel %vm2219_vm5, %v2780_v22, -inf }
 0xb78   : > { %v2783_v27 = vpop.f32.mrb[58].mxu0  ;;  %2980 = vmax.xlane.f32.xlu1 %v2979_v26 }
 0xb79   : > { %v4566_v28 = vpop.f32.mrb[59].mxu0 }
 0xb7c   : > { %v6633_v29 = vpop.f32.mrb[48].mxu1 }
 0xb7d   : > { %v4571_v30 = vpop.f32.mrb[49].mxu1  ;;  %v2982_v31 = vsel %vm2219_vm5, %v6633_v29, -inf }
 0xb7e   : > { %v2872_v32 = vpop.f32.mrb[60].mxu0  ;;  %2983 = vmax.xlane.f32.xlu0 %v2982_v31  ;;  %v2829_v33 = vpop.f32.mrb[50].mxu1 }
 0xb7f   : > { %v4572_v35 = vpop.f32.mrb[51].mxu1  ;;  %v4577_v36 = vpop.f32.mrb[61].mxu0  ;;  %v2985_v37 = vsel %vm2219_vm5, %v2872_v32, -inf }
 0xb80   : > { %v2875_v34 = vpop.f32.mrb[62].mxu0  ;;  %2986 = vmax.xlane.f32.xlu1 %v2985_v37 }
 0xb81   : > { %v4578_v38 = vpop.f32.mrb[63].mxu0 }
 0xb84   : > { %v6638_v39 = vpop.f32.mrb[52].mxu1 }
 0xb85   : > { %v4583_v40 = vpop.f32.mrb[53].mxu1  ;;  %v2988_v14 = vsel %vm2219_vm5, %v6638_v39, -inf }
 0xb86   : > { %v2964_v5 = vpop.f32.mrb[64].mxu0  ;;  %2989 = vmax.xlane.f32.xlu0 %v2988_v14  ;;  %v2921_v41 = vpop.f32.mrb[54].mxu1 }
 0xb87   : > { %v4584_v6 = vpop.f32.mrb[55].mxu1  ;;  %v4589_v42 = vpop.f32.mrb[65].mxu0  ;;  %v2991_v43 = vsel %vm2219_vm5, %v2964_v5, -inf }
 0xb88   : > { %v2967_v45 = vpop.f32.mrb[66].mxu0  ;;  %2992 = vmax.xlane.f32.xlu1 %v2991_v43 }
 0xb89   : > { %v4590_v46 = vpop.f32.mrb[67].mxu0 }
 0xb90   : > { %v2972_v47 = vpop.xlane.xlu1 %2971 }
 0xb91   : > { %v2994_v51 = vsub.f32 %v2642_v2, %v2972_v47 }
 0xb92   : > { %v2975_v50 = vpop.xlane.xlu0 %2974 }
 0xb93   : > { %v2995_v52 = vsub.f32 %v2688_v11, %v2975_v50  ;;  %v3002_v53 = vmul.f32 1.442695, %v2994_v51 }
 0xb95   : > { %v3004_v54 = vmul.f32 1.442695, %v2995_v52  ;;  %4899 = vpow2.f32 %v3002_v53 }
 0xb97   : > { %4901 = vpow2.f32 %v3004_v54 }
 0xb99   : > { %2586 = vrot.lane.b32.xlu1 %v6593_v44, %s5552_s20 }
 0xb9c   : > { %2584 = vrot.lane.b32.xlu0 %v6597_v49, %s5552_s20 }
 0xb9f   : > { %v4900_v55 = vpop.eup %4899 }
 0xba0   : > { %v3018_v57 = vsel %vm2219_vm5, %v4900_v55, 0.0 }
 0xba1   : > { %v4902_v56 = vpop.eup %4901 }
 0xba2   : > { %v3021_v58 = vsel %vm2219_vm5, %v4902_v56, 0.0 }
 0xbbb   : > { %3019 = vadd.xlane.f32.xlu0 %v3018_v57 }
 0xbbd   : > { %3022 = vadd.xlane.f32.xlu1 %v3021_v58 }
 0xbce   : > { %2590 = vrot.lane.b32.xlu1 %v6597_v49, %s5553_s4 }
 0xc03   : > { %v2978_v61 = vpop.xlane.xlu0 %2977 }
 0xc04   : > { %v2996_v62 = vsub.f32 %v2734_v8, %v2978_v61 }
 0xc05   : > { %v2981_v63 = vpop.xlane.xlu1 %2980 }
 0xc06   : > { %v3006_v0 = vmul.f32 1.442695, %v2996_v62  ;;  %v2997_v1 = vsub.f32 %v2780_v22, %v2981_v63 }
 0xc08   : > { %4903 = vpow2.f32 %v3006_v0  ;;  %v3008_v2 = vmul.f32 1.442695, %v2997_v1 }
 0xc0a   : > { %4905 = vpow2.f32 %v3008_v2 }
 0xc0b   : > { %v2984_v24 = vpop.xlane.xlu0 %2983 }
 0xc0c   : > { %v2998_v25 = vsub.f32 %v6633_v29, %v2984_v24 }
 0xc0d   : > { %v2987_v4 = vpop.xlane.xlu1 %2986 }
 0xc0e   : > { %v2999_v7 = vsub.f32 %v2872_v32, %v2987_v4  ;;  %v3010_v27 = vmul.f32 1.442695, %v2998_v25 }
 0xc10   : > { %v3012_v11 = vmul.f32 1.442695, %v2999_v7 }
 0xc12   : > { %v4904_v12 = vpop.eup %4903  ;;  %4907 = vpow2.f32 %v3012_v11 }
 0xc13   : > { %v3024_v13 = vsel %vm2219_vm5, %v4904_v12, 0.0  ;;  %v2990_v26 = vpop.xlane.xlu0 %2989 }
 0xc14   : > { %v4906_v15 = vpop.eup %4905  ;;  %3025 = vadd.xlane.f32.xlu0 %v3024_v13  ;;  %v3000_v28 = vsub.f32 %v6638_v39, %v2990_v26 }
 0xc15   : > { %v2993_v16 = vpop.xlane.xlu1 %2992  ;;  %v3027_v17 = vsel %vm2219_vm5, %v4906_v15, 0.0 }
 0xc16   : > { %v3001_v18 = vsub.f32 %v2964_v5, %v2993_v16  ;;  %3028 = vadd.xlane.f32.xlu1 %v3027_v17  ;;  %v3014_v30 = vmul.f32 1.442695, %v3000_v28 }
 0xc17   : > { %v2585_v31 = vpop.permute.xlu0 %2584 }
 0xc18   : > { %v3016_v8 = vmul.f32 1.442695, %v3001_v18 }
 0xc19   : > { %v2587_v33 = vpop.permute.xlu1 %2586 }
 0xc1a   : > { %4909 = vpow2.f32 %v3016_v8 }
 0xc1b   : > { %4911 = vpow2.f32 %v3010_v27 }
 0xc1c   : > { %v6653_v19 = vpop.eup %4907  ;;  %4913 = vpow2.f32 %v3014_v30 }
 0xc1d   : > { %v3033_v21 = vsel %vm2219_vm5, %v6653_v19, 0.0 }
 0xc1e   : > { %3034 = vadd.xlane.f32.xlu1 %v3033_v21 }
 0xc24   : > { %v6657_v22 = vpop.eup %4909 }
 0xc25   : > { %v3039_v23 = vsel %vm2219_vm5, %v6657_v22, 0.0  ;;  %v6667_v32 = vpop.eup %4911 }
 0xc26   : > { %3040 = vadd.xlane.f32.xlu1 %v3039_v23  ;;  %v3030_v36 = vsel %vm2219_vm5, %v6667_v32, 0.0  ;;  %v6671_v37 = vpop.eup %4913 }
 0xc2a   : > { %2592 = vrot.lane.b32.xlu0 %v6593_v44, %s5553_s4 }
 0xc37   : > { %2596 = vrot.lane.b32.xlu1 %v6597_v49, %s5554_s2  ;;  %v3036_v49 = vsel %vm2219_vm5, %v6671_v37, 0.0 }
 0xc48   : > { %v3020_v35 = vpop.xlane.xlu0 %3019 }
 0xc49   : > { %4915 = vrcp.f32 %v3020_v35  ;;  %3031 = vadd.xlane.f32.xlu0 %v3030_v36 }
 0xc4a   : > { %v3023_v29 = vpop.xlane.xlu1 %3022 }
 0xc4b   : > { %4917 = vrcp.f32 %v3023_v29  ;;  %v4851_v29 = vld [vmem:[%s927_s8] sm:$0xff]  }
 0xc4d   : > { %3037 = vadd.xlane.f32.xlu0 %v3036_v49 }
 0xc4e   : > { %v2591_v41 = vpop.permute.xlu1 %2590 }
 0xc53   : > { %v4916_v34 = vpop.eup %4915 }
 0xc54   : > { %v3050_v38 = vmul.f32 %v4916_v34, %v4900_v55 }
 0xc55   : > { %v4918_v39 = vpop.eup %4917 }
 0xc56   : > { %v3051_v40 = vmul.f32 %v4918_v39, %v4902_v56  ;;  %v3058_v14 = vpack.c.bf16 %v3050_v38, %v3050_v38 }
 0xc58   : > { %4594 = vmatmul.mubr.msk.bf16.vlgmr.msra.gmra.mrb[56].mxu1 %vm2219_vm5, %v3058_v14  ;;  %v3059_v5 = vpack.c.bf16 %v3051_v40, %v3051_v40  ;;  %v4852_v40 = vld [vmem:[%s927_s8 + $0x8] sm:$0xff]  }
 0xc59   : > { %4604 = vmatpush3.bf16.msra.mxu1 %v2585_v31  ;;  %4605 = vmatprep.mubr.msk.bf16.mxu1 %vm5551_vm1, %v5550_v3 }
 0xc5a   : > { %4600 = vmatmul.mubr.msk.bf16.vlgmr.msra.gmra.mrb[68].mxu0 %vm2219_vm5, %v3059_v5  ;;  %4615 = vmatprep.subr.bf16.mxu1 %v5550_v3 }
 0xc5b   : > { %4610 = vmatpush3.bf16.msra.mxu0 %v2587_v33  ;;  %4611 = vmatprep.mubr.msk.bf16.mxu0 %vm5551_vm1, %v5550_v3 }
 0xc5c   : > { %4621 = vmatprep.subr.bf16.mxu0 %v5550_v3 }
 0xc63   : > { %2598 = vrot.lane.b32.xlu0 %v6593_v44, %s5554_s2 }
 0xca1   : > { %v3026_v6 = vpop.xlane.xlu0 %3025 }
 0xca2   : > { %4919 = vrcp.f32 %v3026_v6 }
 0xca3   : > { %v3029_v42 = vpop.xlane.xlu1 %3028 }
 0xca4   : > { %4921 = vrcp.f32 %v3029_v42 }
 0xca5   : > { %v2593_v44 = vpop.permute.xlu0 %2592 }
 0xcab   : > { %v3035_v43 = vpop.xlane.xlu1 %3034 }
 0xcac   : > { %v4920_v45 = vpop.eup %4919  ;;  %4923 = vrcp.f32 %v3035_v43 }
 0xcad   : > { %v3052_v46 = vmul.f32 %v4920_v45, %v4904_v12 }
 0xcae   : > { %v4922_v47 = vpop.eup %4921 }
 0xcaf   : > { %v3053_v50 = vmul.f32 %v4922_v47, %v4906_v15  ;;  %v3060_v51 = vpack.c.bf16 %v3052_v46, %v3052_v46 }
 0xcb1   : > { %4606 = vmatmul.mubr.msk.bf16.vlgmr.msra.gmra.mrb[60].mxu1 %vm2219_vm5, %v3060_v51  ;;  %v3061_v52 = vpack.c.bf16 %v3053_v50, %v3053_v50 }
 0xcb2   : > { %4616 = vmatpush3.bf16.msra.mxu1 %v2591_v41  ;;  %4617 = vmatprep.mubr.msk.bf16.mxu1 %vm5551_vm1, %v5550_v3 }
 0xcb3   : > { %4612 = vmatmul.mubr.msk.bf16.vlgmr.msra.gmra.mrb[72].mxu0 %vm2219_vm5, %v3061_v52  ;;  %4627 = vmatprep.subr.bf16.mxu1 %v5550_v3  ;;  %v3041_v56 = vpop.xlane.xlu1 %3040 }
 0xcb4   : > { %4622 = vmatpush3.bf16.msra.mxu0 %v2593_v44  ;;  %4623 = vmatprep.mubr.msk.bf16.mxu0 %vm5551_vm1, %v5550_v3  ;;  %4925 = vrcp.f32 %v3041_v56 }
 0xcb5   : > { %4633 = vmatprep.subr.bf16.mxu0 %v5550_v3 }
 0xcb6   : > { %v4924_v53 = vpop.eup %4923 }
 0xcb7   : > { %v3055_v54 = vmul.f32 %v4924_v53, %v6653_v19  ;;  %v2597_v11 = vpop.permute.xlu1 %2596 }
 0xcb9   : > { %v3063_v55 = vpack.c.bf16 %v3055_v54, %v3055_v54 }
 0xcbb   : > { %4624 = vmatmul.mubr.msk.bf16.vlgmr.msra.gmra.mrb[76].mxu0 %vm2219_vm5, %v3063_v55 }
 0xcbc   : > { %4635 = vmatprep.mubr.msk.bf16.mxu0 %vm5551_vm1, %v5550_v3 }
 0xcbe   : > { %v4926_v58 = vpop.eup %4925 }
 0xcbf   : > { %v3057_v62 = vmul.f32 %v4926_v58, %v6657_v22 }
 0xcc1   : > { %v3065_v0 = vpack.c.bf16 %v3057_v62, %v3057_v62 }
 0xcd6   : > { %v3032_v57 = vpop.xlane.xlu0 %3031 }
 0xcd7   : > { %4927 = vrcp.f32 %v3032_v57 }
 0xcda   : > { %v3038_v61 = vpop.xlane.xlu0 %3037 }
 0xcdb   : > { %4929 = vrcp.f32 %v3038_v61 }
 0xcde   : > { %v2599_v63 = vpop.permute.xlu0 %2598 }
 0xcdf   : > { %4634 = vmatpush3.bf16.msra.mxu0 %v2599_v63 }
 0xce0   : > { %4647 = vmatprep.subr.bf16.mxu0 %v5550_v3 }
 0xce1   : > { %v4928_v1 = vpop.eup %4927 }
 0xce2   : > { %v3054_v2 = vmul.f32 %v4928_v1, %v6667_v32  ;;  %4636 = vmatmul.mubr.msk.bf16.vlgmr.msra.gmra.mrb[80].mxu0 %vm2219_vm5, %v3065_v0 }
 0xce3   : > { %4651 = vmatprep.mubr.msk.bf16.mxu0 %vm5551_vm1, %v5550_v3 }
 0xce4   : > { %v3062_v4 = vpack.c.bf16 %v3054_v2, %v3054_v2 }
 0xce5   : > { %v4930_v7 = vpop.eup %4929 }
 0xce6   : > { %4618 = vmatmul.mubr.msk.bf16.vlgmr.msra.gmra.mrb[64].mxu1 %vm2219_vm5, %v3062_v4  ;;  %v3056_v12 = vmul.f32 %v4930_v7, %v6671_v37  ;;  %v4256_v7 = vld [vmem:[%s935_s6] ss:$0 sm:$0xff] }
 0xce7   : > { %4628 = vmatpush3.bf16.msra.mxu1 %v2597_v11  ;;  %4629 = vmatprep.mubr.msk.bf16.mxu1 %vm5551_vm1, %v5550_v3 }
 0xce8   : > { %4639 = vmatprep.subr.bf16.mxu1 %v5550_v3  ;;  %v3064_v13 = vpack.c.bf16 %v3056_v12, %v3056_v12 }
 0xcee   : > { %4630 = vmatmul.mubr.msk.bf16.vlgmr.msra.gmra.mrb[68].mxu1 %vm2219_vm5, %v3064_v13 }
 0xcef   : > { %4643 = vmatprep.mubr.msk.bf16.mxu1 %vm5551_vm1, %v5550_v3  ;;  %4640 = vmatpush3.bf16.msra.mxu1 %v4851_v29  ;;  %v4859_v29 = vld [vmem:[%s6287_s25 + $0x20] sm:$0xff]  }
 0xcf0   : > { %4641 = vmatprep.subr.bf16.mxu1 %v5550_v3 }
 0xcf3   : > { %4642 = vmatpush3.bf16.msra.mxu1 %v4852_v40 }
 0xcf4   : > { %4655 = vmatprep.subr.bf16.mxu1 %v5550_v3 }
 0xd2b   : > { %v3103_v15 = vpop.f32.mrb[56].mxu1 }
 0xd2c   : > { %v4595_v16 = vpop.f32.mrb[57].mxu1 }
 0xd2d   : > { %v3106_v17 = vpop.f32.mrb[58].mxu1  ;;  %v3146_v18 = vpop.f32.mrb[68].mxu0 }
 0xd2e   : > { %v4596_v8 = vpop.f32.mrb[59].mxu1  ;;  %v4601_v19 = vpop.f32.mrb[69].mxu0 }
 0xd2f   : > { %v3149_v21 = vpop.f32.mrb[70].mxu0 }
 0xd30   : > { %v4602_v22 = vpop.f32.mrb[71].mxu0 }
 0xd84   : > { %v3189_v23 = vpop.f32.mrb[60].mxu1 }
 0xd85   : > { %v4607_v24 = vpop.f32.mrb[61].mxu1 }
 0xd86   : > { %v3192_v25 = vpop.f32.mrb[62].mxu1  ;;  %v3232_v26 = vpop.f32.mrb[72].mxu0 }
 0xd87   : > { %v4822_v27 = vpack.i.bf16 %v3232_v26, %v3189_v23  ;;  %v4608_v28 = vpop.f32.mrb[63].mxu1  ;;  %v4613_v30 = vpop.f32.mrb[73].mxu0 }
 0xd88   : > { %v3235_v31 = vpop.f32.mrb[74].mxu0 }
 0xd89   : > { %v4614_v32 = vpop.f32.mrb[75].mxu0  ;;  %4823 = vrot.lane.b32.xlu1 %v4822_v27, %s5555_s24  ;;  %v4853_v31 = vld [vmem:[%s944_s21] sm:$0xff]  }
 0xd8a   : > { %4648 = vmatpush3.bf16.msra.mxu0 %v4853_v31  ;;  %v4854_v32 = vld [vmem:[%s944_s21 + $0x8] sm:$0xff]  }
 0xd8b   : > { %4649 = vmatprep.subr.bf16.mxu0 %v5550_v3 }
 0xd8e   : > { %v3318_v33 = vpop.f32.mrb[76].mxu0  ;;  %4650 = vmatpush3.bf16.msra.mxu0 %v4854_v32 }
 0xd8f   : > { %v4625_v35 = vpop.f32.mrb[77].mxu0 }
 0xd90   : > { %v3321_v36 = vpop.f32.mrb[78].mxu0  ;;  %v4856_v35 = vld [vmem:[%s6287_s25 + $0x8] sm:$0xff]  }
 0xd91   : > { %v4626_v37 = vpop.f32.mrb[79].mxu0  ;;  %v4857_v36 = vld [vmem:[%s6287_s25 + $0x10] sm:$0xff]  }
 0xd92   : > { %v4858_v37 = vld [vmem:[%s6287_s25 + $0x18] sm:$0xff]  }
 0xdb5   : > { %v3404_v49 = vpop.f32.mrb[80].mxu0 }
 0xdb6   : > { %v4637_v34 = vpop.f32.mrb[81].mxu0 }
 0xdb7   : > { %v3407_v38 = vpop.f32.mrb[82].mxu0 }
 0xdb8   : > { %v4638_v39 = vpop.f32.mrb[83].mxu0 }
 0xdb9   : > { %v3275_v14 = vpop.f32.mrb[64].mxu1 }
 0xdba   : > { %v4827_v5 = vpack.i.bf16 %v3318_v33, %v3275_v14  ;;  %v4619_v41 = vpop.f32.mrb[65].mxu1  ;;  %v4855_v33 = vld [vmem:[%s6287_s25] sm:$0xff]  }
 0xdbb   : > { %v3278_v6 = vpop.f32.mrb[66].mxu1 }
 0xdbc   : > { %4828 = vrot.lane.b32.xlu0 %v4827_v5, %s5556_s9  ;;  %v4620_v42 = vpop.f32.mrb[67].mxu1  ;;  %v3539_v6 = vrot.slane %v6541_v60, %v6343_v20 }
 0xdc1   : > { %v3361_v43 = vpop.f32.mrb[68].mxu1 }
 0xdc2   : > { %v4832_v45 = vpack.i.bf16 %v3404_v49, %v3361_v43  ;;  %v4631_v46 = vpop.f32.mrb[69].mxu1  ;;  %v4860_v49 = vld [vmem:[%s6287_s25 + $0x28] sm:$0xff]  }
 0xdc3   : > { %v3364_v47 = vpop.f32.mrb[70].mxu1 }
 0xdc4   : > { %4833 = vrot.lane.b32.xlu1 %v4832_v45, %s5557_s5  ;;  %v4632_v50 = vpop.f32.mrb[71].mxu1  ;;  %v3545_v47 = vrot.slane %v6547_v59, %v6343_v20 }
 0xdfb   : > { %v4824_v51 = vpop.permute.xlu1 %4823 }
 0xdfc   : > { %v4826_v44 = vunpack.i.h.bf16 %v4824_v51  ;;  %v4825_v53 = vunpack.i.l.bf16 %v4824_v51 }
 0xdfe   : > { %v3435_v57 = vsel %vm1359_vm3, %v3146_v18, %v4826_v44  ;;  %v3434_v58 = vsel %vm1359_vm3, %v3103_v15, %v4825_v53  ;;  %v4861_v53 = vld [vmem:[%s6287_s25 + $0x30] sm:$0xff]  }
 0xe2e   : > { %v4829_v52 = vpop.permute.xlu0 %4828 }
 0xe2f   : > { %v4831_v54 = vunpack.i.h.bf16 %v4829_v52  ;;  %v4830_v55 = vunpack.i.l.bf16 %v4829_v52 }
 0xe31   : > { %v3437_v63 = vsel %vm2219_vm5, %v3435_v57, %v4831_v54  ;;  %v3436_v0 = vsel %vm2219_vm5, %v3434_v58, %v4830_v55  ;;  %v4862_v54 = vld [vmem:[%s6287_s25 + $0x38] sm:$0xff]   ;;  %v4260_v55 = vld [vmem:[%s6930_s7] ss:$0 sm:$0xff] }
 0xe36   : > { %v4834_v56 = vpop.permute.xlu1 %4833 }
 0xe37   : > { %v4836_v61 = vunpack.i.h.bf16 %v4834_v56  ;;  %v4835_v62 = vunpack.i.l.bf16 %v4834_v56 }
 0xe39   : > { %v3439_v1 = vsel %vm2222_vm6, %v3437_v63, %v4836_v61  ;;  %v3438_v2 = vsel %vm2222_vm6, %v3436_v0, %v4835_v62 }
 0xe3a   : > { %v3440_v4 = vpack.c.bf16 %v3439_v1, %v3438_v2  ;;  %v4264_v2 = vld [vmem:[%s969_s12] ss:$0 sm:$0xff] }
 0xe3c   : > { %4644 = vmatmul.mubr.msk.bf16.vlgmr.msra.gmra.mrb[72].mxu1 %vm1146_vm2, %v3440_v4 }
 0xe3d   : > { %4671 = vmatprep.mubr.msk.bf16.mxu1 %vm5551_vm1, %v5550_v3  ;;  %4656 = vmatpush3.bf16.msra.mxu1 %v4855_v33 }
 0xe3e   : > { %4657 = vmatprep.subr.bf16.mxu1 %v5550_v3 }
 0xe41   : > { %4658 = vmatpush3.bf16.msra.mxu1 %v4856_v35  ;;  %v3762_v35 = vrot.slane %v6541_v60, %v6373_v48 }
 0xe42   : > { %4659 = vmatprep.subr.bf16.mxu1 %v5550_v3 }
 0xe45   : > { %4660 = vmatpush3.bf16.msra.mxu1 %v4857_v36 }
 0xe46   : > { %4661 = vmatprep.subr.bf16.mxu1 %v5550_v3 }
 0xe49   : > { %4662 = vmatpush3.bf16.msra.mxu1 %v4858_v37 }
 0xe4a   : > { %4663 = vmatprep.subr.bf16.mxu1 %v5550_v3 }
 0xe4d   : > { %4664 = vmatpush3.bf16.msra.mxu1 %v4859_v29  ;;  %v3768_v29 = vrot.slane %v6547_v59, %v6373_v48 }
 0xe4e   : > { %4665 = vmatprep.subr.bf16.mxu1 %v5550_v3 }
 0xe51   : > { %4666 = vmatpush3.bf16.msra.mxu1 %v4860_v49 }
 0xe52   : > { %4667 = vmatprep.subr.bf16.mxu1 %v5550_v3 }
 0xe55   : > { %4668 = vmatpush3.bf16.msra.mxu1 %v4861_v53 }
 0xe56   : > { %4669 = vmatprep.subr.bf16.mxu1 %v5550_v3 }
 0xe59   : > { %4670 = vmatpush3.bf16.msra.mxu1 %v4862_v54 }
 0xf0f   : > { %v3501_v11 = vpop.f32.mrb[72].mxu1 }
 0xf10   : > { %v3502_v12 = vadd.f32 %v4256_v7, %v3501_v11  ;;  %v4645_v13 = vpop.f32.mrb[73].mxu1 }
 0xf11   : > { %v3504_v15 = vpop.f32.mrb[74].mxu1 }
 0xf12   : > { %v3505_v16 = vadd.f32 %v4256_v7, %v3504_v15  ;;  %v4646_v17 = vpop.f32.mrb[75].mxu1  ;;  %v3508_v18 = vadd.f32 %v3502_v12, %v6551_v9 }
 0xf14   : > { %v3510_v8 = vsel %vm1146_vm2, %v3508_v18, 0.0  ;;  %v3509_v19 = vadd.f32 %v3505_v16, %v6553_v10 }
 0xf15   : > { %3511 = vadd.xlane.f32.xlu0 %v3510_v8 }
 0xf16   : > { %v3513_v21 = vsel %vm1146_vm2, %v3509_v19, 0.0 }
 0xf17   : > { %3514 = vadd.xlane.f32.xlu1 %v3513_v21 }
 0xfa2   : > { %v3512_v22 = vpop.xlane.xlu0 %3511 }
 0xfa3   : > { %v3516_v23 = vmul.f32 0.03125, %v3512_v22 }
 0xfa4   : > { %v3515_v24 = vpop.xlane.xlu1 %3514 }
 0xfa5   : > { %v3518_v25 = vsub.f32 %v3508_v18, %v3516_v23  ;;  %v3517_v26 = vmul.f32 0.03125, %v3515_v24 }
 0xfa7   : > { %v3519_v27 = vsub.f32 %v3509_v19, %v3517_v26  ;;  %v3520_v28 = vmul.f32 %v3518_v25, %v3518_v25 }
 0xfa9   : > { %v3522_v9 = vsel %vm1146_vm2, %v3520_v28, 0.0  ;;  %v3521_v30 = vmul.f32 %v3519_v27, %v3519_v27 }
 0xfaa   : > { %3523 = vadd.xlane.f32.xlu0 %v3522_v9 }
 0xfab   : > { %v3525_v10 = vsel %vm1146_vm2, %v3521_v30, 0.0 }
 0xfae   : > { %3526 = vadd.xlane.f32.xlu0 %v3525_v10 }
0x1037   : > { %v3524_v34 = vpop.xlane.xlu0 %3523 }
0x1038   : > { %v3528_v38 = vmul.f32 0.03125, %v3524_v34 }
0x103a   : > { %v3530_v39 = vadd.f32 1e-05, %v3528_v38 }
0x103b   : > { %v3527_v40 = vpop.xlane.xlu0 %3526 }
0x103c   : > { %4931 = vrsqrt.f32 %v3530_v39  ;;  %v3529_v14 = vmul.f32 0.03125, %v3527_v40 }
0x103e   : > { %v3531_v5 = vadd.f32 1e-05, %v3529_v14 }
0x1040   : > { %4933 = vrsqrt.f32 %v3531_v5 }
0x1046   : > { %v4932_v41 = vpop.eup %4931 }
0x1047   : > { %v3534_v42 = vmul.f32 %v4932_v41, %v3518_v25 }
0x1049   : > { %v3540_v45 = vmul.f32 %v3539_v6, %v3534_v42 }
0x104a   : > { %v4934_v43 = vpop.eup %4933 }
0x104b   : > { %v3535_v46 = vmul.f32 %v4934_v43, %v3519_v27  ;;  %v3546_v51 = vadd.f32 %v3545_v47, %v3540_v45 }
0x104d   : > { %v3541_v50 = vmul.f32 %v3539_v6, %v3535_v46 }
0x104f   : > { %v3547_v52 = vadd.f32 %v3545_v47, %v3541_v50 }
0x1051   : > { %v3548_v44 = vpack.c.bf16 %v3547_v52, %v3546_v51 }
0x1053   : > { %4652 = vmatmul.mubr.msk.bf16.vlgmr.msra.gmra.mrb[84].mxu0 %vm1146_vm2, %v3548_v44 }
0x1126   : > { %v3609_v56 = vpop.f32.mrb[84].mxu0 }
0x1127   : > { %v3610_v57 = vadd.f32 %v4260_v55, %v3609_v56  ;;  %v4653_v58 = vpop.f32.mrb[85].mxu0 }
0x1128   : > { %v3612_v61 = vpop.f32.mrb[86].mxu0 }
0x1129   : > { %v3613_v20 = vadd.f32 %v4260_v55, %v3612_v61  ;;  %v4654_v62 = vpop.f32.mrb[87].mxu0  ;;  %v3616_v63 = vmax.f32 %v3610_v57, 0.0 }
0x112b   : > { %v3617_v0 = vmax.f32 %v3613_v20, 0.0 }
0x112d   : > { %v3618_v1 = vpack.c.bf16 %v3617_v0, %v3616_v63 }
0x112f   : > { %4672 = vmatmul.mubr.bf16.vlgmr.msra.gmra.mrb[76].mxu1 %v3618_v1 }
0x1202   : > { %v3724_v4 = vpop.f32.mrb[76].mxu1 }
0x1203   : > { %v3725_v7 = vadd.f32 %v4264_v2, %v3724_v4  ;;  %v4673_v11 = vpop.f32.mrb[77].mxu1 }
0x1204   : > { %v3727_v3 = vpop.f32.mrb[78].mxu1 }
0x1205   : > { %v3728_v12 = vadd.f32 %v4264_v2, %v3727_v3  ;;  %v4674_v13 = vpop.f32.mrb[79].mxu1  ;;  %v3731_v15 = vadd.f32 %v3725_v7, %v3546_v51 }
0x1207   : > { %v3733_v16 = vsel %vm1146_vm2, %v3731_v15, 0.0  ;;  %v3732_v17 = vadd.f32 %v3728_v12, %v3547_v52 }
0x1208   : > { %3734 = vadd.xlane.f32.xlu1 %v3733_v16 }
0x1209   : > { %v3736_v18 = vsel %vm1146_vm2, %v3732_v17, 0.0 }
0x120a   : > { %3737 = vadd.xlane.f32.xlu0 %v3736_v18 }
0x1295   : > { %v3735_v8 = vpop.xlane.xlu1 %3734 }
0x1296   : > { %v3739_v19 = vmul.f32 0.03125, %v3735_v8 }
0x1297   : > { %v3738_v21 = vpop.xlane.xlu0 %3737 }
0x1298   : > { %v3741_v22 = vsub.f32 %v3731_v15, %v3739_v19  ;;  %v3740_v23 = vmul.f32 0.03125, %v3738_v21 }
0x129a   : > { %v3742_v24 = vsub.f32 %v3732_v17, %v3740_v23  ;;  %v3743_v25 = vmul.f32 %v3741_v22, %v3741_v22 }
0x129c   : > { %v3745_v26 = vsel %vm1146_vm2, %v3743_v25, 0.0  ;;  %v3744_v27 = vmul.f32 %v3742_v24, %v3742_v24 }
0x129d   : > { %3746 = vadd.xlane.f32.xlu1 %v3745_v26 }
0x129e   : > { %v3748_v28 = vsel %vm1146_vm2, %v3744_v27, 0.0 }
0x129f   : > { %3749 = vadd.xlane.f32.xlu0 %v3748_v28 }
0x132a   : > { %v3747_v9 = vpop.xlane.xlu1 %3746 }
0x132b   : > { %v3751_v30 = vmul.f32 0.03125, %v3747_v9 }
0x132c   : > { %v3750_v10 = vpop.xlane.xlu0 %3749 }
0x132d   : > { %v3753_v31 = vadd.f32 1e-05, %v3751_v30  ;;  %v3752_v32 = vmul.f32 0.03125, %v3750_v10 }
0x132f   : > { %4935 = vrsqrt.f32 %v3753_v31  ;;  %v3754_v33 = vadd.f32 1e-05, %v3752_v32 }
0x1331   : > { %4937 = vrsqrt.f32 %v3754_v33 }
0x1339   : > { %v4936_v36 = vpop.eup %4935 }
0x133a   : > { %v3757_v37 = vmul.f32 %v4936_v36, %v3741_v22 }
0x133b   : > { %v4938_v49 = vpop.eup %4937 }
0x133c   : > { %v3763_v34 = vmul.f32 %v3762_v35, %v3757_v37  ;;  %v3758_v38 = vmul.f32 %v4938_v49, %v3742_v24 }
0x133e   : > { %v3764_v39 = vmul.f32 %v3762_v35, %v3758_v38  ;;  %v3769_v40 = vadd.f32 %v3768_v29, %v3763_v34 }
0x1340   : > { %v3770_v14 = vadd.f32 %v3768_v29, %v3764_v39  ;;  %3771 = vst.msk [vmem:[#allocation29] sm:$0xff] %vm1146_vm2, %v3769_v40 }
0x1342   : > { %3772 = vst.msk [vmem:[#allocation29 + $0x8] sm:$0xff] %vm1146_vm2, %v3770_v14 }
0x1343   : > { %5428 = shalt.err (!%p5425_p10)
}
0x1344   : > { %s6932_s6 = sld [smem:[#allocation61_spill]] }
0x134a   : > { %s5429_s21 = scalar_lea.hbm %s6932_s6, 256 }
0x134b   : > { %p5430_p8 = scmp.ne.s32.totalorder %s6932_s6, %s5429_s21  ;;  %p5435_p1 = scmp.lt.u32.totalorder %s5429_s21, %s6932_s6 }
0x134d   : > { %p5431_p13 = pnand %p5430_p8, %p4740_p5 }
0x134f   : > { %p5432_p4 = pneg %p5431_p13 }
0x1351   : > { %p5437_p0 = pnand %p5435_p1, %p5432_p4 }
0x1353   : > { %5440 = shalt.err (!%p5437_p0)
}
0x1354   : > { %s5559_s23 = smov 128  }
0x1355   : > { %4721 = dma.vmem_to_hbm [thread:$0]  (%p4740_p5), %s3783_s27, 256, %s6932_s6, [#allocation4], %s5559_s23, %s5559_s23, %s5555_s24  }
0x1356   : > { %5502 = dma.done.wait (%p4740_p5), [#allocation4], 256  }
0x1357   : > { %5504 = vsyncadd (%p4740_p5), [#allocation4], 4294967040 }
0x1358 PF: > { %s51_s29 = sadd.s32 1, %s5527_s29   ;;  %s6933_s24 = sld [smem:[#allocation40_spill]] }
0x1359   : > { %p48_p6 = scmp.ge.s32.totalorder %s51_s29, 4   ;;  %s6934_s4 = sld [smem:[#allocation45_spill]] }
0x135a   : > { %s6935_s2 = sld [smem:[#allocation43_spill]]  ;;  %s6936_s25 = smov %s5515_s26 }
0x135b   : > { %s6938_s27 = smov %s5523_s28  ;;  %50 = sbr.rel (!%p48_p6) target bundleno = 35 (0x23), region = 300 }
0x135f   : > { %s6937_s26 = smov %s6934_s4 }
0x1360   : > { %s6939_s28 = smov %s6935_s2 }
0x1362   :  { %3798 = vsyncpa [#allocation3], 1 }
0x1363   :  { %3800 = vsyncpa [#allocation3 + $0x1], 1 }
0x1364   :  { %3801 = vsyncpa [#allocation6], 1 }
0x1365   :  { %3802 = vsyncpa [#allocation9], 1 }
0x1366   :  { %3804 = vsyncpa [#allocation9 + $0x1], 1 }
0x1367   :  { %3805 = vsyncpa [#allocation12], 1 }
0x1368   :  { %3807 = vsyncpa [#allocation12 + $0x1], 1 }
0x1369   :  { %3808 = vsyncpa [#allocation15], 1 }
0x136a   :  { %3810 = vsyncpa [#allocation15 + $0x1], 1 }
0x136b   :  { %3811 = vsyncpa [#allocation18], 1 }
0x136c   :  { %3813 = vsyncpa [#allocation18 + $0x1], 1 }
0x136d   :  { %3814 = vsyncpa [#allocation21], 1 }
0x136e   :  { %3816 = vsyncpa [#allocation21 + $0x1], 1 }
0x136f   :  { %3817 = vsyncpa [#allocation24], 1 }
0x1370   :  { %3819 = vsyncpa [#allocation24 + $0x1], 1 }
0x1371   :  { %3820 = vsyncpa [#allocation27], 1 }
0x1372   :  { %3822 = vsyncpa [#allocation27 + $0x1], 1 }
0x1373   :  { %3823 = vsyncpa [#allocation4], 1 }
0x1374   :  { %3825 = vsyncpa [#allocation4 + $0x1], 1 }

</bundles_post_ra>
